<compile_context>
chip_gen: v6e
topology: v6e:2x2x1
jax: 0.10.0
libtpu: 0.0.40
codegen_flags: <defaults>
</compile_context>

<pallas_src>
import jax
import jax.numpy as jnp
from jax.experimental import pallas as pl
from jax.experimental.pallas import tpu as pltpu

_SUBLANE = 8     # sublane group (rows per vreg)
_LANE = 128      # lane width (cols per vreg) -> padded gate width G


def _full_spec(shape):
    return pl.BlockSpec(shape, lambda *_: (0,) * len(shape))


def _compiler_params(n_inputs):
    # allow_input_fusion lets XLA fuse the (transpose + pad) producer of the
    # activation operand into the Mosaic call (saves a tiny standalone fusion
    # launch + HBM round trip).  Fall back cleanly if the installed JAX
    # rejects the kwarg.
    kwargs = dict(dimension_semantics=("arbitrary",))
    try:
        return pltpu.CompilerParams(
            allow_input_fusion=[True] + [False] * (n_inputs - 1), **kwargs)
    except TypeError:
        return pltpu.CompilerParams(**kwargs)


# ---------------------------------------------------------------------------
# Fused kernel: encoder GRU + decoder GRU, all time steps, one invocation.
#   x        : (T*BP, D)   time-major, batch zero-padded to BP=8 sublanes
#   weights  : gate blocks [r|z|n] each padded to G=128 lanes
#   output   : (T*BP, G)   decoder hidden, valid data = rows [:B], lanes [:V]
# ---------------------------------------------------------------------------
def _make_fused_gru2_kernel(T, BP, D, H, V, G):
    G3 = 3 * G

    def kernel(x_ref,        # (T*BP, D)
               wih_e_ref,    # (D, 3G)  encoder input weights
               whh_e_ref,    # (H, 3G)  encoder hidden weights
               bi_e_ref,     # (1, 3G)  b_ih_e + [b_hr_e, b_hz_e, 0]
               bhn_e_ref,    # (1, G)   b_hn_e
               wih_d_ref,    # (H, 3G)  decoder input weights
               whh_d_ref,    # (V, 3G)  decoder hidden weights
               bi_d_ref,     # (1, 3G)
               bhn_d_ref,    # (1, G)
               out_ref,      # (T*BP, G)
               gie_ref):     # (T*BP, 3G) VMEM scratch: hoisted encoder gi
        f32 = jnp.float32

        # Hoisted encoder input projection (one MXU pass for all steps,
        # biases pre-folded); parked in VMEM so per-step reads are aligned
        # (8, 3G) tiles instead of 24 live vregs.
        gie_ref[...] = (jnp.dot(x_ref[...], wih_e_ref[...],
                                preferred_element_type=f32)
                        + bi_e_ref[...])

        # Hoist every broadcast out of the unrolled loop (JAX does not CSE
        # broadcast_in_dim).
        bhn_e = jnp.broadcast_to(bhn_e_ref[...], (BP, G))
        bhn_d = jnp.broadcast_to(bhn_d_ref[...], (BP, G))
        bi_d = jnp.broadcast_to(bi_d_ref[...], (BP, G3))
        # Decoder hidden-path rows, pre-broadcast for the VPU rank-1 updates
        # (contraction width is only V=4 -> an MXU round trip per step would
        # be pure latency on the serial chain).
        w_d = [jnp.broadcast_to(whh_d_ref[k:k + 1, :], (BP, G3))
               for k in range(V)]

        h_e = jnp.zeros((BP, G), f32)   # pad lanes provably stay 0
        h_d = jnp.zeros((BP, G), f32)

        # Static unroll; encoder step t, decoder-input t and decoder step t
        # share one basic block so the scheduler overlaps decoder step t with
        # encoder step t+1 (the two recurrences only couple via enc(t)->dec(t)).
        for t in range(T):
            # ----- encoder step t (MXU hidden path) -----
            gi = gie_ref[t * BP:(t + 1) * BP, :]                  # aligned load
            gh = jnp.dot(h_e[:, :H], whh_e_ref[...],
                         preferred_element_type=f32)              # (BP, 3G)
            r = jax.nn.sigmoid(gi[:, 0:G] + gh[:, 0:G])           # vreg-aligned
            z = jax.nn.sigmoid(gi[:, G:2 * G] + gh[:, G:2 * G])
            n = jnp.tanh(gi[:, 2 * G:G3] + r * (gh[:, 2 * G:G3] + bhn_e))
            h_e = (1.0 - z) * n + z * h_e

            # ----- decoder input projection for step t (MXU) -----
            gid = jnp.dot(h_e[:, :H], wih_d_ref[...],
                          preferred_element_type=f32) + bi_d      # (BP, 3G)

            # ----- decoder step t (VPU rank-1 hidden path, K = V = 4) -----
            ghd = h_d[:, 0:1] * w_d[0]
            for k in range(1, V):
                ghd = ghd + h_d[:, k:k + 1] * w_d[k]
            rd = jax.nn.sigmoid(gid[:, 0:G] + ghd[:, 0:G])
            zd = jax.nn.sigmoid(gid[:, G:2 * G] + ghd[:, G:2 * G])
            nd = jnp.tanh(gid[:, 2 * G:G3] + rd * (ghd[:, 2 * G:G3] + bhn_d))
            h_d = (1.0 - zd) * nd + zd * h_d

            # Full aligned (8,128) store; valid data = rows [:B], lanes [:V].
            out_ref[t * BP:(t + 1) * BP, :] = h_d

    return kernel


# ---------------------------------------------------------------------------
# Parameter preparation (torch.nn.GRU layout -> padded kernel layout), once.
# torch layout: w_ih (3H, D_in) rows [W_ir; W_iz; W_in], w_hh (3H, H),
#               b_ih (3H,), b_hh (3H,).
# ---------------------------------------------------------------------------
def prepare_gru_params(raw, gate_pad=_LANE):
    w_ih = jnp.asarray(raw["w_ih"], jnp.float32)
    w_hh = jnp.asarray(raw["w_hh"], jnp.float32)
    b_ih = jnp.asarray(raw["b_ih"], jnp.float32)
    b_hh = jnp.asarray(raw["b_hh"], jnp.float32)
    Hd = w_hh.shape[1]          # this layer's hidden size
    G = gate_pad
    assert Hd <= G

    def pad_gate_cols(blocks):  # blocks: 3 x (rows, Hd) -> (rows, 3G)
        rows = blocks[0].shape[0]
        out = jnp.zeros((rows, 3 * G), jnp.float32)
        for g, blk in enumerate(blocks):
            out = out.at[:, g * G:g * G + Hd].set(blk)
        return out

    w_ir, w_iz, w_in = jnp.split(w_ih, 3, axis=0)     # (Hd, D_in) each
    w_hr, w_hz, w_hn = jnp.split(w_hh, 3, axis=0)     # (Hd, Hd) each
    b_ir, b_iz, b_in = jnp.split(b_ih, 3)
    b_hr, b_hz, b_hn = jnp.split(b_hh, 3)

    # Fold b_hr, b_hz into the input-path bias (same sigmoid argument); only
    # b_hn must stay inside r * (W_hn h + b_hn).
    return {
        "wih": pad_gate_cols([w_ir.T, w_iz.T, w_in.T]),                    # (D_in, 3G)
        "whh": pad_gate_cols([w_hr.T, w_hz.T, w_hn.T]),                    # (Hd, 3G)
        "bi": pad_gate_cols([(b_ir + b_hr)[None, :],
                             (b_iz + b_hz)[None, :],
                             b_in[None, :]]),                              # (1, 3G)
        "bhn": jnp.zeros((1, G), jnp.float32).at[0, :Hd].set(b_hn),        # (1, G)
    }


# ---------------------------------------------------------------------------
# Forward: one fused pallas_call (encoder + decoder).
# ---------------------------------------------------------------------------
@jax.jit
def model_forward(prep, x_btd):
    B, T, D = x_btd.shape
    H = prep["enc"]["whh"].shape[0]     # RNN_hid_dim
    V = prep["dec"]["whh"].shape[0]     # var_dim
    G = prep["enc"]["bhn"].shape[1]     # padded gate width (128)
    BP = max(_SUBLANE, ((B + _SUBLANE - 1) // _SUBLANE) * _SUBLANE)

    # batch_first (B,T,D) -> time-major (T, BP, D) with batch zero-padded to
    # the 8-sublane boundary, flattened to (T*BP, D).  (With allow_input_fusion
    # XLA can fold this producer into the Mosaic call's input DMA.)
    x_tm = jnp.transpose(x_btd.astype(jnp.float32), (1, 0, 2))
    x_tm = jnp.pad(x_tm, ((0, 0), (0, BP - B), (0, 0)))
    x_flat = x_tm.reshape(T * BP, D)

    kernel = _make_fused_gru2_kernel(T, BP, D, H, V, G)
    n_inputs = 9
    # TODO(synk): if batch ever grows past ~8-16 rows, add a leading batch
    # grid axis marked "parallel" so v7x's second TensorCore is used; at B=2 a
    # single block is optimal.
    out_flat = pl.pallas_call(
        kernel,
        out_shape=jax.ShapeDtypeStruct((T * BP, G), jnp.float32),
        grid=(1,),
        in_specs=[
            _full_spec((T * BP, D)),
            _full_spec((D, 3 * G)),
            _full_spec((H, 3 * G)),
            _full_spec((1, 3 * G)),
            _full_spec((1, G)),
            _full_spec((H, 3 * G)),
            _full_spec((V, 3 * G)),
            _full_spec((1, 3 * G)),
            _full_spec((1, G)),
        ],
        out_specs=_full_spec((T * BP, G)),
        scratch_shapes=[pltpu.VMEM((T * BP, 3 * G), jnp.float32)],
        compiler_params=_compiler_params(n_inputs),
    )(x_flat,
      prep["enc"]["wih"], prep["enc"]["whh"], prep["enc"]["bi"], prep["enc"]["bhn"],
      prep["dec"]["wih"], prep["dec"]["whh"], prep["dec"]["bi"], prep["dec"]["bhn"])

    # Strip batch/lane padding and return batch_first (B, T, V).
    out = out_flat.reshape(T, BP, G)[:, :B, :V]
    return jnp.transpose(out, (1, 0, 2))


# ---------------------------------------------------------------------------
# torch-like initialization (same layout as nn.GRU parameters).
# ---------------------------------------------------------------------------
def init_gru_params(key, input_dim, hidden_dim):
    k = 1.0 / jnp.sqrt(hidden_dim)
    ks = jax.random.split(key, 4)
    return {
        "w_ih": jax.random.uniform(ks[0], (3 * hidden_dim, input_dim), jnp.float32, -k, k),
        "w_hh": jax.random.uniform(ks[1], (3 * hidden_dim, hidden_dim), jnp.float32, -k, k),
        "b_ih": jax.random.uniform(ks[2], (3 * hidden_dim,), jnp.float32, -k, k),
        "b_hh": jax.random.uniform(ks[3], (3 * hidden_dim,), jnp.float32, -k, k),
    }


# Pure-JAX reference (lax.scan GRU, torch parameter layout) for correctness.
def gru_ref(x_btf, w_ih, w_hh, b_ih, b_hh):
    B, T, D = x_btf.shape
    H = w_hh.shape[1]
    w_ir, w_iz, w_in = jnp.split(w_ih, 3, axis=0)
    w_hr, w_hz, w_hn = jnp.split(w_hh, 3, axis=0)
    b_ir, b_iz, b_in = jnp.split(b_ih, 3)
    b_hr, b_hz, b_hn = jnp.split(b_hh, 3)

    def step(h, x_t):
        r = jax.nn.sigmoid(x_t @ w_ir.T + b_ir + h @ w_hr.T + b_hr)
        z = jax.nn.sigmoid(x_t @ w_iz.T + b_iz + h @ w_hz.T + b_hz)
        n = jnp.tanh(x_t @ w_in.T + b_in + r * (h @ w_hn.T + b_hn))
        h_new = (1.0 - z) * n + z * h
        return h_new, h_new

    _, out = jax.lax.scan(step, jnp.zeros((B, H), jnp.float32),
                          jnp.transpose(x_btf, (1, 0, 2)))
    return jnp.transpose(out, (1, 0, 2))


if __name__ == "__main__":
    # Small shapes consistent with the module: wnd_dim (seq) = 8, var_dim = 4,
    # RNN_hid_dim = 32, batch = 2.
    batch, wnd_dim, var_dim, rnn_hid_dim = 2, 8, 4, 32

    root = jax.random.PRNGKey(0)
    k_x, k_enc, k_dec = jax.random.split(root, 3)

    x = jax.random.normal(k_x, (batch, wnd_dim, var_dim), jnp.float32)
    raw_params = {
        "enc": init_gru_params(k_enc, var_dim, rnn_hid_dim),
        "dec": init_gru_params(k_dec, rnn_hid_dim, var_dim),
    }
    # Weight transpose / gate padding / bias folding done once at setup time.
    prep_params = {
        "enc": prepare_gru_params(raw_params["enc"]),
        "dec": prepare_gru_params(raw_params["dec"]),
    }

    out = jax.block_until_ready(model_forward(prep_params, x))
    assert out.shape == (batch, wnd_dim, var_dim), out.shape

    # Verify against pure-JAX reference GRU stack (torch-layout params).
    ref_enc = gru_ref(x, **raw_params["enc"])
    ref_out = gru_ref(ref_enc, **raw_params["dec"])
    assert jnp.allclose(out, ref_out, atol=1e-5, rtol=1e-5), \
        float(jnp.max(jnp.abs(out - ref_out)))

    print("KERNEL_OK")
</pallas_src>

<mosaic_0001>
module attributes {stable_mosaic.version = 11 : i64} {
  func.func @kernel(%arg0: i32, %arg1: memref<64x4xf32, #tpu.memory_space<vmem>>, %arg2: memref<4x384xf32, #tpu.memory_space<vmem>>, %arg3: memref<32x384xf32, #tpu.memory_space<vmem>>, %arg4: memref<1x384xf32, #tpu.memory_space<vmem>>, %arg5: memref<1x128xf32, #tpu.memory_space<vmem>>, %arg6: memref<32x384xf32, #tpu.memory_space<vmem>>, %arg7: memref<4x384xf32, #tpu.memory_space<vmem>>, %arg8: memref<1x384xf32, #tpu.memory_space<vmem>>, %arg9: memref<1x128xf32, #tpu.memory_space<vmem>>, %arg10: memref<64x128xf32, #tpu.memory_space<vmem>>, %arg11: memref<64x384xf32, #tpu.memory_space<vmem>>) attributes {dimension_semantics = [#tpu.dimension_semantics<arbitrary>], iteration_bounds = array<i64: 1>, scalar_prefetch = 0 : i64, scratch_operands = 1 : i64, tpu.core_type = #tpu.core_type<tc>, window_params = [{pipeline_mode = #tpu.pipeline_mode<synchronous>, transform_indices = @transform_0, window_bounds = array<i64: 64, 4>}, {pipeline_mode = #tpu.pipeline_mode<synchronous>, transform_indices = @transform_1, window_bounds = array<i64: 4, 384>}, {pipeline_mode = #tpu.pipeline_mode<synchronous>, transform_indices = @transform_2, window_bounds = array<i64: 32, 384>}, {pipeline_mode = #tpu.pipeline_mode<synchronous>, transform_indices = @transform_3, window_bounds = array<i64: 1, 384>}, {pipeline_mode = #tpu.pipeline_mode<synchronous>, transform_indices = @transform_4, window_bounds = array<i64: 1, 128>}, {pipeline_mode = #tpu.pipeline_mode<synchronous>, transform_indices = @transform_5, window_bounds = array<i64: 32, 384>}, {pipeline_mode = #tpu.pipeline_mode<synchronous>, transform_indices = @transform_6, window_bounds = array<i64: 4, 384>}, {pipeline_mode = #tpu.pipeline_mode<synchronous>, transform_indices = @transform_7, window_bounds = array<i64: 1, 384>}, {pipeline_mode = #tpu.pipeline_mode<synchronous>, transform_indices = @transform_8, window_bounds = array<i64: 1, 128>}, {pipeline_mode = #tpu.pipeline_mode<synchronous>, transform_indices = @transform_9, window_bounds = array<i64: 64, 128>}]} {
    %c0 = arith.constant 0 : index
    %c0_0 = arith.constant 0 : index
    %0 = vector.load %arg1[%c0, %c0_0] : memref<64x4xf32, #tpu.memory_space<vmem>>, vector<64x4xf32>
    %c0_1 = arith.constant 0 : index
    %c0_2 = arith.constant 0 : index
    %1 = vector.load %arg2[%c0_1, %c0_2] : memref<4x384xf32, #tpu.memory_space<vmem>>, vector<4x384xf32>
    %cst = arith.constant dense<0.000000e+00> : vector<64x384xf32>
    %2 = tpu.matmul %0, %1, %cst {dimension_numbers = #tpu.dot_dimension_numbers<[1], [0], [0], [1], [0, 0, 1, 1], [], []>} : vector<64x4xf32>, vector<4x384xf32>, vector<64x384xf32> -> vector<64x384xf32>
    %c0_3 = arith.constant 0 : index
    %c0_4 = arith.constant 0 : index
    %3 = vector.load %arg4[%c0_3, %c0_4] : memref<1x384xf32, #tpu.memory_space<vmem>>, vector<1x384xf32>
    %4 = vector.broadcast %3 : vector<1x384xf32> to vector<64x384xf32>
    %5 = arith.addf %2, %4 : vector<64x384xf32>
    %c0_5 = arith.constant 0 : index
    %c0_6 = arith.constant 0 : index
    %6 = vector.load %arg11[%c0_5, %c0_6] : memref<64x384xf32, #tpu.memory_space<vmem>>, vector<64x384xf32>
    tpu.vector_store %arg11[%c0_5, %c0_6], %5 {strides = array<i32>} : memref<64x384xf32, #tpu.memory_space<vmem>>, vector<64x384xf32>,
    %c0_7 = arith.constant 0 : index
    %c0_8 = arith.constant 0 : index
    %7 = vector.load %arg5[%c0_7, %c0_8] : memref<1x128xf32, #tpu.memory_space<vmem>>, vector<1x128xf32>
    %8 = vector.shape_cast %7 : vector<1x128xf32> to vector<1x128xf32>
    %9 = vector.broadcast %8 : vector<1x128xf32> to vector<8x128xf32>
    %c0_9 = arith.constant 0 : index
    %c0_10 = arith.constant 0 : index
    %10 = vector.load %arg9[%c0_9, %c0_10] : memref<1x128xf32, #tpu.memory_space<vmem>>, vector<1x128xf32>
    %11 = vector.shape_cast %10 : vector<1x128xf32> to vector<1x128xf32>
    %12 = vector.broadcast %11 : vector<1x128xf32> to vector<8x128xf32>
    %c0_11 = arith.constant 0 : index
    %c0_12 = arith.constant 0 : index
    %13 = vector.load %arg8[%c0_11, %c0_12] : memref<1x384xf32, #tpu.memory_space<vmem>>, vector<1x384xf32>
    %14 = vector.shape_cast %13 : vector<1x384xf32> to vector<1x384xf32>
    %15 = vector.broadcast %14 : vector<1x384xf32> to vector<8x384xf32>
    %c0_13 = arith.constant 0 : index
    %c0_14 = arith.constant 0 : index
    %16 = vector.load %arg7[%c0_13, %c0_14] : memref<4x384xf32, #tpu.memory_space<vmem>>, vector<1x384xf32>
    %17 = vector.shape_cast %16 : vector<1x384xf32> to vector<1x384xf32>
    %18 = vector.broadcast %17 : vector<1x384xf32> to vector<8x384xf32>
    %c1 = arith.constant 1 : index
    %c0_15 = arith.constant 0 : index
    %19 = vector.load %arg7[%c1, %c0_15] : memref<4x384xf32, #tpu.memory_space<vmem>>, vector<1x384xf32>
    %20 = vector.shape_cast %19 : vector<1x384xf32> to vector<1x384xf32>
    %21 = vector.broadcast %20 : vector<1x384xf32> to vector<8x384xf32>
    %c2 = arith.constant 2 : index
    %c0_16 = arith.constant 0 : index
    %22 = vector.load %arg7[%c2, %c0_16] : memref<4x384xf32, #tpu.memory_space<vmem>>, vector<1x384xf32>
    %23 = vector.shape_cast %22 : vector<1x384xf32> to vector<1x384xf32>
    %24 = vector.broadcast %23 : vector<1x384xf32> to vector<8x384xf32>
    %c3 = arith.constant 3 : index
    %c0_17 = arith.constant 0 : index
    %25 = vector.load %arg7[%c3, %c0_17] : memref<4x384xf32, #tpu.memory_space<vmem>>, vector<1x384xf32>
    %26 = vector.shape_cast %25 : vector<1x384xf32> to vector<1x384xf32>
    %27 = vector.broadcast %26 : vector<1x384xf32> to vector<8x384xf32>
    %cst_18 = arith.constant 0.000000e+00 : f32
    %28 = vector.broadcast %cst_18 : f32 to vector<8x128xf32>
    %cst_19 = arith.constant 0.000000e+00 : f32
    %29 = vector.broadcast %cst_19 : f32 to vector<8x128xf32>
    %c0_20 = arith.constant 0 : index
    %c0_21 = arith.constant 0 : index
    %30 = vector.load %arg11[%c0_20, %c0_21] : memref<64x384xf32, #tpu.memory_space<vmem>>, vector<8x384xf32>
    %31 = vector.extract_strided_slice %28 {offsets = [0, 0], sizes = [8, 32], strides = [1, 1]} : vector<8x128xf32> to vector<8x32xf32>
    %c0_22 = arith.constant 0 : index
    %c0_23 = arith.constant 0 : index
    %32 = vector.load %arg3[%c0_22, %c0_23] : memref<32x384xf32, #tpu.memory_space<vmem>>, vector<32x384xf32>
    %cst_24 = arith.constant dense<0.000000e+00> : vector<8x384xf32>
    %33 = tpu.matmul %31, %32, %cst_24 {dimension_numbers = #tpu.dot_dimension_numbers<[1], [0], [0], [1], [0, 0, 1, 1], [], []>} : vector<8x32xf32>, vector<32x384xf32>, vector<8x384xf32> -> vector<8x384xf32>
    %34 = vector.extract_strided_slice %30 {offsets = [0, 0], sizes = [8, 128], strides = [1, 1]} : vector<8x384xf32> to vector<8x128xf32>
    %35 = vector.extract_strided_slice %33 {offsets = [0, 0], sizes = [8, 128], strides = [1, 1]} : vector<8x384xf32> to vector<8x128xf32>
    %36 = arith.addf %34, %35 : vector<8x128xf32>
    %37 = arith.negf %36 : vector<8x128xf32>
    %38 = math.exp %37 : vector<8x128xf32>
    %cst_25 = arith.constant 1.000000e+00 : f32
    %39 = vector.broadcast %cst_25 : f32 to vector<8x128xf32>
    %40 = arith.addf %39, %38 : vector<8x128xf32>
    %41 = arith.divf %39, %40 : vector<8x128xf32>
    %42 = vector.extract_strided_slice %30 {offsets = [0, 128], sizes = [8, 128], strides = [1, 1]} : vector<8x384xf32> to vector<8x128xf32>
    %43 = vector.extract_strided_slice %33 {offsets = [0, 128], sizes = [8, 128], strides = [1, 1]} : vector<8x384xf32> to vector<8x128xf32>
    %44 = arith.addf %42, %43 : vector<8x128xf32>
    %45 = arith.negf %44 : vector<8x128xf32>
    %46 = math.exp %45 : vector<8x128xf32>
    %cst_26 = arith.constant 1.000000e+00 : f32
    %47 = vector.broadcast %cst_26 : f32 to vector<8x128xf32>
    %48 = arith.addf %47, %46 : vector<8x128xf32>
    %49 = arith.divf %47, %48 : vector<8x128xf32>
    %50 = vector.extract_strided_slice %30 {offsets = [0, 256], sizes = [8, 128], strides = [1, 1]} : vector<8x384xf32> to vector<8x128xf32>
    %51 = vector.extract_strided_slice %33 {offsets = [0, 256], sizes = [8, 128], strides = [1, 1]} : vector<8x384xf32> to vector<8x128xf32>
    %52 = arith.addf %51, %9 : vector<8x128xf32>
    %53 = arith.mulf %41, %52 : vector<8x128xf32>
    %54 = arith.addf %50, %53 : vector<8x128xf32>
    %55 = math.tanh %54 : vector<8x128xf32>
    %cst_27 = arith.constant 1.000000e+00 : f32
    %56 = vector.broadcast %cst_27 : f32 to vector<8x128xf32>
    %57 = arith.subf %56, %49 : vector<8x128xf32>
    %58 = arith.mulf %57, %55 : vector<8x128xf32>
    %59 = arith.mulf %49, %28 : vector<8x128xf32>
    %60 = arith.addf %58, %59 : vector<8x128xf32>
    %61 = vector.extract_strided_slice %60 {offsets = [0, 0], sizes = [8, 32], strides = [1, 1]} : vector<8x128xf32> to vector<8x32xf32>
    %c0_28 = arith.constant 0 : index
    %c0_29 = arith.constant 0 : index
    %62 = vector.load %arg6[%c0_28, %c0_29] : memref<32x384xf32, #tpu.memory_space<vmem>>, vector<32x384xf32>
    %cst_30 = arith.constant dense<0.000000e+00> : vector<8x384xf32>
    %63 = tpu.matmul %61, %62, %cst_30 {dimension_numbers = #tpu.dot_dimension_numbers<[1], [0], [0], [1], [0, 0, 1, 1], [], []>} : vector<8x32xf32>, vector<32x384xf32>, vector<8x384xf32> -> vector<8x384xf32>
    %64 = arith.addf %63, %15 : vector<8x384xf32>
    %65 = vector.extract_strided_slice %29 {offsets = [0, 0], sizes = [8, 1], strides = [1, 1]} : vector<8x128xf32> to vector<8x1xf32>
    %66 = vector.broadcast %65 : vector<8x1xf32> to vector<8x384xf32>
    %67 = arith.mulf %66, %18 : vector<8x384xf32>
    %68 = vector.extract_strided_slice %29 {offsets = [0, 1], sizes = [8, 1], strides = [1, 1]} : vector<8x128xf32> to vector<8x1xf32>
    %69 = vector.broadcast %68 : vector<8x1xf32> to vector<8x384xf32>
    %70 = arith.mulf %69, %21 : vector<8x384xf32>
    %71 = arith.addf %67, %70 : vector<8x384xf32>
    %72 = vector.extract_strided_slice %29 {offsets = [0, 2], sizes = [8, 1], strides = [1, 1]} : vector<8x128xf32> to vector<8x1xf32>
    %73 = vector.broadcast %72 : vector<8x1xf32> to vector<8x384xf32>
    %74 = arith.mulf %73, %24 : vector<8x384xf32>
    %75 = arith.addf %71, %74 : vector<8x384xf32>
    %76 = vector.extract_strided_slice %29 {offsets = [0, 3], sizes = [8, 1], strides = [1, 1]} : vector<8x128xf32> to vector<8x1xf32>
    %77 = vector.broadcast %76 : vector<8x1xf32> to vector<8x384xf32>
    %78 = arith.mulf %77, %27 : vector<8x384xf32>
    %79 = arith.addf %75, %78 : vector<8x384xf32>
    %80 = vector.extract_strided_slice %64 {offsets = [0, 0], sizes = [8, 128], strides = [1, 1]} : vector<8x384xf32> to vector<8x128xf32>
    %81 = vector.extract_strided_slice %79 {offsets = [0, 0], sizes = [8, 128], strides = [1, 1]} : vector<8x384xf32> to vector<8x128xf32>
    %82 = arith.addf %80, %81 : vector<8x128xf32>
    %83 = arith.negf %82 : vector<8x128xf32>
    %84 = math.exp %83 : vector<8x128xf32>
    %cst_31 = arith.constant 1.000000e+00 : f32
    %85 = vector.broadcast %cst_31 : f32 to vector<8x128xf32>
    %86 = arith.addf %85, %84 : vector<8x128xf32>
    %87 = arith.divf %85, %86 : vector<8x128xf32>
    %88 = vector.extract_strided_slice %64 {offsets = [0, 128], sizes = [8, 128], strides = [1, 1]} : vector<8x384xf32> to vector<8x128xf32>
    %89 = vector.extract_strided_slice %79 {offsets = [0, 128], sizes = [8, 128], strides = [1, 1]} : vector<8x384xf32> to vector<8x128xf32>
    %90 = arith.addf %88, %89 : vector<8x128xf32>
    %91 = arith.negf %90 : vector<8x128xf32>
    %92 = math.exp %91 : vector<8x128xf32>
    %cst_32 = arith.constant 1.000000e+00 : f32
    %93 = vector.broadcast %cst_32 : f32 to vector<8x128xf32>
    %94 = arith.addf %93, %92 : vector<8x128xf32>
    %95 = arith.divf %93, %94 : vector<8x128xf32>
    %96 = vector.extract_strided_slice %64 {offsets = [0, 256], sizes = [8, 128], strides = [1, 1]} : vector<8x384xf32> to vector<8x128xf32>
    %97 = vector.extract_strided_slice %79 {offsets = [0, 256], sizes = [8, 128], strides = [1, 1]} : vector<8x384xf32> to vector<8x128xf32>
    %98 = arith.addf %97, %12 : vector<8x128xf32>
    %99 = arith.mulf %87, %98 : vector<8x128xf32>
    %100 = arith.addf %96, %99 : vector<8x128xf32>
    %101 = math.tanh %100 : vector<8x128xf32>
    %cst_33 = arith.constant 1.000000e+00 : f32
    %102 = vector.broadcast %cst_33 : f32 to vector<8x128xf32>
    %103 = arith.subf %102, %95 : vector<8x128xf32>
    %104 = arith.mulf %103, %101 : vector<8x128xf32>
    %105 = arith.mulf %95, %29 : vector<8x128xf32>
    %106 = arith.addf %104, %105 : vector<8x128xf32>
    %c0_34 = arith.constant 0 : index
    %c0_35 = arith.constant 0 : index
    %107 = vector.load %arg10[%c0_34, %c0_35] : memref<64x128xf32, #tpu.memory_space<vmem>>, vector<8x128xf32>
    tpu.vector_store %arg10[%c0_34, %c0_35], %106 {strides = array<i32>} : memref<64x128xf32, #tpu.memory_space<vmem>>, vector<8x128xf32>,
    %c8 = arith.constant 8 : index
    %c0_36 = arith.constant 0 : index
    %108 = vector.load %arg11[%c8, %c0_36] : memref<64x384xf32, #tpu.memory_space<vmem>>, vector<8x384xf32>
    %109 = vector.extract_strided_slice %60 {offsets = [0, 0], sizes = [8, 32], strides = [1, 1]} : vector<8x128xf32> to vector<8x32xf32>
    %c0_37 = arith.constant 0 : index
    %c0_38 = arith.constant 0 : index
    %110 = vector.load %arg3[%c0_37, %c0_38] : memref<32x384xf32, #tpu.memory_space<vmem>>, vector<32x384xf32>
    %cst_39 = arith.constant dense<0.000000e+00> : vector<8x384xf32>
    %111 = tpu.matmul %109, %110, %cst_39 {dimension_numbers = #tpu.dot_dimension_numbers<[1], [0], [0], [1], [0, 0, 1, 1], [], []>} : vector<8x32xf32>, vector<32x384xf32>, vector<8x384xf32> -> vector<8x384xf32>
    %112 = vector.extract_strided_slice %108 {offsets = [0, 0], sizes = [8, 128], strides = [1, 1]} : vector<8x384xf32> to vector<8x128xf32>
    %113 = vector.extract_strided_slice %111 {offsets = [0, 0], sizes = [8, 128], strides = [1, 1]} : vector<8x384xf32> to vector<8x128xf32>
    %114 = arith.addf %112, %113 : vector<8x128xf32>
    %115 = arith.negf %114 : vector<8x128xf32>
    %116 = math.exp %115 : vector<8x128xf32>
    %cst_40 = arith.constant 1.000000e+00 : f32
    %117 = vector.broadcast %cst_40 : f32 to vector<8x128xf32>
    %118 = arith.addf %117, %116 : vector<8x128xf32>
    %119 = arith.divf %117, %118 : vector<8x128xf32>
    %120 = vector.extract_strided_slice %108 {offsets = [0, 128], sizes = [8, 128], strides = [1, 1]} : vector<8x384xf32> to vector<8x128xf32>
    %121 = vector.extract_strided_slice %111 {offsets = [0, 128], sizes = [8, 128], strides = [1, 1]} : vector<8x384xf32> to vector<8x128xf32>
    %122 = arith.addf %120, %121 : vector<8x128xf32>
    %123 = arith.negf %122 : vector<8x128xf32>
    %124 = math.exp %123 : vector<8x128xf32>
    %cst_41 = arith.constant 1.000000e+00 : f32
    %125 = vector.broadcast %cst_41 : f32 to vector<8x128xf32>
    %126 = arith.addf %125, %124 : vector<8x128xf32>
    %127 = arith.divf %125, %126 : vector<8x128xf32>
    %128 = vector.extract_strided_slice %108 {offsets = [0, 256], sizes = [8, 128], strides = [1, 1]} : vector<8x384xf32> to vector<8x128xf32>
    %129 = vector.extract_strided_slice %111 {offsets = [0, 256], sizes = [8, 128], strides = [1, 1]} : vector<8x384xf32> to vector<8x128xf32>
    %130 = arith.addf %129, %9 : vector<8x128xf32>
    %131 = arith.mulf %119, %130 : vector<8x128xf32>
    %132 = arith.addf %128, %131 : vector<8x128xf32>
    %133 = math.tanh %132 : vector<8x128xf32>
    %cst_42 = arith.constant 1.000000e+00 : f32
    %134 = vector.broadcast %cst_42 : f32 to vector<8x128xf32>
    %135 = arith.subf %134, %127 : vector<8x128xf32>
    %136 = arith.mulf %135, %133 : vector<8x128xf32>
    %137 = arith.mulf %127, %60 : vector<8x128xf32>
    %138 = arith.addf %136, %137 : vector<8x128xf32>
    %139 = vector.extract_strided_slice %138 {offsets = [0, 0], sizes = [8, 32], strides = [1, 1]} : vector<8x128xf32> to vector<8x32xf32>
    %c0_43 = arith.constant 0 : index
    %c0_44 = arith.constant 0 : index
    %140 = vector.load %arg6[%c0_43, %c0_44] : memref<32x384xf32, #tpu.memory_space<vmem>>, vector<32x384xf32>
    %cst_45 = arith.constant dense<0.000000e+00> : vector<8x384xf32>
    %141 = tpu.matmul %139, %140, %cst_45 {dimension_numbers = #tpu.dot_dimension_numbers<[1], [0], [0], [1], [0, 0, 1, 1], [], []>} : vector<8x32xf32>, vector<32x384xf32>, vector<8x384xf32> -> vector<8x384xf32>
    %142 = arith.addf %141, %15 : vector<8x384xf32>
    %143 = vector.extract_strided_slice %106 {offsets = [0, 0], sizes = [8, 1], strides = [1, 1]} : vector<8x128xf32> to vector<8x1xf32>
    %144 = vector.broadcast %143 : vector<8x1xf32> to vector<8x384xf32>
    %145 = arith.mulf %144, %18 : vector<8x384xf32>
    %146 = vector.extract_strided_slice %106 {offsets = [0, 1], sizes = [8, 1], strides = [1, 1]} : vector<8x128xf32> to vector<8x1xf32>
    %147 = vector.broadcast %146 : vector<8x1xf32> to vector<8x384xf32>
    %148 = arith.mulf %147, %21 : vector<8x384xf32>
    %149 = arith.addf %145, %148 : vector<8x384xf32>
    %150 = vector.extract_strided_slice %106 {offsets = [0, 2], sizes = [8, 1], strides = [1, 1]} : vector<8x128xf32> to vector<8x1xf32>
    %151 = vector.broadcast %150 : vector<8x1xf32> to vector<8x384xf32>
    %152 = arith.mulf %151, %24 : vector<8x384xf32>
    %153 = arith.addf %149, %152 : vector<8x384xf32>
    %154 = vector.extract_strided_slice %106 {offsets = [0, 3], sizes = [8, 1], strides = [1, 1]} : vector<8x128xf32> to vector<8x1xf32>
    %155 = vector.broadcast %154 : vector<8x1xf32> to vector<8x384xf32>
    %156 = arith.mulf %155, %27 : vector<8x384xf32>
    %157 = arith.addf %153, %156 : vector<8x384xf32>
    %158 = vector.extract_strided_slice %142 {offsets = [0, 0], sizes = [8, 128], strides = [1, 1]} : vector<8x384xf32> to vector<8x128xf32>
    %159 = vector.extract_strided_slice %157 {offsets = [0, 0], sizes = [8, 128], strides = [1, 1]} : vector<8x384xf32> to vector<8x128xf32>
    %160 = arith.addf %158, %159 : vector<8x128xf32>
    %161 = arith.negf %160 : vector<8x128xf32>
    %162 = math.exp %161 : vector<8x128xf32>
    %cst_46 = arith.constant 1.000000e+00 : f32
    %163 = vector.broadcast %cst_46 : f32 to vector<8x128xf32>
    %164 = arith.addf %163, %162 : vector<8x128xf32>
    %165 = arith.divf %163, %164 : vector<8x128xf32>
    %166 = vector.extract_strided_slice %142 {offsets = [0, 128], sizes = [8, 128], strides = [1, 1]} : vector<8x384xf32> to vector<8x128xf32>
    %167 = vector.extract_strided_slice %157 {offsets = [0, 128], sizes = [8, 128], strides = [1, 1]} : vector<8x384xf32> to vector<8x128xf32>
    %168 = arith.addf %166, %167 : vector<8x128xf32>
    %169 = arith.negf %168 : vector<8x128xf32>
    %170 = math.exp %169 : vector<8x128xf32>
    %cst_47 = arith.constant 1.000000e+00 : f32
    %171 = vector.broadcast %cst_47 : f32 to vector<8x128xf32>
    %172 = arith.addf %171, %170 : vector<8x128xf32>
    %173 = arith.divf %171, %172 : vector<8x128xf32>
    %174 = vector.extract_strided_slice %142 {offsets = [0, 256], sizes = [8, 128], strides = [1, 1]} : vector<8x384xf32> to vector<8x128xf32>
    %175 = vector.extract_strided_slice %157 {offsets = [0, 256], sizes = [8, 128], strides = [1, 1]} : vector<8x384xf32> to vector<8x128xf32>
    %176 = arith.addf %175, %12 : vector<8x128xf32>
    %177 = arith.mulf %165, %176 : vector<8x128xf32>
    %178 = arith.addf %174, %177 : vector<8x128xf32>
    %179 = math.tanh %178 : vector<8x128xf32>
    %cst_48 = arith.constant 1.000000e+00 : f32
    %180 = vector.broadcast %cst_48 : f32 to vector<8x128xf32>
    %181 = arith.subf %180, %173 : vector<8x128xf32>
    %182 = arith.mulf %181, %179 : vector<8x128xf32>
    %183 = arith.mulf %173, %106 : vector<8x128xf32>
    %184 = arith.addf %182, %183 : vector<8x128xf32>
    %c8_49 = arith.constant 8 : index
    %c0_50 = arith.constant 0 : index
    %185 = vector.load %arg10[%c8_49, %c0_50] : memref<64x128xf32, #tpu.memory_space<vmem>>, vector<8x128xf32>
    tpu.vector_store %arg10[%c8_49, %c0_50], %184 {strides = array<i32>} : memref<64x128xf32, #tpu.memory_space<vmem>>, vector<8x128xf32>,
    %c16 = arith.constant 16 : index
    %c0_51 = arith.constant 0 : index
    %186 = vector.load %arg11[%c16, %c0_51] : memref<64x384xf32, #tpu.memory_space<vmem>>, vector<8x384xf32>
    %187 = vector.extract_strided_slice %138 {offsets = [0, 0], sizes = [8, 32], strides = [1, 1]} : vector<8x128xf32> to vector<8x32xf32>
    %c0_52 = arith.constant 0 : index
    %c0_53 = arith.constant 0 : index
    %188 = vector.load %arg3[%c0_52, %c0_53] : memref<32x384xf32, #tpu.memory_space<vmem>>, vector<32x384xf32>
    %cst_54 = arith.constant dense<0.000000e+00> : vector<8x384xf32>
    %189 = tpu.matmul %187, %188, %cst_54 {dimension_numbers = #tpu.dot_dimension_numbers<[1], [0], [0], [1], [0, 0, 1, 1], [], []>} : vector<8x32xf32>, vector<32x384xf32>, vector<8x384xf32> -> vector<8x384xf32>
    %190 = vector.extract_strided_slice %186 {offsets = [0, 0], sizes = [8, 128], strides = [1, 1]} : vector<8x384xf32> to vector<8x128xf32>
    %191 = vector.extract_strided_slice %189 {offsets = [0, 0], sizes = [8, 128], strides = [1, 1]} : vector<8x384xf32> to vector<8x128xf32>
    %192 = arith.addf %190, %191 : vector<8x128xf32>
    %193 = arith.negf %192 : vector<8x128xf32>
    %194 = math.exp %193 : vector<8x128xf32>
    %cst_55 = arith.constant 1.000000e+00 : f32
    %195 = vector.broadcast %cst_55 : f32 to vector<8x128xf32>
    %196 = arith.addf %195, %194 : vector<8x128xf32>
    %197 = arith.divf %195, %196 : vector<8x128xf32>
    %198 = vector.extract_strided_slice %186 {offsets = [0, 128], sizes = [8, 128], strides = [1, 1]} : vector<8x384xf32> to vector<8x128xf32>
    %199 = vector.extract_strided_slice %189 {offsets = [0, 128], sizes = [8, 128], strides = [1, 1]} : vector<8x384xf32> to vector<8x128xf32>
    %200 = arith.addf %198, %199 : vector<8x128xf32>
    %201 = arith.negf %200 : vector<8x128xf32>
    %202 = math.exp %201 : vector<8x128xf32>
    %cst_56 = arith.constant 1.000000e+00 : f32
    %203 = vector.broadcast %cst_56 : f32 to vector<8x128xf32>
    %204 = arith.addf %203, %202 : vector<8x128xf32>
    %205 = arith.divf %203, %204 : vector<8x128xf32>
    %206 = vector.extract_strided_slice %186 {offsets = [0, 256], sizes = [8, 128], strides = [1, 1]} : vector<8x384xf32> to vector<8x128xf32>
    %207 = vector.extract_strided_slice %189 {offsets = [0, 256], sizes = [8, 128], strides = [1, 1]} : vector<8x384xf32> to vector<8x128xf32>
    %208 = arith.addf %207, %9 : vector<8x128xf32>
    %209 = arith.mulf %197, %208 : vector<8x128xf32>
    %210 = arith.addf %206, %209 : vector<8x128xf32>
    %211 = math.tanh %210 : vector<8x128xf32>
    %cst_57 = arith.constant 1.000000e+00 : f32
    %212 = vector.broadcast %cst_57 : f32 to vector<8x128xf32>
    %213 = arith.subf %212, %205 : vector<8x128xf32>
    %214 = arith.mulf %213, %211 : vector<8x128xf32>
    %215 = arith.mulf %205, %138 : vector<8x128xf32>
    %216 = arith.addf %214, %215 : vector<8x128xf32>
    %217 = vector.extract_strided_slice %216 {offsets = [0, 0], sizes = [8, 32], strides = [1, 1]} : vector<8x128xf32> to vector<8x32xf32>
    %c0_58 = arith.constant 0 : index
    %c0_59 = arith.constant 0 : index
    %218 = vector.load %arg6[%c0_58, %c0_59] : memref<32x384xf32, #tpu.memory_space<vmem>>, vector<32x384xf32>
    %cst_60 = arith.constant dense<0.000000e+00> : vector<8x384xf32>
    %219 = tpu.matmul %217, %218, %cst_60 {dimension_numbers = #tpu.dot_dimension_numbers<[1], [0], [0], [1], [0, 0, 1, 1], [], []>} : vector<8x32xf32>, vector<32x384xf32>, vector<8x384xf32> -> vector<8x384xf32>
    %220 = arith.addf %219, %15 : vector<8x384xf32>
    %221 = vector.extract_strided_slice %184 {offsets = [0, 0], sizes = [8, 1], strides = [1, 1]} : vector<8x128xf32> to vector<8x1xf32>
    %222 = vector.broadcast %221 : vector<8x1xf32> to vector<8x384xf32>
    %223 = arith.mulf %222, %18 : vector<8x384xf32>
    %224 = vector.extract_strided_slice %184 {offsets = [0, 1], sizes = [8, 1], strides = [1, 1]} : vector<8x128xf32> to vector<8x1xf32>
    %225 = vector.broadcast %224 : vector<8x1xf32> to vector<8x384xf32>
    %226 = arith.mulf %225, %21 : vector<8x384xf32>
    %227 = arith.addf %223, %226 : vector<8x384xf32>
    %228 = vector.extract_strided_slice %184 {offsets = [0, 2], sizes = [8, 1], strides = [1, 1]} : vector<8x128xf32> to vector<8x1xf32>
    %229 = vector.broadcast %228 : vector<8x1xf32> to vector<8x384xf32>
    %230 = arith.mulf %229, %24 : vector<8x384xf32>
    %231 = arith.addf %227, %230 : vector<8x384xf32>
    %232 = vector.extract_strided_slice %184 {offsets = [0, 3], sizes = [8, 1], strides = [1, 1]} : vector<8x128xf32> to vector<8x1xf32>
    %233 = vector.broadcast %232 : vector<8x1xf32> to vector<8x384xf32>
    %234 = arith.mulf %233, %27 : vector<8x384xf32>
    %235 = arith.addf %231, %234 : vector<8x384xf32>
    %236 = vector.extract_strided_slice %220 {offsets = [0, 0], sizes = [8, 128], strides = [1, 1]} : vector<8x384xf32> to vector<8x128xf32>
    %237 = vector.extract_strided_slice %235 {offsets = [0, 0], sizes = [8, 128], strides = [1, 1]} : vector<8x384xf32> to vector<8x128xf32>
    %238 = arith.addf %236, %237 : vector<8x128xf32>
    %239 = arith.negf %238 : vector<8x128xf32>
    %240 = math.exp %239 : vector<8x128xf32>
    %cst_61 = arith.constant 1.000000e+00 : f32
    %241 = vector.broadcast %cst_61 : f32 to vector<8x128xf32>
    %242 = arith.addf %241, %240 : vector<8x128xf32>
    %243 = arith.divf %241, %242 : vector<8x128xf32>
    %244 = vector.extract_strided_slice %220 {offsets = [0, 128], sizes = [8, 128], strides = [1, 1]} : vector<8x384xf32> to vector<8x128xf32>
    %245 = vector.extract_strided_slice %235 {offsets = [0, 128], sizes = [8, 128], strides = [1, 1]} : vector<8x384xf32> to vector<8x128xf32>
    %246 = arith.addf %244, %245 : vector<8x128xf32>
    %247 = arith.negf %246 : vector<8x128xf32>
    %248 = math.exp %247 : vector<8x128xf32>
    %cst_62 = arith.constant 1.000000e+00 : f32
    %249 = vector.broadcast %cst_62 : f32 to vector<8x128xf32>
    %250 = arith.addf %249, %248 : vector<8x128xf32>
    %251 = arith.divf %249, %250 : vector<8x128xf32>
    %252 = vector.extract_strided_slice %220 {offsets = [0, 256], sizes = [8, 128], strides = [1, 1]} : vector<8x384xf32> to vector<8x128xf32>
    %253 = vector.extract_strided_slice %235 {offsets = [0, 256], sizes = [8, 128], strides = [1, 1]} : vector<8x384xf32> to vector<8x128xf32>
    %254 = arith.addf %253, %12 : vector<8x128xf32>
    %255 = arith.mulf %243, %254 : vector<8x128xf32>
    %256 = arith.addf %252, %255 : vector<8x128xf32>
    %257 = math.tanh %256 : vector<8x128xf32>
    %cst_63 = arith.constant 1.000000e+00 : f32
    %258 = vector.broadcast %cst_63 : f32 to vector<8x128xf32>
    %259 = arith.subf %258, %251 : vector<8x128xf32>
    %260 = arith.mulf %259, %257 : vector<8x128xf32>
    %261 = arith.mulf %251, %184 : vector<8x128xf32>
    %262 = arith.addf %260, %261 : vector<8x128xf32>
    %c16_64 = arith.constant 16 : index
    %c0_65 = arith.constant 0 : index
    %263 = vector.load %arg10[%c16_64, %c0_65] : memref<64x128xf32, #tpu.memory_space<vmem>>, vector<8x128xf32>
    tpu.vector_store %arg10[%c16_64, %c0_65], %262 {strides = array<i32>} : memref<64x128xf32, #tpu.memory_space<vmem>>, vector<8x128xf32>,
    %c24 = arith.constant 24 : index
    %c0_66 = arith.constant 0 : index
    %264 = vector.load %arg11[%c24, %c0_66] : memref<64x384xf32, #tpu.memory_space<vmem>>, vector<8x384xf32>
    %265 = vector.extract_strided_slice %216 {offsets = [0, 0], sizes = [8, 32], strides = [1, 1]} : vector<8x128xf32> to vector<8x32xf32>
    %c0_67 = arith.constant 0 : index
    %c0_68 = arith.constant 0 : index
    %266 = vector.load %arg3[%c0_67, %c0_68] : memref<32x384xf32, #tpu.memory_space<vmem>>, vector<32x384xf32>
    %cst_69 = arith.constant dense<0.000000e+00> : vector<8x384xf32>
    %267 = tpu.matmul %265, %266, %cst_69 {dimension_numbers = #tpu.dot_dimension_numbers<[1], [0], [0], [1], [0, 0, 1, 1], [], []>} : vector<8x32xf32>, vector<32x384xf32>, vector<8x384xf32> -> vector<8x384xf32>
    %268 = vector.extract_strided_slice %264 {offsets = [0, 0], sizes = [8, 128], strides = [1, 1]} : vector<8x384xf32> to vector<8x128xf32>
    %269 = vector.extract_strided_slice %267 {offsets = [0, 0], sizes = [8, 128], strides = [1, 1]} : vector<8x384xf32> to vector<8x128xf32>
    %270 = arith.addf %268, %269 : vector<8x128xf32>
    %271 = arith.negf %270 : vector<8x128xf32>
    %272 = math.exp %271 : vector<8x128xf32>
    %cst_70 = arith.constant 1.000000e+00 : f32
    %273 = vector.broadcast %cst_70 : f32 to vector<8x128xf32>
    %274 = arith.addf %273, %272 : vector<8x128xf32>
    %275 = arith.divf %273, %274 : vector<8x128xf32>
    %276 = vector.extract_strided_slice %264 {offsets = [0, 128], sizes = [8, 128], strides = [1, 1]} : vector<8x384xf32> to vector<8x128xf32>
    %277 = vector.extract_strided_slice %267 {offsets = [0, 128], sizes = [8, 128], strides = [1, 1]} : vector<8x384xf32> to vector<8x128xf32>
    %278 = arith.addf %276, %277 : vector<8x128xf32>
    %279 = arith.negf %278 : vector<8x128xf32>
    %280 = math.exp %279 : vector<8x128xf32>
    %cst_71 = arith.constant 1.000000e+00 : f32
    %281 = vector.broadcast %cst_71 : f32 to vector<8x128xf32>
    %282 = arith.addf %281, %280 : vector<8x128xf32>
    %283 = arith.divf %281, %282 : vector<8x128xf32>
    %284 = vector.extract_strided_slice %264 {offsets = [0, 256], sizes = [8, 128], strides = [1, 1]} : vector<8x384xf32> to vector<8x128xf32>
    %285 = vector.extract_strided_slice %267 {offsets = [0, 256], sizes = [8, 128], strides = [1, 1]} : vector<8x384xf32> to vector<8x128xf32>
    %286 = arith.addf %285, %9 : vector<8x128xf32>
    %287 = arith.mulf %275, %286 : vector<8x128xf32>
    %288 = arith.addf %284, %287 : vector<8x128xf32>
    %289 = math.tanh %288 : vector<8x128xf32>
    %cst_72 = arith.constant 1.000000e+00 : f32
    %290 = vector.broadcast %cst_72 : f32 to vector<8x128xf32>
    %291 = arith.subf %290, %283 : vector<8x128xf32>
    %292 = arith.mulf %291, %289 : vector<8x128xf32>
    %293 = arith.mulf %283, %216 : vector<8x128xf32>
    %294 = arith.addf %292, %293 : vector<8x128xf32>
    %295 = vector.extract_strided_slice %294 {offsets = [0, 0], sizes = [8, 32], strides = [1, 1]} : vector<8x128xf32> to vector<8x32xf32>
    %c0_73 = arith.constant 0 : index
    %c0_74 = arith.constant 0 : index
    %296 = vector.load %arg6[%c0_73, %c0_74] : memref<32x384xf32, #tpu.memory_space<vmem>>, vector<32x384xf32>
    %cst_75 = arith.constant dense<0.000000e+00> : vector<8x384xf32>
    %297 = tpu.matmul %295, %296, %cst_75 {dimension_numbers = #tpu.dot_dimension_numbers<[1], [0], [0], [1], [0, 0, 1, 1], [], []>} : vector<8x32xf32>, vector<32x384xf32>, vector<8x384xf32> -> vector<8x384xf32>
    %298 = arith.addf %297, %15 : vector<8x384xf32>
    %299 = vector.extract_strided_slice %262 {offsets = [0, 0], sizes = [8, 1], strides = [1, 1]} : vector<8x128xf32> to vector<8x1xf32>
    %300 = vector.broadcast %299 : vector<8x1xf32> to vector<8x384xf32>
    %301 = arith.mulf %300, %18 : vector<8x384xf32>
    %302 = vector.extract_strided_slice %262 {offsets = [0, 1], sizes = [8, 1], strides = [1, 1]} : vector<8x128xf32> to vector<8x1xf32>
    %303 = vector.broadcast %302 : vector<8x1xf32> to vector<8x384xf32>
    %304 = arith.mulf %303, %21 : vector<8x384xf32>
    %305 = arith.addf %301, %304 : vector<8x384xf32>
    %306 = vector.extract_strided_slice %262 {offsets = [0, 2], sizes = [8, 1], strides = [1, 1]} : vector<8x128xf32> to vector<8x1xf32>
    %307 = vector.broadcast %306 : vector<8x1xf32> to vector<8x384xf32>
    %308 = arith.mulf %307, %24 : vector<8x384xf32>
    %309 = arith.addf %305, %308 : vector<8x384xf32>
    %310 = vector.extract_strided_slice %262 {offsets = [0, 3], sizes = [8, 1], strides = [1, 1]} : vector<8x128xf32> to vector<8x1xf32>
    %311 = vector.broadcast %310 : vector<8x1xf32> to vector<8x384xf32>
    %312 = arith.mulf %311, %27 : vector<8x384xf32>
    %313 = arith.addf %309, %312 : vector<8x384xf32>
    %314 = vector.extract_strided_slice %298 {offsets = [0, 0], sizes = [8, 128], strides = [1, 1]} : vector<8x384xf32> to vector<8x128xf32>
    %315 = vector.extract_strided_slice %313 {offsets = [0, 0], sizes = [8, 128], strides = [1, 1]} : vector<8x384xf32> to vector<8x128xf32>
    %316 = arith.addf %314, %315 : vector<8x128xf32>
    %317 = arith.negf %316 : vector<8x128xf32>
    %318 = math.exp %317 : vector<8x128xf32>
    %cst_76 = arith.constant 1.000000e+00 : f32
    %319 = vector.broadcast %cst_76 : f32 to vector<8x128xf32>
    %320 = arith.addf %319, %318 : vector<8x128xf32>
    %321 = arith.divf %319, %320 : vector<8x128xf32>
    %322 = vector.extract_strided_slice %298 {offsets = [0, 128], sizes = [8, 128], strides = [1, 1]} : vector<8x384xf32> to vector<8x128xf32>
    %323 = vector.extract_strided_slice %313 {offsets = [0, 128], sizes = [8, 128], strides = [1, 1]} : vector<8x384xf32> to vector<8x128xf32>
    %324 = arith.addf %322, %323 : vector<8x128xf32>
    %325 = arith.negf %324 : vector<8x128xf32>
    %326 = math.exp %325 : vector<8x128xf32>
    %cst_77 = arith.constant 1.000000e+00 : f32
    %327 = vector.broadcast %cst_77 : f32 to vector<8x128xf32>
    %328 = arith.addf %327, %326 : vector<8x128xf32>
    %329 = arith.divf %327, %328 : vector<8x128xf32>
    %330 = vector.extract_strided_slice %298 {offsets = [0, 256], sizes = [8, 128], strides = [1, 1]} : vector<8x384xf32> to vector<8x128xf32>
    %331 = vector.extract_strided_slice %313 {offsets = [0, 256], sizes = [8, 128], strides = [1, 1]} : vector<8x384xf32> to vector<8x128xf32>
    %332 = arith.addf %331, %12 : vector<8x128xf32>
    %333 = arith.mulf %321, %332 : vector<8x128xf32>
    %334 = arith.addf %330, %333 : vector<8x128xf32>
    %335 = math.tanh %334 : vector<8x128xf32>
    %cst_78 = arith.constant 1.000000e+00 : f32
    %336 = vector.broadcast %cst_78 : f32 to vector<8x128xf32>
    %337 = arith.subf %336, %329 : vector<8x128xf32>
    %338 = arith.mulf %337, %335 : vector<8x128xf32>
    %339 = arith.mulf %329, %262 : vector<8x128xf32>
    %340 = arith.addf %338, %339 : vector<8x128xf32>
    %c24_79 = arith.constant 24 : index
    %c0_80 = arith.constant 0 : index
    %341 = vector.load %arg10[%c24_79, %c0_80] : memref<64x128xf32, #tpu.memory_space<vmem>>, vector<8x128xf32>
    tpu.vector_store %arg10[%c24_79, %c0_80], %340 {strides = array<i32>} : memref<64x128xf32, #tpu.memory_space<vmem>>, vector<8x128xf32>,
    %c32 = arith.constant 32 : index
    %c0_81 = arith.constant 0 : index
    %342 = vector.load %arg11[%c32, %c0_81] : memref<64x384xf32, #tpu.memory_space<vmem>>, vector<8x384xf32>
    %343 = vector.extract_strided_slice %294 {offsets = [0, 0], sizes = [8, 32], strides = [1, 1]} : vector<8x128xf32> to vector<8x32xf32>
    %c0_82 = arith.constant 0 : index
    %c0_83 = arith.constant 0 : index
    %344 = vector.load %arg3[%c0_82, %c0_83] : memref<32x384xf32, #tpu.memory_space<vmem>>, vector<32x384xf32>
    %cst_84 = arith.constant dense<0.000000e+00> : vector<8x384xf32>
    %345 = tpu.matmul %343, %344, %cst_84 {dimension_numbers = #tpu.dot_dimension_numbers<[1], [0], [0], [1], [0, 0, 1, 1], [], []>} : vector<8x32xf32>, vector<32x384xf32>, vector<8x384xf32> -> vector<8x384xf32>
    %346 = vector.extract_strided_slice %342 {offsets = [0, 0], sizes = [8, 128], strides = [1, 1]} : vector<8x384xf32> to vector<8x128xf32>
    %347 = vector.extract_strided_slice %345 {offsets = [0, 0], sizes = [8, 128], strides = [1, 1]} : vector<8x384xf32> to vector<8x128xf32>
    %348 = arith.addf %346, %347 : vector<8x128xf32>
    %349 = arith.negf %348 : vector<8x128xf32>
    %350 = math.exp %349 : vector<8x128xf32>
    %cst_85 = arith.constant 1.000000e+00 : f32
    %351 = vector.broadcast %cst_85 : f32 to vector<8x128xf32>
    %352 = arith.addf %351, %350 : vector<8x128xf32>
    %353 = arith.divf %351, %352 : vector<8x128xf32>
    %354 = vector.extract_strided_slice %342 {offsets = [0, 128], sizes = [8, 128], strides = [1, 1]} : vector<8x384xf32> to vector<8x128xf32>
    %355 = vector.extract_strided_slice %345 {offsets = [0, 128], sizes = [8, 128], strides = [1, 1]} : vector<8x384xf32> to vector<8x128xf32>
    %356 = arith.addf %354, %355 : vector<8x128xf32>
    %357 = arith.negf %356 : vector<8x128xf32>
    %358 = math.exp %357 : vector<8x128xf32>
    %cst_86 = arith.constant 1.000000e+00 : f32
    %359 = vector.broadcast %cst_86 : f32 to vector<8x128xf32>
    %360 = arith.addf %359, %358 : vector<8x128xf32>
    %361 = arith.divf %359, %360 : vector<8x128xf32>
    %362 = vector.extract_strided_slice %342 {offsets = [0, 256], sizes = [8, 128], strides = [1, 1]} : vector<8x384xf32> to vector<8x128xf32>
    %363 = vector.extract_strided_slice %345 {offsets = [0, 256], sizes = [8, 128], strides = [1, 1]} : vector<8x384xf32> to vector<8x128xf32>
    %364 = arith.addf %363, %9 : vector<8x128xf32>
    %365 = arith.mulf %353, %364 : vector<8x128xf32>
    %366 = arith.addf %362, %365 : vector<8x128xf32>
    %367 = math.tanh %366 : vector<8x128xf32>
    %cst_87 = arith.constant 1.000000e+00 : f32
    %368 = vector.broadcast %cst_87 : f32 to vector<8x128xf32>
    %369 = arith.subf %368, %361 : vector<8x128xf32>
    %370 = arith.mulf %369, %367 : vector<8x128xf32>
    %371 = arith.mulf %361, %294 : vector<8x128xf32>
    %372 = arith.addf %370, %371 : vector<8x128xf32>
    %373 = vector.extract_strided_slice %372 {offsets = [0, 0], sizes = [8, 32], strides = [1, 1]} : vector<8x128xf32> to vector<8x32xf32>
    %c0_88 = arith.constant 0 : index
    %c0_89 = arith.constant 0 : index
    %374 = vector.load %arg6[%c0_88, %c0_89] : memref<32x384xf32, #tpu.memory_space<vmem>>, vector<32x384xf32>
    %cst_90 = arith.constant dense<0.000000e+00> : vector<8x384xf32>
    %375 = tpu.matmul %373, %374, %cst_90 {dimension_numbers = #tpu.dot_dimension_numbers<[1], [0], [0], [1], [0, 0, 1, 1], [], []>} : vector<8x32xf32>, vector<32x384xf32>, vector<8x384xf32> -> vector<8x384xf32>
    %376 = arith.addf %375, %15 : vector<8x384xf32>
    %377 = vector.extract_strided_slice %340 {offsets = [0, 0], sizes = [8, 1], strides = [1, 1]} : vector<8x128xf32> to vector<8x1xf32>
    %378 = vector.broadcast %377 : vector<8x1xf32> to vector<8x384xf32>
    %379 = arith.mulf %378, %18 : vector<8x384xf32>
    %380 = vector.extract_strided_slice %340 {offsets = [0, 1], sizes = [8, 1], strides = [1, 1]} : vector<8x128xf32> to vector<8x1xf32>
    %381 = vector.broadcast %380 : vector<8x1xf32> to vector<8x384xf32>
    %382 = arith.mulf %381, %21 : vector<8x384xf32>
    %383 = arith.addf %379, %382 : vector<8x384xf32>
    %384 = vector.extract_strided_slice %340 {offsets = [0, 2], sizes = [8, 1], strides = [1, 1]} : vector<8x128xf32> to vector<8x1xf32>
    %385 = vector.broadcast %384 : vector<8x1xf32> to vector<8x384xf32>
    %386 = arith.mulf %385, %24 : vector<8x384xf32>
    %387 = arith.addf %383, %386 : vector<8x384xf32>
    %388 = vector.extract_strided_slice %340 {offsets = [0, 3], sizes = [8, 1], strides = [1, 1]} : vector<8x128xf32> to vector<8x1xf32>
    %389 = vector.broadcast %388 : vector<8x1xf32> to vector<8x384xf32>
    %390 = arith.mulf %389, %27 : vector<8x384xf32>
    %391 = arith.addf %387, %390 : vector<8x384xf32>
    %392 = vector.extract_strided_slice %376 {offsets = [0, 0], sizes = [8, 128], strides = [1, 1]} : vector<8x384xf32> to vector<8x128xf32>
    %393 = vector.extract_strided_slice %391 {offsets = [0, 0], sizes = [8, 128], strides = [1, 1]} : vector<8x384xf32> to vector<8x128xf32>
    %394 = arith.addf %392, %393 : vector<8x128xf32>
    %395 = arith.negf %394 : vector<8x128xf32>
    %396 = math.exp %395 : vector<8x128xf32>
    %cst_91 = arith.constant 1.000000e+00 : f32
    %397 = vector.broadcast %cst_91 : f32 to vector<8x128xf32>
    %398 = arith.addf %397, %396 : vector<8x128xf32>
    %399 = arith.divf %397, %398 : vector<8x128xf32>
    %400 = vector.extract_strided_slice %376 {offsets = [0, 128], sizes = [8, 128], strides = [1, 1]} : vector<8x384xf32> to vector<8x128xf32>
    %401 = vector.extract_strided_slice %391 {offsets = [0, 128], sizes = [8, 128], strides = [1, 1]} : vector<8x384xf32> to vector<8x128xf32>
    %402 = arith.addf %400, %401 : vector<8x128xf32>
    %403 = arith.negf %402 : vector<8x128xf32>
    %404 = math.exp %403 : vector<8x128xf32>
    %cst_92 = arith.constant 1.000000e+00 : f32
    %405 = vector.broadcast %cst_92 : f32 to vector<8x128xf32>
    %406 = arith.addf %405, %404 : vector<8x128xf32>
    %407 = arith.divf %405, %406 : vector<8x128xf32>
    %408 = vector.extract_strided_slice %376 {offsets = [0, 256], sizes = [8, 128], strides = [1, 1]} : vector<8x384xf32> to vector<8x128xf32>
    %409 = vector.extract_strided_slice %391 {offsets = [0, 256], sizes = [8, 128], strides = [1, 1]} : vector<8x384xf32> to vector<8x128xf32>
    %410 = arith.addf %409, %12 : vector<8x128xf32>
    %411 = arith.mulf %399, %410 : vector<8x128xf32>
    %412 = arith.addf %408, %411 : vector<8x128xf32>
    %413 = math.tanh %412 : vector<8x128xf32>
    %cst_93 = arith.constant 1.000000e+00 : f32
    %414 = vector.broadcast %cst_93 : f32 to vector<8x128xf32>
    %415 = arith.subf %414, %407 : vector<8x128xf32>
    %416 = arith.mulf %415, %413 : vector<8x128xf32>
    %417 = arith.mulf %407, %340 : vector<8x128xf32>
    %418 = arith.addf %416, %417 : vector<8x128xf32>
    %c32_94 = arith.constant 32 : index
    %c0_95 = arith.constant 0 : index
    %419 = vector.load %arg10[%c32_94, %c0_95] : memref<64x128xf32, #tpu.memory_space<vmem>>, vector<8x128xf32>
    tpu.vector_store %arg10[%c32_94, %c0_95], %418 {strides = array<i32>} : memref<64x128xf32, #tpu.memory_space<vmem>>, vector<8x128xf32>,
    %c40 = arith.constant 40 : index
    %c0_96 = arith.constant 0 : index
    %420 = vector.load %arg11[%c40, %c0_96] : memref<64x384xf32, #tpu.memory_space<vmem>>, vector<8x384xf32>
    %421 = vector.extract_strided_slice %372 {offsets = [0, 0], sizes = [8, 32], strides = [1, 1]} : vector<8x128xf32> to vector<8x32xf32>
    %c0_97 = arith.constant 0 : index
    %c0_98 = arith.constant 0 : index
    %422 = vector.load %arg3[%c0_97, %c0_98] : memref<32x384xf32, #tpu.memory_space<vmem>>, vector<32x384xf32>
    %cst_99 = arith.constant dense<0.000000e+00> : vector<8x384xf32>
    %423 = tpu.matmul %421, %422, %cst_99 {dimension_numbers = #tpu.dot_dimension_numbers<[1], [0], [0], [1], [0, 0, 1, 1], [], []>} : vector<8x32xf32>, vector<32x384xf32>, vector<8x384xf32> -> vector<8x384xf32>
    %424 = vector.extract_strided_slice %420 {offsets = [0, 0], sizes = [8, 128], strides = [1, 1]} : vector<8x384xf32> to vector<8x128xf32>
    %425 = vector.extract_strided_slice %423 {offsets = [0, 0], sizes = [8, 128], strides = [1, 1]} : vector<8x384xf32> to vector<8x128xf32>
    %426 = arith.addf %424, %425 : vector<8x128xf32>
    %427 = arith.negf %426 : vector<8x128xf32>
    %428 = math.exp %427 : vector<8x128xf32>
    %cst_100 = arith.constant 1.000000e+00 : f32
    %429 = vector.broadcast %cst_100 : f32 to vector<8x128xf32>
    %430 = arith.addf %429, %428 : vector<8x128xf32>
    %431 = arith.divf %429, %430 : vector<8x128xf32>
    %432 = vector.extract_strided_slice %420 {offsets = [0, 128], sizes = [8, 128], strides = [1, 1]} : vector<8x384xf32> to vector<8x128xf32>
    %433 = vector.extract_strided_slice %423 {offsets = [0, 128], sizes = [8, 128], strides = [1, 1]} : vector<8x384xf32> to vector<8x128xf32>
    %434 = arith.addf %432, %433 : vector<8x128xf32>
    %435 = arith.negf %434 : vector<8x128xf32>
    %436 = math.exp %435 : vector<8x128xf32>
    %cst_101 = arith.constant 1.000000e+00 : f32
    %437 = vector.broadcast %cst_101 : f32 to vector<8x128xf32>
    %438 = arith.addf %437, %436 : vector<8x128xf32>
    %439 = arith.divf %437, %438 : vector<8x128xf32>
    %440 = vector.extract_strided_slice %420 {offsets = [0, 256], sizes = [8, 128], strides = [1, 1]} : vector<8x384xf32> to vector<8x128xf32>
    %441 = vector.extract_strided_slice %423 {offsets = [0, 256], sizes = [8, 128], strides = [1, 1]} : vector<8x384xf32> to vector<8x128xf32>
    %442 = arith.addf %441, %9 : vector<8x128xf32>
    %443 = arith.mulf %431, %442 : vector<8x128xf32>
    %444 = arith.addf %440, %443 : vector<8x128xf32>
    %445 = math.tanh %444 : vector<8x128xf32>
    %cst_102 = arith.constant 1.000000e+00 : f32
    %446 = vector.broadcast %cst_102 : f32 to vector<8x128xf32>
    %447 = arith.subf %446, %439 : vector<8x128xf32>
    %448 = arith.mulf %447, %445 : vector<8x128xf32>
    %449 = arith.mulf %439, %372 : vector<8x128xf32>
    %450 = arith.addf %448, %449 : vector<8x128xf32>
    %451 = vector.extract_strided_slice %450 {offsets = [0, 0], sizes = [8, 32], strides = [1, 1]} : vector<8x128xf32> to vector<8x32xf32>
    %c0_103 = arith.constant 0 : index
    %c0_104 = arith.constant 0 : index
    %452 = vector.load %arg6[%c0_103, %c0_104] : memref<32x384xf32, #tpu.memory_space<vmem>>, vector<32x384xf32>
    %cst_105 = arith.constant dense<0.000000e+00> : vector<8x384xf32>
    %453 = tpu.matmul %451, %452, %cst_105 {dimension_numbers = #tpu.dot_dimension_numbers<[1], [0], [0], [1], [0, 0, 1, 1], [], []>} : vector<8x32xf32>, vector<32x384xf32>, vector<8x384xf32> -> vector<8x384xf32>
    %454 = arith.addf %453, %15 : vector<8x384xf32>
    %455 = vector.extract_strided_slice %418 {offsets = [0, 0], sizes = [8, 1], strides = [1, 1]} : vector<8x128xf32> to vector<8x1xf32>
    %456 = vector.broadcast %455 : vector<8x1xf32> to vector<8x384xf32>
    %457 = arith.mulf %456, %18 : vector<8x384xf32>
    %458 = vector.extract_strided_slice %418 {offsets = [0, 1], sizes = [8, 1], strides = [1, 1]} : vector<8x128xf32> to vector<8x1xf32>
    %459 = vector.broadcast %458 : vector<8x1xf32> to vector<8x384xf32>
    %460 = arith.mulf %459, %21 : vector<8x384xf32>
    %461 = arith.addf %457, %460 : vector<8x384xf32>
    %462 = vector.extract_strided_slice %418 {offsets = [0, 2], sizes = [8, 1], strides = [1, 1]} : vector<8x128xf32> to vector<8x1xf32>
    %463 = vector.broadcast %462 : vector<8x1xf32> to vector<8x384xf32>
    %464 = arith.mulf %463, %24 : vector<8x384xf32>
    %465 = arith.addf %461, %464 : vector<8x384xf32>
    %466 = vector.extract_strided_slice %418 {offsets = [0, 3], sizes = [8, 1], strides = [1, 1]} : vector<8x128xf32> to vector<8x1xf32>
    %467 = vector.broadcast %466 : vector<8x1xf32> to vector<8x384xf32>
    %468 = arith.mulf %467, %27 : vector<8x384xf32>
    %469 = arith.addf %465, %468 : vector<8x384xf32>
    %470 = vector.extract_strided_slice %454 {offsets = [0, 0], sizes = [8, 128], strides = [1, 1]} : vector<8x384xf32> to vector<8x128xf32>
    %471 = vector.extract_strided_slice %469 {offsets = [0, 0], sizes = [8, 128], strides = [1, 1]} : vector<8x384xf32> to vector<8x128xf32>
    %472 = arith.addf %470, %471 : vector<8x128xf32>
    %473 = arith.negf %472 : vector<8x128xf32>
    %474 = math.exp %473 : vector<8x128xf32>
    %cst_106 = arith.constant 1.000000e+00 : f32
    %475 = vector.broadcast %cst_106 : f32 to vector<8x128xf32>
    %476 = arith.addf %475, %474 : vector<8x128xf32>
    %477 = arith.divf %475, %476 : vector<8x128xf32>
    %478 = vector.extract_strided_slice %454 {offsets = [0, 128], sizes = [8, 128], strides = [1, 1]} : vector<8x384xf32> to vector<8x128xf32>
    %479 = vector.extract_strided_slice %469 {offsets = [0, 128], sizes = [8, 128], strides = [1, 1]} : vector<8x384xf32> to vector<8x128xf32>
    %480 = arith.addf %478, %479 : vector<8x128xf32>
    %481 = arith.negf %480 : vector<8x128xf32>
    %482 = math.exp %481 : vector<8x128xf32>
    %cst_107 = arith.constant 1.000000e+00 : f32
    %483 = vector.broadcast %cst_107 : f32 to vector<8x128xf32>
    %484 = arith.addf %483, %482 : vector<8x128xf32>
    %485 = arith.divf %483, %484 : vector<8x128xf32>
    %486 = vector.extract_strided_slice %454 {offsets = [0, 256], sizes = [8, 128], strides = [1, 1]} : vector<8x384xf32> to vector<8x128xf32>
    %487 = vector.extract_strided_slice %469 {offsets = [0, 256], sizes = [8, 128], strides = [1, 1]} : vector<8x384xf32> to vector<8x128xf32>
    %488 = arith.addf %487, %12 : vector<8x128xf32>
    %489 = arith.mulf %477, %488 : vector<8x128xf32>
    %490 = arith.addf %486, %489 : vector<8x128xf32>
    %491 = math.tanh %490 : vector<8x128xf32>
    %cst_108 = arith.constant 1.000000e+00 : f32
    %492 = vector.broadcast %cst_108 : f32 to vector<8x128xf32>
    %493 = arith.subf %492, %485 : vector<8x128xf32>
    %494 = arith.mulf %493, %491 : vector<8x128xf32>
    %495 = arith.mulf %485, %418 : vector<8x128xf32>
    %496 = arith.addf %494, %495 : vector<8x128xf32>
    %c40_109 = arith.constant 40 : index
    %c0_110 = arith.constant 0 : index
    %497 = vector.load %arg10[%c40_109, %c0_110] : memref<64x128xf32, #tpu.memory_space<vmem>>, vector<8x128xf32>
    tpu.vector_store %arg10[%c40_109, %c0_110], %496 {strides = array<i32>} : memref<64x128xf32, #tpu.memory_space<vmem>>, vector<8x128xf32>,
    %c48 = arith.constant 48 : index
    %c0_111 = arith.constant 0 : index
    %498 = vector.load %arg11[%c48, %c0_111] : memref<64x384xf32, #tpu.memory_space<vmem>>, vector<8x384xf32>
    %499 = vector.extract_strided_slice %450 {offsets = [0, 0], sizes = [8, 32], strides = [1, 1]} : vector<8x128xf32> to vector<8x32xf32>
    %c0_112 = arith.constant 0 : index
    %c0_113 = arith.constant 0 : index
    %500 = vector.load %arg3[%c0_112, %c0_113] : memref<32x384xf32, #tpu.memory_space<vmem>>, vector<32x384xf32>
    %cst_114 = arith.constant dense<0.000000e+00> : vector<8x384xf32>
    %501 = tpu.matmul %499, %500, %cst_114 {dimension_numbers = #tpu.dot_dimension_numbers<[1], [0], [0], [1], [0, 0, 1, 1], [], []>} : vector<8x32xf32>, vector<32x384xf32>, vector<8x384xf32> -> vector<8x384xf32>
    %502 = vector.extract_strided_slice %498 {offsets = [0, 0], sizes = [8, 128], strides = [1, 1]} : vector<8x384xf32> to vector<8x128xf32>
    %503 = vector.extract_strided_slice %501 {offsets = [0, 0], sizes = [8, 128], strides = [1, 1]} : vector<8x384xf32> to vector<8x128xf32>
    %504 = arith.addf %502, %503 : vector<8x128xf32>
    %505 = arith.negf %504 : vector<8x128xf32>
    %506 = math.exp %505 : vector<8x128xf32>
    %cst_115 = arith.constant 1.000000e+00 : f32
    %507 = vector.broadcast %cst_115 : f32 to vector<8x128xf32>
    %508 = arith.addf %507, %506 : vector<8x128xf32>
    %509 = arith.divf %507, %508 : vector<8x128xf32>
    %510 = vector.extract_strided_slice %498 {offsets = [0, 128], sizes = [8, 128], strides = [1, 1]} : vector<8x384xf32> to vector<8x128xf32>
    %511 = vector.extract_strided_slice %501 {offsets = [0, 128], sizes = [8, 128], strides = [1, 1]} : vector<8x384xf32> to vector<8x128xf32>
    %512 = arith.addf %510, %511 : vector<8x128xf32>
    %513 = arith.negf %512 : vector<8x128xf32>
    %514 = math.exp %513 : vector<8x128xf32>
    %cst_116 = arith.constant 1.000000e+00 : f32
    %515 = vector.broadcast %cst_116 : f32 to vector<8x128xf32>
    %516 = arith.addf %515, %514 : vector<8x128xf32>
    %517 = arith.divf %515, %516 : vector<8x128xf32>
    %518 = vector.extract_strided_slice %498 {offsets = [0, 256], sizes = [8, 128], strides = [1, 1]} : vector<8x384xf32> to vector<8x128xf32>
    %519 = vector.extract_strided_slice %501 {offsets = [0, 256], sizes = [8, 128], strides = [1, 1]} : vector<8x384xf32> to vector<8x128xf32>
    %520 = arith.addf %519, %9 : vector<8x128xf32>
    %521 = arith.mulf %509, %520 : vector<8x128xf32>
    %522 = arith.addf %518, %521 : vector<8x128xf32>
    %523 = math.tanh %522 : vector<8x128xf32>
    %cst_117 = arith.constant 1.000000e+00 : f32
    %524 = vector.broadcast %cst_117 : f32 to vector<8x128xf32>
    %525 = arith.subf %524, %517 : vector<8x128xf32>
    %526 = arith.mulf %525, %523 : vector<8x128xf32>
    %527 = arith.mulf %517, %450 : vector<8x128xf32>
    %528 = arith.addf %526, %527 : vector<8x128xf32>
    %529 = vector.extract_strided_slice %528 {offsets = [0, 0], sizes = [8, 32], strides = [1, 1]} : vector<8x128xf32> to vector<8x32xf32>
    %c0_118 = arith.constant 0 : index
    %c0_119 = arith.constant 0 : index
    %530 = vector.load %arg6[%c0_118, %c0_119] : memref<32x384xf32, #tpu.memory_space<vmem>>, vector<32x384xf32>
    %cst_120 = arith.constant dense<0.000000e+00> : vector<8x384xf32>
    %531 = tpu.matmul %529, %530, %cst_120 {dimension_numbers = #tpu.dot_dimension_numbers<[1], [0], [0], [1], [0, 0, 1, 1], [], []>} : vector<8x32xf32>, vector<32x384xf32>, vector<8x384xf32> -> vector<8x384xf32>
    %532 = arith.addf %531, %15 : vector<8x384xf32>
    %533 = vector.extract_strided_slice %496 {offsets = [0, 0], sizes = [8, 1], strides = [1, 1]} : vector<8x128xf32> to vector<8x1xf32>
    %534 = vector.broadcast %533 : vector<8x1xf32> to vector<8x384xf32>
    %535 = arith.mulf %534, %18 : vector<8x384xf32>
    %536 = vector.extract_strided_slice %496 {offsets = [0, 1], sizes = [8, 1], strides = [1, 1]} : vector<8x128xf32> to vector<8x1xf32>
    %537 = vector.broadcast %536 : vector<8x1xf32> to vector<8x384xf32>
    %538 = arith.mulf %537, %21 : vector<8x384xf32>
    %539 = arith.addf %535, %538 : vector<8x384xf32>
    %540 = vector.extract_strided_slice %496 {offsets = [0, 2], sizes = [8, 1], strides = [1, 1]} : vector<8x128xf32> to vector<8x1xf32>
    %541 = vector.broadcast %540 : vector<8x1xf32> to vector<8x384xf32>
    %542 = arith.mulf %541, %24 : vector<8x384xf32>
    %543 = arith.addf %539, %542 : vector<8x384xf32>
    %544 = vector.extract_strided_slice %496 {offsets = [0, 3], sizes = [8, 1], strides = [1, 1]} : vector<8x128xf32> to vector<8x1xf32>
    %545 = vector.broadcast %544 : vector<8x1xf32> to vector<8x384xf32>
    %546 = arith.mulf %545, %27 : vector<8x384xf32>
    %547 = arith.addf %543, %546 : vector<8x384xf32>
    %548 = vector.extract_strided_slice %532 {offsets = [0, 0], sizes = [8, 128], strides = [1, 1]} : vector<8x384xf32> to vector<8x128xf32>
    %549 = vector.extract_strided_slice %547 {offsets = [0, 0], sizes = [8, 128], strides = [1, 1]} : vector<8x384xf32> to vector<8x128xf32>
    %550 = arith.addf %548, %549 : vector<8x128xf32>
    %551 = arith.negf %550 : vector<8x128xf32>
    %552 = math.exp %551 : vector<8x128xf32>
    %cst_121 = arith.constant 1.000000e+00 : f32
    %553 = vector.broadcast %cst_121 : f32 to vector<8x128xf32>
    %554 = arith.addf %553, %552 : vector<8x128xf32>
    %555 = arith.divf %553, %554 : vector<8x128xf32>
    %556 = vector.extract_strided_slice %532 {offsets = [0, 128], sizes = [8, 128], strides = [1, 1]} : vector<8x384xf32> to vector<8x128xf32>
    %557 = vector.extract_strided_slice %547 {offsets = [0, 128], sizes = [8, 128], strides = [1, 1]} : vector<8x384xf32> to vector<8x128xf32>
    %558 = arith.addf %556, %557 : vector<8x128xf32>
    %559 = arith.negf %558 : vector<8x128xf32>
    %560 = math.exp %559 : vector<8x128xf32>
    %cst_122 = arith.constant 1.000000e+00 : f32
    %561 = vector.broadcast %cst_122 : f32 to vector<8x128xf32>
    %562 = arith.addf %561, %560 : vector<8x128xf32>
    %563 = arith.divf %561, %562 : vector<8x128xf32>
    %564 = vector.extract_strided_slice %532 {offsets = [0, 256], sizes = [8, 128], strides = [1, 1]} : vector<8x384xf32> to vector<8x128xf32>
    %565 = vector.extract_strided_slice %547 {offsets = [0, 256], sizes = [8, 128], strides = [1, 1]} : vector<8x384xf32> to vector<8x128xf32>
    %566 = arith.addf %565, %12 : vector<8x128xf32>
    %567 = arith.mulf %555, %566 : vector<8x128xf32>
    %568 = arith.addf %564, %567 : vector<8x128xf32>
    %569 = math.tanh %568 : vector<8x128xf32>
    %cst_123 = arith.constant 1.000000e+00 : f32
    %570 = vector.broadcast %cst_123 : f32 to vector<8x128xf32>
    %571 = arith.subf %570, %563 : vector<8x128xf32>
    %572 = arith.mulf %571, %569 : vector<8x128xf32>
    %573 = arith.mulf %563, %496 : vector<8x128xf32>
    %574 = arith.addf %572, %573 : vector<8x128xf32>
    %c48_124 = arith.constant 48 : index
    %c0_125 = arith.constant 0 : index
    %575 = vector.load %arg10[%c48_124, %c0_125] : memref<64x128xf32, #tpu.memory_space<vmem>>, vector<8x128xf32>
    tpu.vector_store %arg10[%c48_124, %c0_125], %574 {strides = array<i32>} : memref<64x128xf32, #tpu.memory_space<vmem>>, vector<8x128xf32>,
    %c56 = arith.constant 56 : index
    %c0_126 = arith.constant 0 : index
    %576 = vector.load %arg11[%c56, %c0_126] : memref<64x384xf32, #tpu.memory_space<vmem>>, vector<8x384xf32>
    %577 = vector.extract_strided_slice %528 {offsets = [0, 0], sizes = [8, 32], strides = [1, 1]} : vector<8x128xf32> to vector<8x32xf32>
    %c0_127 = arith.constant 0 : index
    %c0_128 = arith.constant 0 : index
    %578 = vector.load %arg3[%c0_127, %c0_128] : memref<32x384xf32, #tpu.memory_space<vmem>>, vector<32x384xf32>
    %cst_129 = arith.constant dense<0.000000e+00> : vector<8x384xf32>
    %579 = tpu.matmul %577, %578, %cst_129 {dimension_numbers = #tpu.dot_dimension_numbers<[1], [0], [0], [1], [0, 0, 1, 1], [], []>} : vector<8x32xf32>, vector<32x384xf32>, vector<8x384xf32> -> vector<8x384xf32>
    %580 = vector.extract_strided_slice %576 {offsets = [0, 0], sizes = [8, 128], strides = [1, 1]} : vector<8x384xf32> to vector<8x128xf32>
    %581 = vector.extract_strided_slice %579 {offsets = [0, 0], sizes = [8, 128], strides = [1, 1]} : vector<8x384xf32> to vector<8x128xf32>
    %582 = arith.addf %580, %581 : vector<8x128xf32>
    %583 = arith.negf %582 : vector<8x128xf32>
    %584 = math.exp %583 : vector<8x128xf32>
    %cst_130 = arith.constant 1.000000e+00 : f32
    %585 = vector.broadcast %cst_130 : f32 to vector<8x128xf32>
    %586 = arith.addf %585, %584 : vector<8x128xf32>
    %587 = arith.divf %585, %586 : vector<8x128xf32>
    %588 = vector.extract_strided_slice %576 {offsets = [0, 128], sizes = [8, 128], strides = [1, 1]} : vector<8x384xf32> to vector<8x128xf32>
    %589 = vector.extract_strided_slice %579 {offsets = [0, 128], sizes = [8, 128], strides = [1, 1]} : vector<8x384xf32> to vector<8x128xf32>
    %590 = arith.addf %588, %589 : vector<8x128xf32>
    %591 = arith.negf %590 : vector<8x128xf32>
    %592 = math.exp %591 : vector<8x128xf32>
    %cst_131 = arith.constant 1.000000e+00 : f32
    %593 = vector.broadcast %cst_131 : f32 to vector<8x128xf32>
    %594 = arith.addf %593, %592 : vector<8x128xf32>
    %595 = arith.divf %593, %594 : vector<8x128xf32>
    %596 = vector.extract_strided_slice %576 {offsets = [0, 256], sizes = [8, 128], strides = [1, 1]} : vector<8x384xf32> to vector<8x128xf32>
    %597 = vector.extract_strided_slice %579 {offsets = [0, 256], sizes = [8, 128], strides = [1, 1]} : vector<8x384xf32> to vector<8x128xf32>
    %598 = arith.addf %597, %9 : vector<8x128xf32>
    %599 = arith.mulf %587, %598 : vector<8x128xf32>
    %600 = arith.addf %596, %599 : vector<8x128xf32>
    %601 = math.tanh %600 : vector<8x128xf32>
    %cst_132 = arith.constant 1.000000e+00 : f32
    %602 = vector.broadcast %cst_132 : f32 to vector<8x128xf32>
    %603 = arith.subf %602, %595 : vector<8x128xf32>
    %604 = arith.mulf %603, %601 : vector<8x128xf32>
    %605 = arith.mulf %595, %528 : vector<8x128xf32>
    %606 = arith.addf %604, %605 : vector<8x128xf32>
    %607 = vector.extract_strided_slice %606 {offsets = [0, 0], sizes = [8, 32], strides = [1, 1]} : vector<8x128xf32> to vector<8x32xf32>
    %c0_133 = arith.constant 0 : index
    %c0_134 = arith.constant 0 : index
    %608 = vector.load %arg6[%c0_133, %c0_134] : memref<32x384xf32, #tpu.memory_space<vmem>>, vector<32x384xf32>
    %cst_135 = arith.constant dense<0.000000e+00> : vector<8x384xf32>
    %609 = tpu.matmul %607, %608, %cst_135 {dimension_numbers = #tpu.dot_dimension_numbers<[1], [0], [0], [1], [0, 0, 1, 1], [], []>} : vector<8x32xf32>, vector<32x384xf32>, vector<8x384xf32> -> vector<8x384xf32>
    %610 = arith.addf %609, %15 : vector<8x384xf32>
    %611 = vector.extract_strided_slice %574 {offsets = [0, 0], sizes = [8, 1], strides = [1, 1]} : vector<8x128xf32> to vector<8x1xf32>
    %612 = vector.broadcast %611 : vector<8x1xf32> to vector<8x384xf32>
    %613 = arith.mulf %612, %18 : vector<8x384xf32>
    %614 = vector.extract_strided_slice %574 {offsets = [0, 1], sizes = [8, 1], strides = [1, 1]} : vector<8x128xf32> to vector<8x1xf32>
    %615 = vector.broadcast %614 : vector<8x1xf32> to vector<8x384xf32>
    %616 = arith.mulf %615, %21 : vector<8x384xf32>
    %617 = arith.addf %613, %616 : vector<8x384xf32>
    %618 = vector.extract_strided_slice %574 {offsets = [0, 2], sizes = [8, 1], strides = [1, 1]} : vector<8x128xf32> to vector<8x1xf32>
    %619 = vector.broadcast %618 : vector<8x1xf32> to vector<8x384xf32>
    %620 = arith.mulf %619, %24 : vector<8x384xf32>
    %621 = arith.addf %617, %620 : vector<8x384xf32>
    %622 = vector.extract_strided_slice %574 {offsets = [0, 3], sizes = [8, 1], strides = [1, 1]} : vector<8x128xf32> to vector<8x1xf32>
    %623 = vector.broadcast %622 : vector<8x1xf32> to vector<8x384xf32>
    %624 = arith.mulf %623, %27 : vector<8x384xf32>
    %625 = arith.addf %621, %624 : vector<8x384xf32>
    %626 = vector.extract_strided_slice %610 {offsets = [0, 0], sizes = [8, 128], strides = [1, 1]} : vector<8x384xf32> to vector<8x128xf32>
    %627 = vector.extract_strided_slice %625 {offsets = [0, 0], sizes = [8, 128], strides = [1, 1]} : vector<8x384xf32> to vector<8x128xf32>
    %628 = arith.addf %626, %627 : vector<8x128xf32>
    %629 = arith.negf %628 : vector<8x128xf32>
    %630 = math.exp %629 : vector<8x128xf32>
    %cst_136 = arith.constant 1.000000e+00 : f32
    %631 = vector.broadcast %cst_136 : f32 to vector<8x128xf32>
    %632 = arith.addf %631, %630 : vector<8x128xf32>
    %633 = arith.divf %631, %632 : vector<8x128xf32>
    %634 = vector.extract_strided_slice %610 {offsets = [0, 128], sizes = [8, 128], strides = [1, 1]} : vector<8x384xf32> to vector<8x128xf32>
    %635 = vector.extract_strided_slice %625 {offsets = [0, 128], sizes = [8, 128], strides = [1, 1]} : vector<8x384xf32> to vector<8x128xf32>
    %636 = arith.addf %634, %635 : vector<8x128xf32>
    %637 = arith.negf %636 : vector<8x128xf32>
    %638 = math.exp %637 : vector<8x128xf32>
    %cst_137 = arith.constant 1.000000e+00 : f32
    %639 = vector.broadcast %cst_137 : f32 to vector<8x128xf32>
    %640 = arith.addf %639, %638 : vector<8x128xf32>
    %641 = arith.divf %639, %640 : vector<8x128xf32>
    %642 = vector.extract_strided_slice %610 {offsets = [0, 256], sizes = [8, 128], strides = [1, 1]} : vector<8x384xf32> to vector<8x128xf32>
    %643 = vector.extract_strided_slice %625 {offsets = [0, 256], sizes = [8, 128], strides = [1, 1]} : vector<8x384xf32> to vector<8x128xf32>
    %644 = arith.addf %643, %12 : vector<8x128xf32>
    %645 = arith.mulf %633, %644 : vector<8x128xf32>
    %646 = arith.addf %642, %645 : vector<8x128xf32>
    %647 = math.tanh %646 : vector<8x128xf32>
    %cst_138 = arith.constant 1.000000e+00 : f32
    %648 = vector.broadcast %cst_138 : f32 to vector<8x128xf32>
    %649 = arith.subf %648, %641 : vector<8x128xf32>
    %650 = arith.mulf %649, %647 : vector<8x128xf32>
    %651 = arith.mulf %641, %574 : vector<8x128xf32>
    %652 = arith.addf %650, %651 : vector<8x128xf32>
    %c56_139 = arith.constant 56 : index
    %c0_140 = arith.constant 0 : index
    %653 = vector.load %arg10[%c56_139, %c0_140] : memref<64x128xf32, #tpu.memory_space<vmem>>, vector<8x128xf32>
    tpu.vector_store %arg10[%c56_139, %c0_140], %652 {strides = array<i32>} : memref<64x128xf32, #tpu.memory_space<vmem>>, vector<8x128xf32>,
    return
  }
  func.func @transform_0(%arg0: i32) -> (i32, i32) {
    %c0_i32 = arith.constant 0 : i32
    %c0_i32_0 = arith.constant 0 : i32
    %c0_i32_1 = arith.constant 0 : i32
    return %c0_i32, %c0_i32_0 : i32, i32
  }
  func.func @transform_1(%arg0: i32) -> (i32, i32) {
    %c0_i32 = arith.constant 0 : i32
    %c0_i32_0 = arith.constant 0 : i32
    %c0_i32_1 = arith.constant 0 : i32
    return %c0_i32, %c0_i32_0 : i32, i32
  }
  func.func @transform_2(%arg0: i32) -> (i32, i32) {
    %c0_i32 = arith.constant 0 : i32
    %c0_i32_0 = arith.constant 0 : i32
    %c0_i32_1 = arith.constant 0 : i32
    return %c0_i32, %c0_i32_0 : i32, i32
  }
  func.func @transform_3(%arg0: i32) -> (i32, i32) {
    %c0_i32 = arith.constant 0 : i32
    %c0_i32_0 = arith.constant 0 : i32
    %c0_i32_1 = arith.constant 0 : i32
    return %c0_i32, %c0_i32_0 : i32, i32
  }
  func.func @transform_4(%arg0: i32) -> (i32, i32) {
    %c0_i32 = arith.constant 0 : i32
    %c0_i32_0 = arith.constant 0 : i32
    %c0_i32_1 = arith.constant 0 : i32
    return %c0_i32, %c0_i32_0 : i32, i32
  }
  func.func @transform_5(%arg0: i32) -> (i32, i32) {
    %c0_i32 = arith.constant 0 : i32
    %c0_i32_0 = arith.constant 0 : i32
    %c0_i32_1 = arith.constant 0 : i32
    return %c0_i32, %c0_i32_0 : i32, i32
  }
  func.func @transform_6(%arg0: i32) -> (i32, i32) {
    %c0_i32 = arith.constant 0 : i32
    %c0_i32_0 = arith.constant 0 : i32
    %c0_i32_1 = arith.constant 0 : i32
    return %c0_i32, %c0_i32_0 : i32, i32
  }
  func.func @transform_7(%arg0: i32) -> (i32, i32) {
    %c0_i32 = arith.constant 0 : i32
    %c0_i32_0 = arith.constant 0 : i32
    %c0_i32_1 = arith.constant 0 : i32
    return %c0_i32, %c0_i32_0 : i32, i32
  }
  func.func @transform_8(%arg0: i32) -> (i32, i32) {
    %c0_i32 = arith.constant 0 : i32
    %c0_i32_0 = arith.constant 0 : i32
    %c0_i32_1 = arith.constant 0 : i32
    return %c0_i32, %c0_i32_0 : i32, i32
  }
  func.func @transform_9(%arg0: i32) -> (i32, i32) {
    %c0_i32 = arith.constant 0 : i32
    %c0_i32_0 = arith.constant 0 : i32
    %c0_i32_1 = arith.constant 0 : i32
    return %c0_i32, %c0_i32_0 : i32, i32
  }
}

</mosaic_0001>

<bundles_post_ra>
// kernel: model_forward.2
= control target key start
LH: loop header
LB: loop body
LE: loop exit
PB: predicated region body
PF: predicated region fallthrough
CT: control target
= control target key end

     0   :  { %s5524_s0 = inlined_call_operand.vmem [shape: f32[4,384], index: 0, kind: input, shape index: {}]   ;;  %s5525_s1 = inlined_call_operand.hbm [shape: f32[32,384], index: 1, kind: input, shape index: {}]   ;;  %s5526_s2 = inlined_call_operand.vmem [shape: f32[1,384], index: 2, kind: input, shape index: {}]   ;;  %s5527_s3 = inlined_call_operand.vmem [shape: f32[1,128], index: 3, kind: input, shape index: {}]   ;;  %s5528_s4 = inlined_call_operand.hbm [shape: f32[32,384], index: 4, kind: input, shape index: {}]   ;;  %s5529_s5 = inlined_call_operand.vmem [shape: f32[4,384], index: 5, kind: input, shape index: {}]   ;;  %s5530_s6 = inlined_call_operand.hbm [shape: f32[1,384], index: 6, kind: input, shape index: {}]   ;;  %s5531_s7 = inlined_call_operand.hbm [shape: f32[1,128], index: 7, kind: input, shape index: {}]   ;;  %s5532_s8 = inlined_call_operand.vmem [shape: f32[8,2,4], index: 8, kind: input, shape index: {}]   ;;  %s5533_s9 = inlined_call_operand.<no memory space> [shape: f32[], index: 9, kind: input, shape index: {}]   ;;  %s5534_s10 = inlined_call_operand.vmem [shape: f32[64,128], index: 10, kind: output, shape index: {}]  }
   0x1   :  { %v4502_v0 = vstv %s5533_s9 }
   0x2   :  { %16 = vsyncpa [#allocation9], 0 }
   0x3   :  { %17 = vsyncpa [#allocation11], 0 }
   0x4   :  { %18 = vsyncpa [#allocation14], 0  ;;  %s4432_s15 = smov [#allocation10]   ;;  %s4433_s17 = smov [#allocation8]  }
   0x5   :  { %s44_s16 = sshll.u32 %s4432_s15, 4  ;;  %s28_s18 = sshll.u32 %s4433_s17, 4  ;;  %s45_s16 = int_to_ptr.vmem [resolvable:$true] %s44_s16  ;;  %s29_s18 = int_to_ptr.vmem [resolvable:$true] %s28_s18 }
   0x6   :  { %s4354_s19 = scalar_lea.vmem %s45_s16, 1536  ;;  %p4359_p1 = scmp.lt.s32.totalorder %s45_s16, %s45_s16 }
   0x7   :  { %p4355_p0 = scmp.ne.s32.totalorder %s45_s16, %s4354_s19  ;;  %p4360_p2 = scmp.lt.s32.totalorder %s4354_s19, %s4354_s19 }
   0x9   :  { %p4361_p3 = por %p4360_p2, %p4359_p1 }
   0xb   :  { %p4362_p4 = pnand %p4361_p3, %p4355_p0 }
   0xd   :  { %4365 = shalt.err (!%p4362_p4)
}
   0xe   :  { %s4434_s20 = smov 384   ;;  %s4435_s21 = smov 24  }
   0xf   :  { %50 = dma.hbm_to_vmem [thread:$0]  %s5528_s4, 1536, %s45_s16, [#allocation11], %s4434_s20, %s4434_s20, %s4435_s21  }
  0x10   :  { %s4374_s23 = scalar_lea.vmem %s29_s18, 1536  ;;  %p4379_p6 = scmp.lt.s32.totalorder %s29_s18, %s29_s18 }
  0x11   :  { %p4375_p5 = scmp.ne.s32.totalorder %s29_s18, %s4374_s23  ;;  %p4380_p7 = scmp.lt.s32.totalorder %s4374_s23, %s4374_s23 }
  0x13   :  { %p4381_p8 = por %p4380_p7, %p4379_p6 }
  0x15   :  { %p4382_p9 = pnand %p4381_p8, %p4375_p5 }
  0x17   :  { %4385 = shalt.err (!%p4382_p9)
}
  0x18   :  { %34 = dma.hbm_to_vmem [thread:$0]  %s5525_s1, 1536, %s29_s18, [#allocation9], %s4434_s20, %s4434_s20, %s4435_s21  }
  0x19   :  { %s4436_s26 = smov [#allocation12]   ;;  %s4437_s28 = smov [#allocation13]  }
  0x1a   :  { %s59_s27 = sshll.u32 %s4436_s26, 4  ;;  %s69_s29 = sshll.u32 %s4437_s28, 4  ;;  %s60_s27 = int_to_ptr.vmem [resolvable:$true] %s59_s27  ;;  %s70_s29 = int_to_ptr.vmem [resolvable:$true] %s69_s29 }
  0x1b   :  { %s4394_s30 = scalar_lea.vmem %s60_s27, 48  ;;  %s4398_s4 = scalar_lea.vmem %s60_s27, 64 }
  0x1c   :  { %p4395_p10 = scmp.ne.s32.totalorder %s60_s27, %s4394_s30  ;;  %p4399_p11 = scmp.lt.s32.totalorder %s60_s27, %s60_s27 }
  0x1d   :  { %p4400_p12 = scmp.lt.s32.totalorder %s4398_s4, %s4394_s30 }
  0x1f   :  { %p4401_p13 = por %p4400_p12, %p4399_p11 }
  0x21   :  { %p4402_p0 = pnand %p4401_p13, %p4395_p10 }
  0x23   :  { %4405 = shalt.err (!%p4402_p0)
}
  0x24   :  { %62 = dma.hbm_to_vmem [thread:$0]  %s5530_s6, 48, %s60_s27, [#allocation11]  }
  0x25   :  { %s4414_s13 = scalar_lea.vmem %s70_s29, 16  ;;  %s4418_s1 = scalar_lea.vmem %s70_s29, 32 }
  0x26   :  { %p4415_p1 = scmp.ne.s32.totalorder %s70_s29, %s4414_s13  ;;  %p4419_p2 = scmp.lt.s32.totalorder %s70_s29, %s70_s29 }
  0x27   :  { %p4420_p3 = scmp.lt.s32.totalorder %s4418_s1, %s4414_s13 }
  0x29   :  { %p4421_p4 = por %p4420_p3, %p4419_p2 }
  0x2b   :  { %p4422_p5 = pnand %p4421_p4, %p4415_p1 }
  0x2d   :  { %4425 = shalt.err (!%p4422_p5)
}
  0x2e   :  { %72 = dma.hbm_to_vmem [thread:$0]  %s5531_s7, 16, %s70_s29, [#allocation14]  }
  0x2f   :  { %4426 = dma.done.wait [#allocation9], 1536  }
  0x30   :  { %4427 = vsyncadd [#allocation9], 4294965760 }
  0x31   :  { %4428 = dma.done.wait [#allocation11], 1584  }
  0x32   :  { %4429 = vsyncadd [#allocation11], 4294965712 }
  0x33   :  { %4430 = dma.done.wait [#allocation14], 16  }
  0x34   :  { %4431 = vsyncadd [#allocation14], 4294967280  ;;  %v86_v1 = vlaneseq  ;;  %v5535_v2 = vmov 0.0   ;;  %vm266_vm0 = vcmask 1043456   ;;  %v220_v5 = vld [vmem:[%s5524_s0 + $0x8] sm:$0xf] }
  0x35   :  { %337 = vmatprep.mubr.f32.mxu0 %v5535_v2  ;;  %v85_v6 = vld [vmem:[%s5532_s8] sm:$0x3]  ;;  %vm241_vm3 = vcmask 31744   ;;  %v4526_v7 = vld [vmem:[#allocation8 + $0x50] sm:$0xff]  ;;  %3953 = vmatprep.subr.msk.mxu1 %vm266_vm0, %v220_v5  ;;  %v3771_v9 = vld [vmem:[%s5532_s8 + $0x2] sm:$0x3] }
  0x36   :  { %v4517_v3 = vshrl.u32 %v86_v1, 7  ;;  %v92_v4 = vand.u32 127, %v86_v1  ;;  %v3772_v10 = vld [vmem:[%s5532_s8 + $0x4] sm:$0x3]  ;;  %3954 = vmatpush3.msk.msra.mxu1 %vm266_vm0, %v220_v5  ;;  %v4544_v13 = vld [vmem:[#allocation8 + $0x48] sm:$0xff]  ;;  %v4558_v18 = vld [vmem:[#allocation8 + $0x38] sm:$0xff] }
  0x37   :  { %v3773_v15 = vld [vmem:[%s5532_s8 + $0x6] sm:$0x3]  ;;  %660 = vmatprep.subr.mxu1 %v4526_v7  ;;  %v3774_v20 = vld [vmem:[%s5532_s8 + $0x8] sm:$0x3]  ;;  %v3775_v21 = vld [vmem:[%s5532_s8 + $0xa] sm:$0x3] }
  0x38   :  { %vm89_vm1 = vcmp.lt.s32.totalorder %v4517_v3, 2  ;;  %vm94_vm2 = vcmp.lt.s32.totalorder %v92_v4, 4  ;;  %v4570_v22 = vld [vmem:[#allocation8 + $0x30] sm:$0xff]  ;;  %v219_v24 = vld [vmem:[%s5524_s0] sm:$0xff]  ;;  %v3776_v25 = vld [vmem:[%s5532_s8 + $0xc] sm:$0x3] }
  0x39   :  { %v90_v8 = vsel %vm89_vm1, %v85_v6, %v4502_v0  ;;  %v105_v12 = vsel %vm89_vm1, %v3771_v9, %v4502_v0  ;;  %v121_v14 = vsel %vm89_vm1, %v3772_v10, %v4502_v0  ;;  %v137_v19 = vsel %vm89_vm1, %v3773_v15, %v4502_v0  ;;  %v4585_v27 = vld [vmem:[#allocation8 + $0x20] sm:$0xff]  ;;  %v4593_v31 = vld [vmem:[#allocation8 + $0x18] sm:$0xff]  ;;  %v4600_v33 = vld [vmem:[#allocation8 + $0x8] sm:$0xff] }
  0x3a   :  { %v95_v11 = vsel %vm94_vm2, %v90_v8, %v4502_v0  ;;  %v110_v16 = vsel %vm94_vm2, %v105_v12, %v4502_v0  ;;  %v126_v17 = vsel %vm94_vm2, %v121_v14, %v4502_v0  ;;  %v153_v23 = vsel %vm89_vm1, %v3774_v20, %v4502_v0  ;;  %v3777_v34 = vld [vmem:[%s5532_s8 + $0xe] sm:$0x3]  ;;  %v4607_v35 = vld [vmem:[#allocation8] sm:$0xff]  ;;  %v4632_v40 = vld [vmem:[#allocation8 + $0x58] sm:$0xff] }
  0x3b   :  { %3955 = vmatprep.mubr.msk.f32.mxu1 %vm241_vm3, %v95_v11  ;;  %v142_v26 = vsel %vm94_vm2, %v137_v19, %v4502_v0  ;;  %v240_v28 = vcombine.high %v219_v24, %v219_v24  ;;  %v158_v29 = vsel %vm94_vm2, %v153_v23, %v4502_v0  ;;  %v169_v30 = vsel %vm89_vm1, %v3775_v21, %v4502_v0  ;;  %v4636_v41 = vld [vmem:[#allocation8 + $0x40] sm:$0xff]  ;;  %v4643_v42 = vld [vmem:[#allocation8 + $0x28] sm:$0xff]  ;;  %v4648_v43 = vld [vmem:[#allocation8 + $0x10] sm:$0xff] }
  0x3c   :  { %3956 = vmatmul.mubr.msk.f32.vlgmr.msra.gmra.mxu1 %vm241_vm3, %v110_v16  ;;  %v185_v32 = vsel %vm89_vm1, %v3776_v25, %v4502_v0  ;;  %v174_v36 = vsel %vm94_vm2, %v169_v30, %v4502_v0  ;;  %v201_v38 = vsel %vm89_vm1, %v3777_v34, %v4502_v0  ;;  %vm4439_vm4 = vmmov 0   ;;  %v4666_v44 = vld [vmem:[#allocation10 + $0x50] sm:$0xff]  ;;  %v4668_v45 = vld [vmem:[#allocation10 + $0x48] sm:$0xff]  ;;  %v4672_v46 = vld [vmem:[#allocation10 + $0x58] sm:$0xff] }
  0x3d   :  { %661 = vmatpush1.msra.mxu1 %v4544_v13  ;;  %3958 = vmatprep.mubr.msk.f32.mxu1 %vm241_vm3, %v126_v17  ;;  %v190_v37 = vsel %vm94_vm2, %v185_v32, %v4502_v0  ;;  %v206_v39 = vsel %vm94_vm2, %v201_v38, %v4502_v0  ;;  %v4674_v47 = vld [vmem:[#allocation10 + $0x38] sm:$0xff]  ;;  %v4678_v48 = vld [vmem:[#allocation10 + $0x30] sm:$0xff]  ;;  %v4681_v49 = vld [vmem:[#allocation10 + $0x40] sm:$0xff]  ;;  %v4708_v56 = vsub.s32 2, %v4517_v3  ;;  %v4722_v63 = vsub.s32 0, %v4517_v3 }
  0x3e   :  { %662 = vmatprep.subr.mxu1 %v4558_v18  ;;  %3778 = vmatprep.subr.msk.mxu0 %vm266_vm0, %v240_v28  ;;  %v4684_v50 = vld [vmem:[#allocation10 + $0x20] sm:$0xff]  ;;  %v4688_v51 = vld [vmem:[#allocation10 + $0x18] sm:$0xff]  ;;  %v4691_v52 = vld [vmem:[#allocation10 + $0x28] sm:$0xff]  ;;  %v4742_v15 = vsub.s32 1, %v4517_v3  ;;  %vm632_vm5 = vcmask 261120  }
  0x3f   :  { %663 = vmatpush1.msra.mxu1 %v4570_v22  ;;  %3779 = vmatpush1.msk.msra.mxu0 %vm266_vm0, %v219_v24  ;;  %v4694_v53 = vld [vmem:[#allocation10 + $0x8] sm:$0xff]  ;;  %v4696_v54 = vld [vmem:[#allocation10] sm:$0xff]  ;;  %v4699_v55 = vld [vmem:[#allocation10 + $0x10] sm:$0xff] }
  0x40   :  { %3959 = vmatmul.mubr.msk.f32.gmra.mxu1 %vm241_vm3, %v142_v26  ;;  %664 = vmatprep.subr.mxu1 %v4585_v27  ;;  %v221_v57 = vld [vmem:[%s5526_s2] sm:$0x7] }
  0x41   :  { %3961 = vmatprep.mubr.msk.f32.mxu1 %vm241_vm3, %v158_v29  ;;  %665 = vmatpush1.msra.mxu1 %v4593_v31  ;;  %v4714_v58 = vrot.slane %v221_v57, %v4708_v56  ;;  %v4734_v9 = vrot.slane %v221_v57, %v4722_v63  ;;  %v4754_v25 = vrot.slane %v221_v57, %v4742_v15 }
  0x42   :  { %666 = vmatprep.subr.mxu1 %v4600_v33  ;;  %3780 = vmatmul.mubr.msk.f32.vlgmr.msra.gmra.mxu0 %vm241_vm3, %v95_v11 }
  0x43   :  { %667 = vmatpush1.msra.mxu1 %v4607_v35  ;;  %343 = vmatprep.mubr.f32.mxu0 %v5535_v2  ;;  %5583 = vst [vmem:[#allocation25_spill] sm:$0xff] %v4754_v25 }
  0x44   :  { %3962 = vmatmul.mubr.msk.f32.gmra.mxu1 %vm241_vm3, %v174_v36  ;;  %3967 = vmatprep.subr.mxu1 %v5535_v2 }
  0x45   :  { %3964 = vmatprep.mubr.msk.f32.mxu1 %vm241_vm3, %v190_v37  ;;  %838 = vmatprep.subr.mxu0 %v4666_v44 }
  0x46   :  { %3781 = vmatmul.mubr.msk.f32.gmra.mxu0 %vm241_vm3, %v110_v16 }
  0x47   :  { %349 = vmatprep.mubr.f32.mxu0 %v5535_v2  ;;  %839 = vmatpush1.msra.mxu0 %v4668_v45 }
  0x48   :  { %3965 = vmatmul.mubr.msk.f32.gmra.mxu1 %vm241_vm3, %v206_v39  ;;  %840 = vmatprep.subr.mxu0 %v4674_v47 }
  0x49   :  { %700 = vmatprep.mubr.f32.mxu1 %v5535_v2  ;;  %841 = vmatpush1.msra.mxu0 %v4678_v48 }
  0x4a   :  { %3782 = vmatmul.mubr.msk.f32.gmra.mxu0 %vm241_vm3, %v126_v17  ;;  %842 = vmatprep.subr.mxu0 %v4684_v50 }
  0x4b   :  { %355 = vmatprep.mubr.f32.mxu0 %v5535_v2  ;;  %843 = vmatpush1.msra.mxu0 %v4688_v51 }
  0x4c   :  { %701 = vmatmul.mubr.f32.vlgmr.msra.gmra.mxu1 %v5535_v2  ;;  %844 = vmatprep.subr.mxu0 %v4694_v53 }
  0x4d   :  { %3968 = vmatpush3.msra.mxu1 %v4632_v40  ;;  %3975 = vmatprep.mubr.msk.f32.mxu1 %vm4439_vm4, %v5535_v2 }
  0x4e   :  { %3969 = vmatprep.subr.mxu1 %v5535_v2  ;;  %3783 = vmatmul.mubr.msk.f32.gmra.mxu0 %vm241_vm3, %v142_v26 }
  0x4f   :  { %3970 = vmatpush3.msra.mxu1 %v4636_v41  ;;  %361 = vmatprep.mubr.f32.mxu0 %v5535_v2 }
  0x50   :  { %3971 = vmatprep.subr.mxu1 %v5535_v2  ;;  %845 = vmatpush1.msra.mxu0 %v4696_v54 }
  0x51   :  { %3972 = vmatpush3.msra.mxu1 %v4643_v42  ;;  %1038 = vmatprep.subr.mxu0 %v4526_v7 }
  0x52   :  { %3973 = vmatprep.subr.mxu1 %v5535_v2  ;;  %3784 = vmatmul.mubr.msk.f32.gmra.mxu0 %vm241_vm3, %v158_v29 }
  0x53   :  { %3974 = vmatpush3.msra.mxu1 %v4648_v43  ;;  %367 = vmatprep.mubr.f32.mxu0 %v5535_v2 }
  0x54   :  { %3976 = vmatmul.mubr.f32.vlgmr.msra.gmra.mxu1 %v5535_v2  ;;  %3978 = vmatprep.subr.mxu1 %v5535_v2 }
  0x55   :  { %3986 = vmatprep.mubr.msk.f32.mxu1 %vm4439_vm4, %v5535_v2  ;;  %3979 = vmatpush3.msra.mxu1 %v4672_v46 }
  0x56   :  { %3785 = vmatmul.mubr.msk.f32.gmra.mxu0 %vm241_vm3, %v174_v36  ;;  %3980 = vmatprep.subr.mxu1 %v5535_v2 }
  0x57   :  { %373 = vmatprep.mubr.f32.mxu0 %v5535_v2  ;;  %3981 = vmatpush3.msra.mxu1 %v4681_v49 }
  0x58   :  { %3982 = vmatprep.subr.mxu1 %v5535_v2 }
  0x59   :  { %3983 = vmatpush3.msra.mxu1 %v4691_v52 }
  0x5a   :  { %3786 = vmatmul.mubr.msk.f32.gmra.mxu0 %vm241_vm3, %v190_v37  ;;  %3984 = vmatprep.subr.mxu1 %v5535_v2 }
  0x5b   :  { %379 = vmatprep.mubr.f32.mxu0 %v5535_v2  ;;  %3985 = vmatpush3.msra.mxu1 %v4699_v55 }
  0x5c   :  { %3989 = vmatprep.subr.mxu1 %v5535_v2 }
  0x5e   :  { %3787 = vmatmul.mubr.msk.f32.gmra.mxu0 %vm241_vm3, %v206_v39 }
  0x5f   :  { %878 = vmatprep.mubr.f32.mxu0 %v5535_v2 }
  0xfc   :  { %v3957_v59 = vpop.f32.mrf.mxu1 }
  0xfd   :  { %v4717_v60 = vadd.f32 %v3957_v59, %v4714_v58 }
  0xfe   :  { %v4719_v61 = vpop.f32.mrf.mxu1 }
 0x100   :  { %v3960_v62 = vpop.f32.mrf.mxu1 }
 0x101   :  { %v4725_v0 = vadd.f32 %v3960_v62, %v4714_v58 }
 0x102   :  { %v462_v1 = vpop.f32.mrf.mxu1  ;;  %v339_v5 = vpop.f32.mrf.mxu0 }
 0x103   :  { %5577 = vst [vmem:[#allocation19_spill] sm:$0xff] %v4725_v0  ;;  %v4728_v4 = vadd.f32 %v462_v1, %v4714_v58  ;;  %v340_v17 = vadd.f32 %v339_v5, %v4734_v9 }
 0x104   :  { %v3963_v6 = vpop.f32.mrf.mxu1  ;;  %v341_v10 = vpop.f32.mrf.mxu0 }
 0x105   :  { %5578 = vst [vmem:[#allocation20_spill] sm:$0xff] %v4728_v4  ;;  %v4731_v8 = vadd.f32 %v3963_v6, %v4714_v58  ;;  %v342_v38 = vadd.f32 %v341_v10, %v4754_v25 }
 0x106   :  { %v472_v11 = vpop.f32.mrf.mxu1  ;;  %v4739_v14 = vpop.f32.mrf.mxu0 }
 0x107   :  { %5579 = vst [vmem:[#allocation21_spill] sm:$0xff] %v4731_v8  ;;  %v4737_v12 = vadd.f32 %v472_v11, %v4714_v58  ;;  %v529_v8 = vld [vmem:[#allocation12] sm:$0x7] }
 0x108   :  { %v3966_v16 = vpop.f32.mrf.mxu1  ;;  %v4748_v20 = vpop.f32.mrf.mxu0 }
 0x109   :  { %5580 = vst [vmem:[#allocation22_spill] sm:$0xff] %v4737_v12  ;;  %v4746_v19 = vadd.f32 %v3966_v16, %v4714_v58  ;;  %v4888_v12 = vrot.slane %v529_v8, %v4722_v63 }
 0x10a   :  { %v482_v21 = vpop.f32.mrf.mxu1  ;;  %v351_v24 = vpop.f32.mrf.mxu0 }
 0x10b   :  { %5581 = vst [vmem:[#allocation23_spill] sm:$0xff] %v4746_v19  ;;  %v4751_v23 = vadd.f32 %v482_v21, %v4714_v58  ;;  %v4757_v3 = vadd.f32 %v351_v24, %v4734_v9  ;;  %5603 = vst [vmem:[#allocation44_spill] sm:$0xff] %v4888_v12 }
 0x10c   :  { %v702_v26 = vpop.f32.mrf.mxu1  ;;  %v353_v29 = vpop.f32.mrf.mxu0 }
 0x10d   :  { %5582 = vst [vmem:[#allocation24_spill] sm:$0xff] %v4751_v23  ;;  %5584 = vst [vmem:[#allocation26_spill] sm:$0xff] %v4757_v3  ;;  %v777_v28 = vadd.f32 %v702_v26, %v340_v17  ;;  %v4760_v30 = vadd.f32 %v353_v29, %v4754_v25 }
 0x10e   :  { %v357_v34 = vpop.f32.mrf.mxu0  ;;  %v704_v36 = vpop.f32.mrf.mxu1 }
 0x10f   :  { %5585 = vst [vmem:[#allocation27_spill] sm:$0xff] %v4760_v30  ;;  %v3802_v32 = vmul.f32 -1.442695, %v777_v28  ;;  %v4763_v37 = vadd.f32 %v357_v34, %v4734_v9  ;;  %v784_v59 = vadd.f32 %v704_v36, %v342_v38 }
 0x110   :  { %v359_v39 = vpop.f32.mrf.mxu0 }
 0x111   :  { %5586 = vst [vmem:[#allocation28_spill] sm:$0xff] %v4763_v37  ;;  %4184 = vpow2.f32 %v3802_v32  ;;  %v4767_v57 = vadd.f32 %v359_v39, %v4754_v25  ;;  %v3803_v17 = vmul.f32 -1.442695, %v784_v59 }
 0x112   :  { %v363_v62 = vpop.f32.mrf.mxu0 }
 0x113   :  { %5587 = vst [vmem:[#allocation29_spill] sm:$0xff] %v4767_v57  ;;  %v4770_v5 = vadd.f32 %v363_v62, %v4734_v9  ;;  %4186 = vpow2.f32 %v3803_v17 }
 0x114   :  { %v773_v1 = vpop.f32.mrf.mxu1  ;;  %v365_v6 = vpop.f32.mrf.mxu0 }
 0x115   :  { %5588 = vst [vmem:[#allocation30_spill] sm:$0xff] %v4770_v5  ;;  %v4773_v16 = vadd.f32 %v365_v6, %v4754_v25  ;;  %v4793_v6 = vld [vmem:[%s5527_s3] ss:$0 sm:$0xff] }
 0x116   :  { %v3977_v11 = vpop.f32.mrf.mxu1  ;;  %v369_v21 = vpop.f32.mrf.mxu0  ;;  %v791_v17 = vadd.f32 %v4793_v6, %v773_v1  ;;  %v3799_v1 = vld [vmem:[%s5529_s5 + $0x1] ss:$4 sm:$0x7] }
 0x117   :  { %5589 = vst [vmem:[#allocation31_spill] sm:$0xff] %v4773_v16  ;;  %v4776_v10 = vadd.f32 %v369_v21, %v4734_v9 }
 0x118   :  { %v371_v24 = vpop.f32.mrf.mxu0 }
 0x119   :  { %5590 = vst [vmem:[#allocation32_spill] sm:$0xff] %v4776_v10  ;;  %v4779_v26 = vadd.f32 %v371_v24, %v4754_v25  ;;  %v453_v24 = vadd.f32 %v4719_v61, %v4714_v58  ;;  %v5595_v58 = vmov 0.0   ;;  %v5539_v61 = vmov 0  }
 0x11a   :  { %v375_v28 = vpop.f32.mrf.mxu0  ;;  %4155 = vset.pattern.permute.xlu0 %v5539_v61 }
 0x11b   :  { %5591 = vst [vmem:[#allocation33_spill] sm:$0xff] %v4779_v26  ;;  %v4782_v29 = vadd.f32 %v375_v28, %v4734_v9 }
 0x11c   :  { %v377_v32 = vpop.f32.mrf.mxu0 }
 0x11d   :  { %5592 = vst [vmem:[#allocation34_spill] sm:$0xff] %v4782_v29  ;;  %v4785_v36 = vadd.f32 %v377_v32, %v4754_v25 }
 0x11e   :  { %v4185_v34 = vpop.eup %4184  ;;  %v381_v39 = vpop.f32.mrf.mxu0 }
 0x11f   :  { %5593 = vst [vmem:[#allocation35_spill] sm:$0xff] %v4785_v36  ;;  %v781_v38 = vadd.f32 1.0, %v4185_v34  ;;  %v4788_v59 = vadd.f32 %v381_v39, %v4734_v9 }
 0x120   :  { %v4187_v62 = vpop.eup %4186  ;;  %v4894_v5 = vpop.f32.mrf.mxu0 }
 0x121   :  { %5594 = vst [vmem:[#allocation36_spill] sm:$0xff] %v4788_v59  ;;  %4188 = vrcp.f32 %v781_v38  ;;  %v788_v11 = vadd.f32 1.0, %v4187_v62  ;;  %5604 = vst [vmem:[#allocation45_spill] sm:$0xff] %v4894_v5 }
 0x123   :  { %4190 = vrcp.f32 %v788_v11  ;;  %v4858_v11 = vrot.slane %v3799_v1, %v4722_v63 }
 0x125   :  { %5597 = vst [vmem:[#allocation38_spill] sm:$0xff] %v4858_v11 }
 0x12e   :  { %v4189_v21 = vpop.eup %4188 }
 0x12f   :  { %v792_v28 = vmul.f32 %v4189_v21, %v791_v17  ;;  %v3800_v17 = vld [vmem:[%s5529_s5 + $0x2] ss:$4 sm:$0x7] }
 0x130   :  { %v4191_v34 = vpop.eup %4190  ;;  %v4864_v21 = vrot.slane %v3800_v17, %v4722_v63  ;;  %v4882_v23 = vrot.slane %v3800_v17, %v4742_v15 }
 0x131   :  { %v793_v32 = vadd.f32 %v792_v28, %v453_v24  ;;  %v795_v39 = vsub.f32 1.0, %v4191_v34  ;;  %v797_v19 = vmul.f32 0.0, %v4191_v34  ;;  %v958_v28 = vmul.f32 0.0, %v4858_v11 }
 0x132   :  { %5598 = vst [vmem:[#allocation39_spill] sm:$0xff] %v4864_v21  ;;  %v964_v61 = vmul.f32 0.0, %v4864_v21  ;;  %5602 = vst [vmem:[#allocation43_spill] sm:$0xff] %v4882_v23 }
 0x133   :  { %4192 = vtanh.f32 %v793_v32  ;;  %v3801_v32 = vld [vmem:[%s5529_s5 + $0x3] ss:$4 sm:$0x7] }
 0x134   :  { %v4891_v16 = vrot.slane %v3801_v32, %v4742_v15 }
 0x140   :  { %v4193_v38 = vpop.eup %4192 }
 0x141   :  { %v796_v2 = vmul.f32 %v4193_v38, %v795_v39  ;;  %v4875_v39 = vrot.slane %v3799_v1, %v4742_v15  ;;  %v4878_v38 = vrot.slane %v3801_v32, %v4722_v63 }
 0x143   :  { %v4798_v59 = vadd.f32 %v797_v19, %v796_v2  ;;  %v5537_v2 = vmov 2   ;;  %v546_v19 = vld [vmem:[%s5529_s5] ss:$4 sm:$0x7]  ;;  %5600 = vst [vmem:[#allocation41_spill] sm:$0xff] %v4875_v39  ;;  %5601 = vst [vmem:[#allocation42_spill] sm:$0xff] %v4878_v38 }
 0x144   :  { %4157 = vset.pattern.permute.xlu1 %v5537_v2  ;;  %v4855_v62 = vrot.slane %v546_v19, %v4722_v63  ;;  %v4872_v34 = vrot.slane %v546_v19, %v4742_v15  ;;  %v959_v29 = vmul.f32 0.0, %v4875_v39  ;;  %v970_v10 = vmul.f32 0.0, %v4878_v38 }
 0x145   :  { %3804 = vmatmul.mubr.msk.f32.vlgmr.msra.gmra.mxu0 %vm632_vm5, %v4798_v59  ;;  %3987 = vmatmul.mubr.msk.f32.vlgmr.msra.gmra.mxu1 %vm632_vm5, %v4798_v59  ;;  %v971_v63 = vmul.f32 0.0, %v4891_v16 }
 0x146   :  { %1039 = vmatpush1.msra.mxu0 %v4544_v13  ;;  %3990 = vmatpush3.msra.mxu1 %v4632_v40  ;;  %5596 = vst [vmem:[#allocation37_spill] sm:$0xff] %v4855_v62  ;;  %v955_v24 = vmul.f32 0.0, %v4855_v62  ;;  %5599 = vst [vmem:[#allocation40_spill] sm:$0xff] %v4872_v34  ;;  %v956_v36 = vmul.f32 0.0, %v4872_v34 }
 0x147   :  { %1040 = vmatprep.subr.mxu0 %v4558_v18  ;;  %3991 = vmatprep.subr.mxu1 %v5595_v58 }
 0x148   :  { %1041 = vmatpush1.msra.mxu0 %v4570_v22  ;;  %3992 = vmatpush3.msra.mxu1 %v4636_v41  ;;  %v961_v2 = vadd.f32 %v958_v28, %v955_v24  ;;  %v962_v24 = vadd.f32 %v959_v29, %v956_v36  ;;  %v965_v28 = vmul.f32 0.0, %v4882_v23 }
 0x149   :  { %1042 = vmatprep.subr.mxu0 %v4585_v27  ;;  %3993 = vmatprep.subr.mxu1 %v5595_v58 }
 0x14a   :  { %1043 = vmatpush1.msra.mxu0 %v4593_v31  ;;  %3994 = vmatpush3.msra.mxu1 %v4643_v42  ;;  %v967_v26 = vadd.f32 %v964_v61, %v961_v2  ;;  %v4898_v2 = vrot.slane %v529_v8, %v4742_v15  ;;  %v968_v61 = vadd.f32 %v965_v28, %v962_v24 }
 0x14b   :  { %1044 = vmatprep.subr.mxu0 %v4600_v33  ;;  %3995 = vmatprep.subr.mxu1 %v5595_v58  ;;  %v4905_v24 = vrot.slane %v546_v19, %v4708_v56 }
 0x14c   :  { %1045 = vmatpush1.msra.mxu0 %v4607_v35  ;;  %1078 = vmatprep.mubr.f32.mxu0 %v5595_v58  ;;  %v973_v0 = vadd.f32 %v970_v10, %v967_v26  ;;  %v974_v36 = vadd.f32 %v971_v63, %v968_v61  ;;  %v346_v10 = vadd.f32 %v4739_v14, %v4734_v9 }
 0x14d   :  { %3996 = vmatpush3.msra.mxu1 %v4648_v43  ;;  %3997 = vmatprep.mubr.msk.f32.mxu1 %vm4439_vm4, %v5595_v58  ;;  %v4913_v9 = vrot.slane %v3800_v17, %v4708_v56  ;;  %v957_v14 = vmul.f32 0.0, %v4905_v24 }
 0x14e   :  { %3808 = vmatmul.mubr.msk.f32.vlgmr.msra.gmra.mxu0 %vm632_vm5, %v4798_v59  ;;  %3998 = vmatmul.mubr.msk.f32.vlgmr.msra.gmra.mxu1 %vm632_vm5, %v4798_v59 }
 0x14f   :  { %1216 = vmatprep.subr.mxu0 %v4666_v44  ;;  %4000 = vmatprep.subr.mxu1 %v5595_v58  ;;  %v966_v61 = vmul.f32 0.0, %v4913_v9 }
 0x150   :  { %1217 = vmatpush1.msra.mxu0 %v4668_v45  ;;  %4001 = vmatpush3.msra.mxu1 %v4672_v46 }
 0x151   :  { %1218 = vmatprep.subr.mxu0 %v4674_v47  ;;  %4002 = vmatprep.subr.mxu1 %v5595_v58 }
 0x152   :  { %1219 = vmatpush1.msra.mxu0 %v4678_v48  ;;  %4003 = vmatpush3.msra.mxu1 %v4681_v49 }
 0x153   :  { %1220 = vmatprep.subr.mxu0 %v4684_v50  ;;  %4004 = vmatprep.subr.mxu1 %v5595_v58 }
 0x154   :  { %1221 = vmatpush1.msra.mxu0 %v4688_v51  ;;  %4005 = vmatpush3.msra.mxu1 %v4691_v52 }
 0x155   :  { %1222 = vmatprep.subr.mxu0 %v4694_v53  ;;  %4006 = vmatprep.subr.mxu1 %v5595_v58 }
 0x156   :  { %1223 = vmatpush1.msra.mxu0 %v4696_v54  ;;  %4007 = vmatpush3.msra.mxu1 %v4699_v55 }
 0x157   :  { %1256 = vmatprep.mubr.f32.mxu0 %v5595_v58  ;;  %4008 = vmatprep.mubr.msk.f32.mxu1 %vm4439_vm4, %v5595_v58 }
 0x158   :  { %1433 = vmatprep.subr.mxu0 %v4526_v7  ;;  %4011 = vmatprep.subr.mxu1 %v5595_v58 }
 0x205   :  { %v880_v57 = vpop.f32.mrf.mxu0  ;;  %v951_v37 = vpop.f32.mrf.mxu1 }
 0x206   :  { %v881_v4 = vadd.f32 %v880_v57, %v4888_v12 }
 0x207   :  { %v882_v30 = vpop.f32.mrf.mxu0  ;;  %v3988_v3 = vpop.f32.mrf.mxu1 }
 0x208   :  { %v976_v38 = vadd.f32 %v973_v0, %v881_v4  ;;  %v883_v29 = vadd.f32 %v882_v30, %v4898_v2  ;;  %v4908_v3 = vrot.slane %v3799_v1, %v4708_v56  ;;  %v348_v30 = vadd.f32 %v4748_v20, %v4754_v25 }
 0x209   :  { %v4918_v1 = vrot.slane %v3801_v32, %v4708_v56 }
 0x20a   :  { %v3806_v34 = vmul.f32 -1.442695, %v976_v38  ;;  %v983_v26 = vadd.f32 %v974_v36, %v883_v29 }
 0x20c   :  { %4194 = vpow2.f32 %v3806_v34  ;;  %v3807_v0 = vmul.f32 -1.442695, %v983_v26  ;;  %v4925_v26 = vrot.slane %v529_v8, %v4708_v56 }
 0x20e   :  { %v1080_v5 = vpop.f32.mrf.mxu0  ;;  %v1151_v57 = vpop.f32.mrf.mxu1 }
 0x20f   :  { %v1155_v12 = vadd.f32 %v1080_v5, %v346_v10  ;;  %v4922_v10 = vld [vmem:[#allocation13] ss:$0 sm:$0xff] }
 0x210   :  { %v3999_v15 = vpop.f32.mrf.mxu1  ;;  %v1082_v4 = vpop.f32.mrf.mxu0 }
 0x211   :  { %v3810_v23 = vmul.f32 -1.442695, %v1155_v12  ;;  %v1162_v34 = vadd.f32 %v1082_v4, %v348_v30  ;;  %v960_v12 = vmul.f32 0.0, %v4908_v3  ;;  %v952_v30 = vadd.f32 %v951_v37, %v4925_v26 }
 0x213   :  { %4196 = vpow2.f32 %v3810_v23  ;;  %v3811_v19 = vmul.f32 -1.442695, %v1162_v34  ;;  %v963_v28 = vadd.f32 %v960_v12, %v957_v14  ;;  %v972_v23 = vmul.f32 0.0, %v4918_v1 }
 0x214   :  { %4198 = vpow2.f32 %v3807_v0 }
 0x215   :  { %v969_v20 = vadd.f32 %v966_v61, %v963_v28 }
 0x217   :  { %v975_v29 = vadd.f32 %v972_v23, %v969_v20 }
 0x219   :  { %v4195_v5 = vpop.eup %4194  ;;  %v990_v32 = vadd.f32 %v4922_v10, %v975_v29 }
 0x21a   :  { %v980_v38 = vadd.f32 1.0, %v4195_v5  ;;  %v1169_v5 = vadd.f32 %v4793_v6, %v1151_v57 }
 0x21c   :  { %4200 = vrcp.f32 %v980_v38 }
 0x21d   :  { %4202 = vpow2.f32 %v3811_v19 }
 0x220   :  { %v4197_v17 = vpop.eup %4196 }
 0x221   :  { %v1159_v63 = vadd.f32 1.0, %v4197_v17  ;;  %v4199_v36 = vpop.eup %4198 }
 0x222   :  { %v987_v15 = vadd.f32 1.0, %v4199_v36  ;;  %v5551_v36 = vmov 3  }
 0x223   :  { %4204 = vrcp.f32 %v1159_v63 }
 0x224   :  { %4206 = vrcp.f32 %v987_v15 }
 0x229   :  { %v4201_v0 = vpop.eup %4200 }
 0x22a   :  { %v4203_v4 = vpop.eup %4202  ;;  %v991_v34 = vmul.f32 %v4201_v0, %v990_v32  ;;  %v5549_v32 = vmov 1  }
 0x22b   :  { %v1166_v12 = vadd.f32 1.0, %v4203_v4 }
 0x22c   :  { %v992_v14 = vadd.f32 %v991_v34, %v952_v30 }
 0x22e   :  { %4208 = vtanh.f32 %v992_v14 }
 0x22f   :  { %4210 = vrcp.f32 %v1166_v12 }
 0x230   :  { %v4205_v19 = vpop.eup %4204 }
 0x231   :  { %v1170_v38 = vmul.f32 %v4205_v19, %v1169_v5  ;;  %v4207_v8 = vpop.eup %4206 }
 0x232   :  { %v994_v28 = vsub.f32 1.0, %v4207_v8  ;;  %v996_v23 = vmul.f32 0.0, %v4207_v8 }
 0x233   :  { %v1171_v56 = vadd.f32 %v1170_v38, %v4717_v60 }
 0x235   :  { %4212 = vtanh.f32 %v1171_v56  ;;  %v5606_v56 = vld [vmem:[#allocation40_spill] sm:$0xff] }
 0x23b   :  { %v4209_v61 = vpop.eup %4208 }
 0x23c   :  { %v995_v20 = vmul.f32 %v4209_v61, %v994_v28  ;;  %v4211_v17 = vpop.eup %4210  ;;  %v5607_v61 = vld [vmem:[#allocation42_spill] sm:$0xff] }
 0x23d   :  { %v1173_v57 = vsub.f32 1.0, %v4211_v17  ;;  %v1175_v29 = vmul.f32 %v4211_v17, %v4798_v59  ;;  %v5605_v59 = vmov 0  }
 0x23e   :  { %v4931_v37 = vadd.f32 %v996_v23, %v995_v20 }
 0x240   :  { %1352 = vperm.xlu1 %4157, %v4931_v37   ;;  %998 = vst [vmem:[%s5534_s10] sm:$0xff] %v4931_v37  ;;  %1335 = vperm.xlu0 %4155, %v4931_v37  }
 0x242   :  { %v4213_v60 = vpop.eup %4212 }
 0x243   :  { %v1174_v63 = vmul.f32 %v4213_v60, %v1173_v57  ;;  %v5608_v57 = vld [vmem:[#allocation43_spill] sm:$0xff] }
 0x244   :  { %4158 = vset.pattern.permute.xlu1 %v5551_v36  ;;  %4156 = vset.pattern.permute.xlu0 %v5549_v32 }
 0x245   :  { %v4942_v15 = vadd.f32 %v1175_v29, %v1174_v63  ;;  %1362 = vperm.xlu1 %4158, %v4931_v37   ;;  %1342 = vperm.xlu0 %4156, %v4931_v37   ;;  %v5609_v63 = vld [vmem:[#allocation44_spill] sm:$0xff] }
 0x247   :  { %3812 = vmatmul.mubr.msk.f32.vlgmr.msra.gmra.mxu0 %vm632_vm5, %v4942_v15  ;;  %4009 = vmatmul.mubr.msk.f32.vlgmr.msra.gmra.mxu1 %vm632_vm5, %v4942_v15 }
 0x248   :  { %1434 = vmatpush1.msra.mxu0 %v4544_v13  ;;  %4012 = vmatpush3.msra.mxu1 %v4632_v40 }
 0x249   :  { %1435 = vmatprep.subr.mxu0 %v4558_v18  ;;  %4013 = vmatprep.subr.mxu1 %v5595_v58 }
 0x24a   :  { %1436 = vmatpush1.msra.mxu0 %v4570_v22  ;;  %4014 = vmatpush3.msra.mxu1 %v4636_v41 }
 0x24b   :  { %1437 = vmatprep.subr.mxu0 %v4585_v27  ;;  %4015 = vmatprep.subr.mxu1 %v5595_v58 }
 0x24c   :  { %1438 = vmatpush1.msra.mxu0 %v4593_v31  ;;  %4016 = vmatpush3.msra.mxu1 %v4643_v42 }
 0x24d   :  { %1439 = vmatprep.subr.mxu0 %v4600_v33  ;;  %4017 = vmatprep.subr.mxu1 %v5595_v58 }
 0x24e   :  { %1440 = vmatpush1.msra.mxu0 %v4607_v35  ;;  %1473 = vmatprep.mubr.f32.mxu0 %v5595_v58 }
 0x24f   :  { %4018 = vmatpush3.msra.mxu1 %v4648_v43  ;;  %4019 = vmatprep.mubr.msk.f32.mxu1 %vm4439_vm4, %v5595_v58 }
 0x250   :  { %3816 = vmatmul.mubr.msk.f32.vlgmr.msra.gmra.mxu0 %vm632_vm5, %v4942_v15  ;;  %4020 = vmatmul.mubr.msk.f32.vlgmr.msra.gmra.mxu1 %vm632_vm5, %v4942_v15 }
 0x251   :  { %1611 = vmatprep.subr.mxu0 %v4666_v44  ;;  %4022 = vmatprep.subr.mxu1 %v5595_v58 }
 0x252   :  { %1612 = vmatpush1.msra.mxu0 %v4668_v45  ;;  %4023 = vmatpush3.msra.mxu1 %v4672_v46 }
 0x253   :  { %1613 = vmatprep.subr.mxu0 %v4674_v47  ;;  %4024 = vmatprep.subr.mxu1 %v5595_v58 }
 0x254   :  { %1614 = vmatpush1.msra.mxu0 %v4678_v48  ;;  %4025 = vmatpush3.msra.mxu1 %v4681_v49 }
 0x255   :  { %4159 = vset.pattern.permute.xlu1 %v5605_v59  ;;  %1615 = vmatprep.subr.mxu0 %v4684_v50 }
 0x256   :  { %4026 = vmatprep.subr.mxu1 %v5595_v58  ;;  %1616 = vmatpush1.msra.mxu0 %v4688_v51 }
 0x257   :  { %4027 = vmatpush3.msra.mxu1 %v4691_v52  ;;  %1617 = vmatprep.subr.mxu0 %v4694_v53 }
 0x258   :  { %4028 = vmatprep.subr.mxu1 %v5595_v58  ;;  %1618 = vmatpush1.msra.mxu0 %v4696_v54 }
 0x259   :  { %4029 = vmatpush3.msra.mxu1 %v4699_v55  ;;  %1651 = vmatprep.mubr.f32.mxu0 %v5595_v58 }
 0x25a   :  { %4030 = vmatprep.mubr.msk.f32.mxu1 %vm4439_vm4, %v5595_v58  ;;  %1828 = vmatprep.subr.mxu0 %v4526_v7 }
 0x25b   :  { %4033 = vmatprep.subr.mxu1 %v5595_v58 }
 0x2bb   :  { %v1336_v0 = vpop.permute.xlu0 %1335  ;;  %v1353_v34 = vpop.permute.xlu1 %1352 }
 0x2bc   :  { %v1338_v14 = vmul.f32 %v1336_v0, %v4855_v62  ;;  %v1355_v5 = vmul.f32 %v1353_v34, %v4864_v21  ;;  %v1339_v8 = vmul.f32 %v1336_v0, %v5606_v56  ;;  %v1356_v60 = vmul.f32 %v1353_v34, %v5608_v57 }
 0x2c0   :  { %v1343_v4 = vpop.permute.xlu0 %1342  ;;  %v1363_v38 = vpop.permute.xlu1 %1362 }
 0x2c1   :  { %v1345_v30 = vmul.f32 %v1343_v4, %v4858_v11  ;;  %v1346_v19 = vmul.f32 %v1343_v4, %v4875_v39  ;;  %v1365_v7 = vmul.f32 %v1363_v38, %v5607_v61  ;;  %v1366_v39 = vmul.f32 %v1363_v38, %v4891_v16  ;;  %v5610_v61 = vld [vmem:[#allocation26_spill] sm:$0xff] }
 0x2c3   :  { %v1348_v12 = vadd.f32 %v1345_v30, %v1338_v14  ;;  %v1349_v20 = vadd.f32 %v1346_v19, %v1339_v8 }
 0x2c5   :  { %v1358_v28 = vadd.f32 %v1355_v5, %v1348_v12  ;;  %v1359_v25 = vadd.f32 %v1356_v60, %v1349_v20  ;;  %v1347_v20 = vmul.f32 %v1343_v4, %v4908_v3 }
 0x2c7   :  { %v1368_v32 = vadd.f32 %v1365_v7, %v1358_v28  ;;  %v1369_v12 = vadd.f32 %v1366_v39, %v1359_v25  ;;  %v5611_v7 = vld [vmem:[#allocation27_spill] sm:$0xff] }
 0x307   :  { %v1258_v23 = vpop.f32.mrf.mxu0  ;;  %v1329_v17 = vpop.f32.mrf.mxu1 }
 0x308   :  { %v1259_v29 = vadd.f32 %v1258_v23, %v5609_v63 }
 0x309   :  { %v1260_v36 = vpop.f32.mrf.mxu0  ;;  %v4010_v30 = vpop.f32.mrf.mxu1 }
 0x30a   :  { %v1371_v14 = vadd.f32 %v1368_v32, %v1259_v29  ;;  %v1261_v56 = vadd.f32 %v1260_v36, %v4898_v2  ;;  %v1357_v36 = vmul.f32 %v1353_v34, %v4913_v9 }
 0x30c   :  { %v3814_v21 = vmul.f32 -1.442695, %v1371_v14  ;;  %v1378_v5 = vadd.f32 %v1369_v12, %v1261_v56 }
 0x30e   :  { %4214 = vpow2.f32 %v3814_v21  ;;  %v3815_v23 = vmul.f32 -1.442695, %v1378_v5  ;;  %v1340_v21 = vmul.f32 %v1336_v0, %v4905_v24  ;;  %v1330_v0 = vadd.f32 %v1329_v17, %v4925_v26 }
 0x310   :  { %v1475_v19 = vpop.f32.mrf.mxu0  ;;  %v1546_v8 = vpop.f32.mrf.mxu1  ;;  %v1350_v39 = vadd.f32 %v1347_v20, %v1340_v21 }
 0x311   :  { %v1550_v62 = vadd.f32 %v1475_v19, %v5610_v61  ;;  %v1564_v34 = vadd.f32 %v4793_v6, %v1546_v8 }
 0x312   :  { %v4021_v57 = vpop.f32.mrf.mxu1  ;;  %v1477_v28 = vpop.f32.mrf.mxu0 }
 0x313   :  { %v3818_v11 = vmul.f32 -1.442695, %v1550_v62  ;;  %v1557_v32 = vadd.f32 %v1477_v28, %v5611_v7  ;;  %v1360_v62 = vadd.f32 %v1357_v36, %v1350_v39 }
 0x315   :  { %4216 = vpow2.f32 %v3818_v11  ;;  %v3819_v29 = vmul.f32 -1.442695, %v1557_v32  ;;  %v1367_v11 = vmul.f32 %v1363_v38, %v4918_v1  ;;  %v5612_v38 = vld [vmem:[#allocation20_spill] sm:$0xff] }
 0x316   :  { %4218 = vpow2.f32 %v3815_v23 }
 0x317   :  { %v1370_v30 = vadd.f32 %v1367_v11, %v1360_v62  ;;  %v5613_v11 = vmov 3  }
 0x319   :  { %v1385_v4 = vadd.f32 %v4922_v10, %v1370_v30 }
 0x31b   :  { %v4215_v60 = vpop.eup %4214 }
 0x31c   :  { %v1375_v25 = vadd.f32 1.0, %v4215_v60 }
 0x31e   :  { %4220 = vrcp.f32 %v1375_v25 }
 0x31f   :  { %4222 = vpow2.f32 %v3819_v29 }
 0x322   :  { %v4217_v56 = vpop.eup %4216 }
 0x323   :  { %v1554_v61 = vadd.f32 1.0, %v4217_v56  ;;  %v4219_v57 = vpop.eup %4218 }
 0x324   :  { %v1382_v14 = vadd.f32 1.0, %v4219_v57 }
 0x325   :  { %4224 = vrcp.f32 %v1554_v61 }
 0x326   :  { %4226 = vrcp.f32 %v1382_v14 }
 0x32b   :  { %v4221_v12 = vpop.eup %4220 }
 0x32c   :  { %v4223_v5 = vpop.eup %4222  ;;  %v1386_v19 = vmul.f32 %v4221_v12, %v1385_v4 }
 0x32d   :  { %v1561_v28 = vadd.f32 1.0, %v4223_v5 }
 0x32e   :  { %v1387_v23 = vadd.f32 %v1386_v19, %v1330_v0 }
 0x330   :  { %4228 = vtanh.f32 %v1387_v23 }
 0x331   :  { %4230 = vrcp.f32 %v1561_v28 }
 0x332   :  { %v4225_v7 = vpop.eup %4224 }
 0x333   :  { %v1565_v32 = vmul.f32 %v4225_v7, %v1564_v34  ;;  %v4227_v60 = vpop.eup %4226 }
 0x334   :  { %v1389_v29 = vsub.f32 1.0, %v4227_v60  ;;  %v1391_v39 = vmul.f32 %v4227_v60, %v4931_v37  ;;  %v5614_v37 = vmov 2  }
 0x335   :  { %v1566_v20 = vadd.f32 %v1565_v32, %v5612_v38 }
 0x337   :  { %4232 = vtanh.f32 %v1566_v20  ;;  %v5623_v20 = vld [vmem:[#allocation28_spill] sm:$0xff] }
 0x33d   :  { %v4229_v21 = vpop.eup %4228 }
 0x33e   :  { %v1390_v25 = vmul.f32 %v4229_v21, %v1389_v29  ;;  %v4231_v17 = vpop.eup %4230 }
 0x33f   :  { %v1568_v8 = vsub.f32 1.0, %v4231_v17  ;;  %v1570_v61 = vmul.f32 %v4231_v17, %v4942_v15  ;;  %v5624_v17 = vld [vmem:[#allocation29_spill] sm:$0xff] }
 0x340   :  { %v5014_v36 = vadd.f32 %v1391_v39, %v1390_v25 }
 0x342   :  { %1737 = vperm.xlu0 %4156, %v5014_v36   ;;  %1393 = vst [vmem:[%s5534_s10 + $0x8] sm:$0xff] %v5014_v36  ;;  %1730 = vperm.xlu1 %4159, %v5014_v36  }
 0x344   :  { %v4233_v56 = vpop.eup %4232 }
 0x345   :  { %v1569_v62 = vmul.f32 %v4233_v56, %v1568_v8 }
 0x346   :  { %4161 = vset.pattern.permute.xlu0 %v5613_v11  ;;  %4160 = vset.pattern.permute.xlu1 %v5614_v37 }
 0x347   :  { %v5025_v57 = vadd.f32 %v1570_v61, %v1569_v62  ;;  %1757 = vperm.xlu0 %4161, %v5014_v36   ;;  %1747 = vperm.xlu1 %4160, %v5014_v36  }
 0x349   :  { %3820 = vmatmul.mubr.msk.f32.vlgmr.msra.gmra.mxu0 %vm632_vm5, %v5025_v57  ;;  %4031 = vmatmul.mubr.msk.f32.vlgmr.msra.gmra.mxu1 %vm632_vm5, %v5025_v57 }
 0x34a   :  { %1829 = vmatpush1.msra.mxu0 %v4544_v13  ;;  %4034 = vmatpush3.msra.mxu1 %v4632_v40  ;;  %v5076_v13 = vld [vmem:[#allocation8 + $0x50] sm:$0xff] }
 0x34b   :  { %1830 = vmatprep.subr.mxu0 %v4558_v18  ;;  %4035 = vmatprep.subr.mxu1 %v5595_v58  ;;  %5615 = vst [vmem:[#allocation44_spill] sm:$0xff] %v5076_v13 }
 0x34c   :  { %1831 = vmatpush1.msra.mxu0 %v4570_v22  ;;  %4036 = vmatpush3.msra.mxu1 %v4636_v41  ;;  %v5618_v41 = vld [vmem:[#allocation39_spill] sm:$0xff] }
 0x34d   :  { %1832 = vmatprep.subr.mxu0 %v4585_v27  ;;  %4037 = vmatprep.subr.mxu1 %v5595_v58 }
 0x34e   :  { %1833 = vmatpush1.msra.mxu0 %v4593_v31  ;;  %4038 = vmatpush3.msra.mxu1 %v4643_v42  ;;  %v5616_v31 = vld [vmem:[#allocation38_spill] sm:$0xff] }
 0x34f   :  { %1834 = vmatprep.subr.mxu0 %v4600_v33  ;;  %4039 = vmatprep.subr.mxu1 %v5595_v58 }
 0x350   :  { %1835 = vmatpush1.msra.mxu0 %v4607_v35  ;;  %1868 = vmatprep.mubr.f32.mxu0 %v5595_v58  ;;  %v5617_v35 = vld [vmem:[#allocation37_spill] sm:$0xff] }
 0x351   :  { %4040 = vmatpush3.msra.mxu1 %v4648_v43  ;;  %4041 = vmatprep.mubr.msk.f32.mxu1 %vm4439_vm4, %v5595_v58 }
 0x352   :  { %3824 = vmatmul.mubr.msk.f32.vlgmr.msra.gmra.mxu0 %vm632_vm5, %v5025_v57  ;;  %4042 = vmatmul.mubr.msk.f32.vlgmr.msra.gmra.mxu1 %vm632_vm5, %v5025_v57 }
 0x353   :  { %2006 = vmatprep.subr.mxu0 %v4666_v44  ;;  %4044 = vmatprep.subr.mxu1 %v5595_v58 }
 0x354   :  { %2007 = vmatpush1.msra.mxu0 %v4668_v45  ;;  %4045 = vmatpush3.msra.mxu1 %v4672_v46  ;;  %v5619_v45 = vld [vmem:[#allocation41_spill] sm:$0xff] }
 0x355   :  { %2008 = vmatprep.subr.mxu0 %v4674_v47  ;;  %4046 = vmatprep.subr.mxu1 %v5595_v58  ;;  %v5620_v47 = vld [vmem:[#allocation40_spill] sm:$0xff] }
 0x356   :  { %2009 = vmatpush1.msra.mxu0 %v4678_v48  ;;  %4047 = vmatpush3.msra.mxu1 %v4681_v49 }
 0x357   :  { %4164 = vset.pattern.permute.xlu0 %v5614_v37  ;;  %4162 = vset.pattern.permute.xlu1 %v5605_v59 }
 0x358   :  { %2010 = vmatprep.subr.mxu0 %v4684_v50  ;;  %4048 = vmatprep.subr.mxu1 %v5595_v58  ;;  %v5621_v50 = vld [vmem:[#allocation42_spill] sm:$0xff] }
 0x359   :  { %2011 = vmatpush1.msra.mxu0 %v4688_v51  ;;  %4049 = vmatpush3.msra.mxu1 %v4691_v52  ;;  %v5622_v52 = vld [vmem:[#allocation43_spill] sm:$0xff] }
 0x35a   :  { %2012 = vmatprep.subr.mxu0 %v4694_v53  ;;  %4050 = vmatprep.subr.mxu1 %v5595_v58 }
 0x35b   :  { %2013 = vmatpush1.msra.mxu0 %v4696_v54  ;;  %4051 = vmatpush3.msra.mxu1 %v4699_v55 }
 0x35c   :  { %2046 = vmatprep.mubr.f32.mxu0 %v5595_v58  ;;  %4052 = vmatprep.mubr.msk.f32.mxu1 %vm4439_vm4, %v5595_v58 }
 0x35d   :  { %4055 = vmatprep.subr.mxu1 %v5595_v58  ;;  %2223 = vmatprep.subr.mxu0 %v5076_v13 }
 0x3bd   :  { %v1731_v18 = vpop.permute.xlu1 %1730  ;;  %v1738_v22 = vpop.permute.xlu0 %1737 }
 0x3be   :  { %v1740_v33 = vmul.f32 %v1738_v22, %v5616_v31  ;;  %v1733_v40 = vmul.f32 %v1731_v18, %v5617_v35  ;;  %v1741_v46 = vmul.f32 %v1738_v22, %v5619_v45  ;;  %v1734_v48 = vmul.f32 %v1731_v18, %v5620_v47 }
 0x3bf   :  { %v1742_v61 = vmul.f32 %v1738_v22, %v4908_v3 }
 0x3c0   :  { %v1743_v43 = vadd.f32 %v1740_v33, %v1733_v40  ;;  %v1744_v15 = vadd.f32 %v1741_v46, %v1734_v48  ;;  %v1735_v33 = vmul.f32 %v1731_v18, %v4905_v24 }
 0x3c2   :  { %v1748_v27 = vpop.permute.xlu1 %1747  ;;  %v1758_v44 = vpop.permute.xlu0 %1757 }
 0x3c3   :  { %v1750_v42 = vmul.f32 %v1748_v27, %v5618_v41  ;;  %v1760_v51 = vmul.f32 %v1758_v44, %v5621_v50  ;;  %v1751_v53 = vmul.f32 %v1748_v27, %v5622_v52  ;;  %v1761_v19 = vmul.f32 %v1758_v44, %v4891_v16 }
 0x3c5   :  { %v1753_v49 = vadd.f32 %v1750_v42, %v1743_v43  ;;  %v1754_v5 = vadd.f32 %v1751_v53, %v1744_v15  ;;  %v1752_v42 = vmul.f32 %v1748_v27, %v4913_v9  ;;  %v1745_v43 = vadd.f32 %v1742_v61, %v1735_v33  ;;  %v5134_v61 = vld [vmem:[#allocation8 + $0x18] sm:$0xff]  ;;  %v5136_v33 = vld [vmem:[#allocation8 + $0x28] sm:$0xff] }
 0x3c7   :  { %v1763_v14 = vadd.f32 %v1760_v51, %v1753_v49  ;;  %v1764_v34 = vadd.f32 %v1761_v19, %v1754_v5  ;;  %v1755_v48 = vadd.f32 %v1752_v42, %v1745_v43  ;;  %v1762_v51 = vmul.f32 %v1758_v44, %v4918_v1  ;;  %v5625_v44 = vld [vmem:[#allocation19_spill] sm:$0xff]  ;;  %v5150_v43 = vld [vmem:[#allocation8 + $0x10] sm:$0xff] }
 0x3c8   :  { %v5146_v42 = vld [vmem:[#allocation8] sm:$0xff] }
 0x409   :  { %v1653_v54 = vpop.f32.mrf.mxu0  ;;  %v1724_v55 = vpop.f32.mrf.mxu1 }
 0x40a   :  { %v1654_v30 = vadd.f32 %v1653_v54, %v5609_v63  ;;  %v1765_v54 = vadd.f32 %v1762_v51, %v1755_v48  ;;  %v1725_v18 = vadd.f32 %v1724_v55, %v4925_v26  ;;  %v5170_v48 = vld [vmem:[#allocation10 + $0x48] sm:$0xff]  ;;  %v5176_v51 = vld [vmem:[#allocation10 + $0x38] sm:$0xff] }
 0x40b   :  { %v1655_v4 = vpop.f32.mrf.mxu0  ;;  %v4032_v12 = vpop.f32.mrf.mxu1 }
 0x40c   :  { %v1766_v0 = vadd.f32 %v1763_v14, %v1654_v30  ;;  %v1656_v28 = vadd.f32 %v1655_v4, %v4898_v2  ;;  %v1780_v30 = vadd.f32 %v4922_v10, %v1765_v54  ;;  %v5180_v54 = vld [vmem:[#allocation10 + $0x40] sm:$0xff] }
 0x40e   :  { %v3822_v23 = vmul.f32 -1.442695, %v1766_v0  ;;  %v1773_v7 = vadd.f32 %v1764_v34, %v1656_v28 }
 0x410   :  { %4234 = vpow2.f32 %v3822_v23  ;;  %v3823_v25 = vmul.f32 -1.442695, %v1773_v7 }
 0x412   :  { %v1870_v32 = vpop.f32.mrf.mxu0  ;;  %v1941_v38 = vpop.f32.mrf.mxu1 }
 0x413   :  { %v1945_v60 = vadd.f32 %v1870_v32, %v5623_v20  ;;  %v1959_v5 = vadd.f32 %v4793_v6, %v1941_v38 }
 0x414   :  { %v4043_v29 = vpop.f32.mrf.mxu1  ;;  %v1872_v39 = vpop.f32.mrf.mxu0 }
 0x415   :  { %v3826_v21 = vmul.f32 -1.442695, %v1945_v60  ;;  %v1952_v8 = vadd.f32 %v1872_v39, %v5624_v17  ;;  %v5113_v39 = vld [vmem:[#allocation8 + $0x48] sm:$0xff]  ;;  %v5115_v17 = vld [vmem:[#allocation8 + $0x58] sm:$0xff] }
 0x417   :  { %4236 = vpow2.f32 %v3826_v21  ;;  %v3827_v62 = vmul.f32 -1.442695, %v1952_v8  ;;  %v5118_v8 = vld [vmem:[#allocation8 + $0x38] sm:$0xff] }
 0x418   :  { %4238 = vpow2.f32 %v3823_v25  ;;  %v5626_v25 = vmov 1  }
 0x41d   :  { %v4235_v56 = vpop.eup %4234 }
 0x41e   :  { %v1770_v40 = vadd.f32 1.0, %v4235_v56  ;;  %v5126_v56 = vld [vmem:[#allocation8 + $0x40] sm:$0xff] }
 0x420   :  { %4240 = vrcp.f32 %v1770_v40  ;;  %v5140_v40 = vld [vmem:[#allocation8 + $0x8] sm:$0xff] }
 0x421   :  { %4242 = vpow2.f32 %v3827_v62  ;;  %v5130_v62 = vld [vmem:[#allocation8 + $0x20] sm:$0xff] }
 0x424   :  { %v4237_v46 = vpop.eup %4236 }
 0x425   :  { %v1949_v49 = vadd.f32 1.0, %v4237_v46  ;;  %v4239_v53 = vpop.eup %4238  ;;  %v5168_v46 = vld [vmem:[#allocation10 + $0x50] sm:$0xff] }
 0x426   :  { %v1777_v15 = vadd.f32 1.0, %v4239_v53  ;;  %v5178_v53 = vld [vmem:[#allocation10 + $0x30] sm:$0xff] }
 0x427   :  { %4244 = vrcp.f32 %v1949_v49  ;;  %v5172_v49 = vld [vmem:[#allocation10 + $0x58] sm:$0xff] }
 0x428   :  { %4246 = vrcp.f32 %v1777_v15  ;;  %v5184_v15 = vld [vmem:[#allocation10 + $0x20] sm:$0xff] }
 0x42d   :  { %v4241_v22 = vpop.eup %4240 }
 0x42e   :  { %v4243_v14 = vpop.eup %4242  ;;  %v1781_v4 = vmul.f32 %v4241_v22, %v1780_v30  ;;  %v5191_v30 = vld [vmem:[#allocation10 + $0x18] sm:$0xff]  ;;  %v5193_v22 = vld [vmem:[#allocation10 + $0x28] sm:$0xff] }
 0x42f   :  { %v1956_v12 = vadd.f32 1.0, %v4243_v14  ;;  %v5195_v14 = vld [vmem:[#allocation10 + $0x8] sm:$0xff] }
 0x430   :  { %v1782_v27 = vadd.f32 %v1781_v4, %v1725_v18  ;;  %v5199_v18 = vld [vmem:[#allocation10] sm:$0xff]  ;;  %v5201_v4 = vld [vmem:[#allocation10 + $0x10] sm:$0xff] }
 0x431   :  { %5627 = vst [vmem:[#allocation26_spill] sm:$0xff] %v5199_v18  ;;  %5628 = vst [vmem:[#allocation27_spill] sm:$0xff] %v5201_v4 }
 0x432   :  { %4248 = vtanh.f32 %v1782_v27 }
 0x433   :  { %4250 = vrcp.f32 %v1956_v12 }
 0x434   :  { %v4245_v0 = vpop.eup %4244 }
 0x435   :  { %v1960_v19 = vmul.f32 %v4245_v0, %v1959_v5  ;;  %v4247_v28 = vpop.eup %4246 }
 0x436   :  { %v1784_v34 = vsub.f32 1.0, %v4247_v28  ;;  %v1786_v20 = vmul.f32 %v4247_v28, %v5014_v36 }
 0x437   :  { %v1961_v23 = vadd.f32 %v1960_v19, %v5625_v44 }
 0x439   :  { %4252 = vtanh.f32 %v1961_v23 }
 0x43f   :  { %v4249_v7 = vpop.eup %4248 }
 0x440   :  { %v1785_v32 = vmul.f32 %v4249_v7, %v1784_v34  ;;  %v4251_v55 = vpop.eup %4250 }
 0x441   :  { %v1963_v6 = vsub.f32 1.0, %v4251_v55  ;;  %v1965_v21 = vmul.f32 %v4251_v55, %v5025_v57  ;;  %v5124_v57 = vld [vmem:[#allocation8 + $0x30] sm:$0xff] }
 0x442   :  { %v5100_v60 = vadd.f32 %v1786_v20, %v1785_v32 }
 0x444   :  { %2142 = vperm.xlu0 %4164, %v5100_v60   ;;  %1788 = vst [vmem:[%s5534_s10 + $0x10] sm:$0xff] %v5100_v60  ;;  %2125 = vperm.xlu1 %4162, %v5100_v60  }
 0x446   :  { %v4253_v38 = vpop.eup %4252 }
 0x447   :  { %v1964_v29 = vmul.f32 %v4253_v38, %v1963_v6 }
 0x448   :  { %4163 = vset.pattern.permute.xlu1 %v5626_v25  ;;  %4167 = vset.pattern.permute.xlu0 %v5626_v25 }
 0x449   :  { %v5111_v36 = vadd.f32 %v1965_v21, %v1964_v29  ;;  %2132 = vperm.xlu1 %4163, %v5100_v60  }
 0x44b   :  { %3828 = vmatmul.mubr.msk.f32.vlgmr.msra.gmra.mxu0 %vm632_vm5, %v5111_v36  ;;  %4053 = vmatmul.mubr.msk.f32.vlgmr.msra.gmra.mxu1 %vm632_vm5, %v5111_v36 }
 0x44c   :  { %2224 = vmatpush1.msra.mxu0 %v5113_v39  ;;  %4056 = vmatpush3.msra.mxu1 %v5115_v17 }
 0x44d   :  { %2225 = vmatprep.subr.mxu0 %v5118_v8  ;;  %4057 = vmatprep.subr.mxu1 %v5595_v58 }
 0x44e   :  { %2226 = vmatpush1.msra.mxu0 %v5124_v57  ;;  %4058 = vmatpush3.msra.mxu1 %v5126_v56 }
 0x44f   :  { %2227 = vmatprep.subr.mxu0 %v5130_v62  ;;  %4059 = vmatprep.subr.mxu1 %v5595_v58 }
 0x450   :  { %2228 = vmatpush1.msra.mxu0 %v5134_v61  ;;  %4060 = vmatpush3.msra.mxu1 %v5136_v33 }
 0x451   :  { %4165 = vset.pattern.permute.xlu1 %v5613_v11  ;;  %2229 = vmatprep.subr.mxu0 %v5140_v40 }
 0x452   :  { %4061 = vmatprep.subr.mxu1 %v5595_v58  ;;  %2152 = vperm.xlu1 %4165, %v5100_v60  }
 0x453   :  { %2230 = vmatpush1.msra.mxu0 %v5146_v42  ;;  %2263 = vmatprep.mubr.f32.mxu0 %v5595_v58 }
 0x454   :  { %4062 = vmatpush3.msra.mxu1 %v5150_v43  ;;  %4063 = vmatprep.mubr.msk.f32.mxu1 %vm4439_vm4, %v5595_v58 }
 0x455   :  { %3832 = vmatmul.mubr.msk.f32.vlgmr.msra.gmra.mxu0 %vm632_vm5, %v5111_v36  ;;  %4064 = vmatmul.mubr.msk.f32.vlgmr.msra.gmra.mxu1 %vm632_vm5, %v5111_v36 }
 0x456   :  { %4066 = vmatprep.subr.mxu1 %v5595_v58  ;;  %4166 = vset.pattern.permute.xlu1 %v5605_v59 }
 0x457   :  { %2441 = vmatprep.mubr.f32.mxu0 %v5595_v58  ;;  %4074 = vmatprep.mubr.msk.f32.mxu1 %vm4439_vm4, %v5595_v58 }
 0x458   :  { %2401 = vmatprep.subr.mxu0 %v5168_v46  ;;  %4067 = vmatpush3.msra.mxu1 %v5172_v49 }
 0x459   :  { %2402 = vmatpush1.msra.mxu0 %v5170_v48  ;;  %4068 = vmatprep.subr.mxu1 %v5595_v58 }
 0x45a   :  { %2403 = vmatprep.subr.mxu0 %v5176_v51  ;;  %4069 = vmatpush3.msra.mxu1 %v5180_v54 }
 0x45b   :  { %2404 = vmatpush1.msra.mxu0 %v5178_v53  ;;  %4070 = vmatprep.subr.mxu1 %v5595_v58 }
 0x45c   :  { %2405 = vmatprep.subr.mxu0 %v5184_v15  ;;  %4071 = vmatpush3.msra.mxu1 %v5193_v22 }
 0x45d   :  { %2406 = vmatpush1.msra.mxu0 %v5191_v30  ;;  %4072 = vmatprep.subr.mxu1 %v5595_v58 }
 0x45e   :  { %2407 = vmatprep.subr.mxu0 %v5195_v14  ;;  %4073 = vmatpush3.msra.mxu1 %v5201_v4 }
 0x45f   :  { %2408 = vmatpush1.msra.mxu0 %v5199_v18  ;;  %4077 = vmatprep.subr.mxu1 %v5595_v58 }
 0x460   :  { %2618 = vmatprep.subr.mxu0 %v5076_v13 }
 0x4bf   :  { %v2126_v27 = vpop.permute.xlu1 %2125  ;;  %v2143_v19 = vpop.permute.xlu0 %2142 }
 0x4c0   :  { %v2128_v0 = vmul.f32 %v2126_v27, %v5617_v35  ;;  %v2145_v28 = vmul.f32 %v2143_v19, %v5618_v41  ;;  %v2129_v7 = vmul.f32 %v2126_v27, %v5620_v47  ;;  %v2146_v29 = vmul.f32 %v2143_v19, %v5622_v52 }
 0x4c4   :  { %v2133_v12 = vpop.permute.xlu1 %2132 }
 0x4c5   :  { %v2135_v5 = vmul.f32 %v2133_v12, %v5616_v31  ;;  %v2136_v34 = vmul.f32 %v2133_v12, %v5619_v45 }
 0x4c7   :  { %v2138_v44 = vadd.f32 %v2135_v5, %v2128_v0  ;;  %v2139_v55 = vadd.f32 %v2136_v34, %v2129_v7  ;;  %v5629_v7 = vld [vmem:[#allocation30_spill] sm:$0xff] }
 0x4c9   :  { %v2148_v20 = vadd.f32 %v2145_v28, %v2138_v44  ;;  %v2149_v13 = vadd.f32 %v2146_v29, %v2139_v55 }
 0x4cd   :  { %v2153_v23 = vpop.permute.xlu1 %2152 }
 0x4ce   :  { %v2155_v32 = vmul.f32 %v2153_v23, %v5621_v50  ;;  %v2156_v0 = vmul.f32 %v2153_v23, %v4891_v16 }
 0x4d0   :  { %v2158_v35 = vadd.f32 %v2155_v32, %v2148_v20  ;;  %v2159_v50 = vadd.f32 %v2156_v0, %v2149_v13  ;;  %v5630_v20 = vld [vmem:[#allocation31_spill] sm:$0xff] }
 0x50b   :  { %v2048_v6 = vpop.f32.mrf.mxu0  ;;  %v2119_v38 = vpop.f32.mrf.mxu1 }
 0x50c   :  { %v2049_v21 = vadd.f32 %v2048_v6, %v5609_v63 }
 0x50d   :  { %v2050_v31 = vpop.f32.mrf.mxu0  ;;  %v4054_v5 = vpop.f32.mrf.mxu1 }
 0x50e   :  { %v2161_v41 = vadd.f32 %v2158_v35, %v2049_v21  ;;  %v2051_v47 = vadd.f32 %v2050_v31, %v4898_v2  ;;  %v2137_v35 = vmul.f32 %v2133_v12, %v4908_v3  ;;  %v2130_v31 = vmul.f32 %v2126_v27, %v4905_v24 }
 0x50f   :  { %v2120_v27 = vadd.f32 %v2119_v38, %v4925_v26 }
 0x510   :  { %v3830_v45 = vmul.f32 -1.442695, %v2161_v41  ;;  %v2168_v44 = vadd.f32 %v2159_v50, %v2051_v47  ;;  %v2140_v47 = vadd.f32 %v2137_v35, %v2130_v31  ;;  %v2147_v50 = vmul.f32 %v2143_v19, %v4913_v9 }
 0x512   :  { %4254 = vpow2.f32 %v3830_v45  ;;  %v3831_v18 = vmul.f32 -1.442695, %v2168_v44 }
 0x515   :  { %v2265_v28 = vpop.f32.mrf.mxu0  ;;  %v2336_v34 = vpop.f32.mrf.mxu1 }
 0x516   :  { %v2340_v4 = vadd.f32 %v2265_v28, %v5629_v7 }
 0x517   :  { %v4065_v52 = vpop.f32.mrf.mxu1  ;;  %v2267_v32 = vpop.f32.mrf.mxu0 }
 0x518   :  { %v3834_v6 = vmul.f32 -1.442695, %v2340_v4  ;;  %v2347_v5 = vadd.f32 %v2267_v32, %v5630_v20  ;;  %v2150_v52 = vadd.f32 %v2147_v50, %v2140_v47  ;;  %v2157_v4 = vmul.f32 %v2153_v23, %v4918_v1  ;;  %v5230_v23 = vld [vmem:[%s5527_s3] ss:$0 sm:$0xff] }
 0x519   :  { %v2354_v32 = vadd.f32 %v5230_v23, %v2336_v34 }
 0x51a   :  { %4256 = vpow2.f32 %v3834_v6  ;;  %v3835_v13 = vmul.f32 -1.442695, %v2347_v5  ;;  %v2160_v21 = vadd.f32 %v2157_v4, %v2150_v52 }
 0x51b   :  { %4258 = vpow2.f32 %v3831_v18 }
 0x51c   :  { %v2175_v12 = vadd.f32 %v4922_v10, %v2160_v21  ;;  %v5631_v10 = vld [vmem:[#allocation22_spill] sm:$0xff] }
 0x51f   :  { %v4255_v41 = vpop.eup %4254 }
 0x520   :  { %v2165_v45 = vadd.f32 1.0, %v4255_v41 }
 0x522   :  { %4260 = vrcp.f32 %v2165_v45 }
 0x523   :  { %4262 = vpow2.f32 %v3835_v13 }
 0x527   :  { %v4257_v55 = vpop.eup %4256 }
 0x528   :  { %v2344_v29 = vadd.f32 1.0, %v4257_v55  ;;  %v4259_v18 = vpop.eup %4258 }
 0x529   :  { %v2172_v0 = vadd.f32 1.0, %v4259_v18  ;;  %v5634_v18 = vld [vmem:[#allocation44_spill] sm:$0xff] }
 0x52a   :  { %4264 = vrcp.f32 %v2344_v29  ;;  %v5633_v29 = vld [vmem:[#allocation27_spill] sm:$0xff] }
 0x52b   :  { %4266 = vrcp.f32 %v2172_v0 }
 0x52f   :  { %v4261_v44 = vpop.eup %4260 }
 0x530   :  { %v2176_v28 = vmul.f32 %v4261_v44, %v2175_v12  ;;  %v4263_v7 = vpop.eup %4262  ;;  %v5635_v44 = vld [vmem:[#allocation38_spill] sm:$0xff] }
 0x531   :  { %v2351_v19 = vadd.f32 1.0, %v4263_v7 }
 0x532   :  { %v2177_v6 = vadd.f32 %v2176_v28, %v2120_v27  ;;  %v5636_v28 = vld [vmem:[#allocation37_spill] sm:$0xff] }
 0x534   :  { %4268 = vtanh.f32 %v2177_v6 }
 0x535   :  { %4270 = vrcp.f32 %v2351_v19  ;;  %v5637_v19 = vld [vmem:[#allocation39_spill] sm:$0xff] }
 0x537   :  { %v4265_v20 = vpop.eup %4264 }
 0x538   :  { %v2355_v5 = vmul.f32 %v4265_v20, %v2354_v32  ;;  %v4267_v38 = vpop.eup %4266 }
 0x539   :  { %v2179_v41 = vsub.f32 1.0, %v4267_v38  ;;  %v2181_v13 = vmul.f32 %v4267_v38, %v5100_v60 }
 0x53a   :  { %v2356_v35 = vadd.f32 %v2355_v5, %v5631_v10  ;;  %v5638_v5 = vld [vmem:[#allocation42_spill] sm:$0xff] }
 0x53c   :  { %4272 = vtanh.f32 %v2356_v35  ;;  %v5639_v35 = vld [vmem:[#allocation41_spill] sm:$0xff] }
 0x541   :  { %v4269_v31 = vpop.eup %4268 }
 0x542   :  { %v2180_v45 = vmul.f32 %v4269_v31, %v2179_v41  ;;  %v4271_v50 = vpop.eup %4270  ;;  %v5640_v41 = vld [vmem:[#allocation40_spill] sm:$0xff] }
 0x543   :  { %v2358_v34 = vsub.f32 1.0, %v4271_v50  ;;  %v2360_v55 = vmul.f32 %v4271_v50, %v5111_v36  ;;  %v5632_v36 = vld [vmem:[#allocation26_spill] sm:$0xff] }
 0x544   :  { %v5235_v47 = vadd.f32 %v2181_v13, %v2180_v45 }
 0x546   :  { %2527 = vperm.xlu0 %4167, %v5235_v47   ;;  %2183 = vst [vmem:[%s5534_s10 + $0x18] sm:$0xff] %v5235_v47  ;;  %2520 = vperm.xlu1 %4166, %v5235_v47  }
 0x549   :  { %v4273_v52 = vpop.eup %4272 }
 0x54a   :  { %4168 = vset.pattern.permute.xlu1 %v5614_v37  ;;  %v2359_v4 = vmul.f32 %v4273_v52, %v2358_v34  ;;  %4170 = vset.pattern.permute.xlu0 %v5605_v59  ;;  %v5641_v34 = vld [vmem:[#allocation43_spill] sm:$0xff] }
 0x54b   :  { %2537 = vperm.xlu1 %4168, %v5235_v47  }
 0x54c   :  { %v5247_v60 = vadd.f32 %v2360_v55, %v2359_v4 }
 0x54e   :  { %3836 = vmatmul.mubr.msk.f32.vlgmr.msra.gmra.mxu0 %vm632_vm5, %v5247_v60  ;;  %4075 = vmatmul.mubr.msk.f32.vlgmr.msra.gmra.mxu1 %vm632_vm5, %v5247_v60 }
 0x54f   :  { %2619 = vmatpush1.msra.mxu0 %v5113_v39  ;;  %4078 = vmatpush3.msra.mxu1 %v5115_v17 }
 0x550   :  { %2620 = vmatprep.subr.mxu0 %v5118_v8  ;;  %4079 = vmatprep.subr.mxu1 %v5595_v58 }
 0x551   :  { %2621 = vmatpush1.msra.mxu0 %v5124_v57  ;;  %4080 = vmatpush3.msra.mxu1 %v5126_v56 }
 0x552   :  { %2622 = vmatprep.subr.mxu0 %v5130_v62  ;;  %4081 = vmatprep.subr.mxu1 %v5595_v58 }
 0x553   :  { %2623 = vmatpush1.msra.mxu0 %v5134_v61  ;;  %4082 = vmatpush3.msra.mxu1 %v5136_v33 }
 0x554   :  { %4169 = vset.pattern.permute.xlu1 %v5613_v11  ;;  %2624 = vmatprep.subr.mxu0 %v5140_v40 }
 0x555   :  { %4083 = vmatprep.subr.mxu1 %v5595_v58  ;;  %2547 = vperm.xlu1 %4169, %v5235_v47  }
 0x556   :  { %2625 = vmatpush1.msra.mxu0 %v5146_v42  ;;  %2658 = vmatprep.mubr.f32.mxu0 %v5595_v58 }
 0x557   :  { %4084 = vmatpush3.msra.mxu1 %v5150_v43  ;;  %4085 = vmatprep.mubr.msk.f32.mxu1 %vm4439_vm4, %v5595_v58 }
 0x558   :  { %3840 = vmatmul.mubr.msk.f32.vlgmr.msra.gmra.mxu0 %vm632_vm5, %v5247_v60  ;;  %4086 = vmatmul.mubr.msk.f32.vlgmr.msra.gmra.mxu1 %vm632_vm5, %v5247_v60 }
 0x559   :  { %2796 = vmatprep.subr.mxu0 %v5168_v46  ;;  %4088 = vmatprep.subr.mxu1 %v5595_v58 }
 0x55a   :  { %2797 = vmatpush1.msra.mxu0 %v5170_v48  ;;  %4089 = vmatpush3.msra.mxu1 %v5172_v49 }
 0x55b   :  { %2798 = vmatprep.subr.mxu0 %v5176_v51  ;;  %4090 = vmatprep.subr.mxu1 %v5595_v58 }
 0x55c   :  { %2799 = vmatpush1.msra.mxu0 %v5178_v53  ;;  %4091 = vmatpush3.msra.mxu1 %v5180_v54 }
 0x55d   :  { %4171 = vset.pattern.permute.xlu1 %v5626_v25  ;;  %2800 = vmatprep.subr.mxu0 %v5184_v15 }
 0x55e   :  { %4092 = vmatprep.subr.mxu1 %v5595_v58  ;;  %2801 = vmatpush1.msra.mxu0 %v5191_v30 }
 0x55f   :  { %4093 = vmatpush3.msra.mxu1 %v5193_v22  ;;  %2802 = vmatprep.subr.mxu0 %v5195_v14 }
 0x560   :  { %4094 = vmatprep.subr.mxu1 %v5595_v58  ;;  %2803 = vmatpush1.msra.mxu0 %v5632_v36 }
 0x561   :  { %4095 = vmatpush3.msra.mxu1 %v5633_v29  ;;  %2836 = vmatprep.mubr.f32.mxu0 %v5595_v58  ;;  %v5642_v29 = vld [vmem:[#allocation32_spill] sm:$0xff] }
 0x562   :  { %4096 = vmatprep.mubr.msk.f32.mxu1 %vm4439_vm4, %v5595_v58  ;;  %3013 = vmatprep.subr.mxu0 %v5634_v18 }
 0x563   :  { %4099 = vmatprep.subr.mxu1 %v5595_v58 }
 0x5c1   :  { %v2521_v21 = vpop.permute.xlu1 %2520  ;;  %v2528_v12 = vpop.permute.xlu0 %2527 }
 0x5c2   :  { %v2530_v27 = vmul.f32 %v2528_v12, %v5635_v44  ;;  %v2523_v7 = vmul.f32 %v2521_v21, %v5636_v28  ;;  %v2531_v38 = vmul.f32 %v2528_v12, %v5639_v35  ;;  %v2524_v31 = vmul.f32 %v2521_v21, %v5640_v41 }
 0x5c4   :  { %v2533_v20 = vadd.f32 %v2530_v27, %v2523_v7  ;;  %v2534_v44 = vadd.f32 %v2531_v38, %v2524_v31 }
 0x5c6   :  { %v2538_v0 = vpop.permute.xlu1 %2537 }
 0x5c7   :  { %v2540_v32 = vmul.f32 %v2538_v0, %v5637_v19  ;;  %v2541_v52 = vmul.f32 %v2538_v0, %v5641_v34 }
 0x5c9   :  { %v2543_v45 = vadd.f32 %v2540_v32, %v2533_v20  ;;  %v2544_v7 = vadd.f32 %v2541_v52, %v2534_v44 }
 0x5d0   :  { %v2548_v6 = vpop.permute.xlu1 %2547 }
 0x5d1   :  { %v2550_v10 = vmul.f32 %v2548_v6, %v5638_v5  ;;  %v2551_v19 = vmul.f32 %v2548_v6, %v4891_v16 }
 0x5d3   :  { %v2553_v55 = vadd.f32 %v2550_v10, %v2543_v45  ;;  %v2554_v41 = vadd.f32 %v2551_v19, %v2544_v7  ;;  %v2525_v19 = vmul.f32 %v2521_v21, %v4905_v24  ;;  %v5314_v7 = vld [vmem:[#allocation13] ss:$0 sm:$0xff] }
 0x60e   :  { %v2443_v13 = vpop.f32.mrf.mxu0  ;;  %v2514_v50 = vpop.f32.mrf.mxu1 }
 0x60f   :  { %v2444_v4 = vadd.f32 %v2443_v13, %v5609_v63  ;;  %v2515_v21 = vadd.f32 %v2514_v50, %v4925_v26 }
 0x610   :  { %v2445_v25 = vpop.f32.mrf.mxu0  ;;  %v4076_v28 = vpop.f32.mrf.mxu1 }
 0x611   :  { %v2556_v27 = vadd.f32 %v2553_v55, %v2444_v4  ;;  %v2446_v35 = vadd.f32 %v2445_v25, %v4898_v2  ;;  %v5643_v28 = vld [vmem:[#allocation33_spill] sm:$0xff]  ;;  %v2532_v25 = vmul.f32 %v2528_v12, %v4908_v3 }
 0x613   :  { %v3838_v5 = vmul.f32 -1.442695, %v2556_v27  ;;  %v2563_v32 = vadd.f32 %v2554_v41, %v2446_v35 }
 0x615   :  { %4274 = vpow2.f32 %v3838_v5  ;;  %v3839_v13 = vmul.f32 -1.442695, %v2563_v32  ;;  %v2542_v5 = vmul.f32 %v2538_v0, %v4913_v9 }
 0x618   :  { %v2660_v20 = vpop.f32.mrf.mxu0  ;;  %v2731_v18 = vpop.f32.mrf.mxu1 }
 0x619   :  { %v2735_v34 = vadd.f32 %v2660_v20, %v5642_v29  ;;  %v2535_v29 = vadd.f32 %v2532_v25, %v2525_v19 }
 0x61a   :  { %v4087_v36 = vpop.f32.mrf.mxu1  ;;  %v2662_v45 = vpop.f32.mrf.mxu0 }
 0x61b   :  { %v3842_v10 = vmul.f32 -1.442695, %v2735_v34  ;;  %v2742_v38 = vadd.f32 %v2662_v45, %v5643_v28  ;;  %v2552_v36 = vmul.f32 %v2548_v6, %v4918_v1  ;;  %v2545_v41 = vadd.f32 %v2542_v5, %v2535_v29 }
 0x61d   :  { %4276 = vpow2.f32 %v3842_v10  ;;  %v3843_v52 = vmul.f32 -1.442695, %v2742_v38  ;;  %v2555_v55 = vadd.f32 %v2552_v36, %v2545_v41  ;;  %v2749_v10 = vadd.f32 %v5230_v23, %v2731_v18  ;;  %v5644_v38 = vld [vmem:[#allocation21_spill] sm:$0xff] }
 0x61e   :  { %4278 = vpow2.f32 %v3839_v13 }
 0x61f   :  { %v2570_v12 = vadd.f32 %v5314_v7, %v2555_v55 }
 0x622   :  { %v4275_v31 = vpop.eup %4274 }
 0x623   :  { %v2560_v44 = vadd.f32 1.0, %v4275_v31 }
 0x625   :  { %4280 = vrcp.f32 %v2560_v44 }
 0x626   :  { %4282 = vpow2.f32 %v3843_v52 }
 0x62a   :  { %v4277_v35 = vpop.eup %4276 }
 0x62b   :  { %v2739_v34 = vadd.f32 1.0, %v4277_v35  ;;  %v4279_v4 = vpop.eup %4278 }
 0x62c   :  { %v2567_v27 = vadd.f32 1.0, %v4279_v4  ;;  %v5647_v4 = vld [vmem:[#allocation44_spill] sm:$0xff] }
 0x62d   :  { %4284 = vrcp.f32 %v2739_v34  ;;  %v5646_v34 = vld [vmem:[#allocation27_spill] sm:$0xff] }
 0x62e   :  { %4286 = vrcp.f32 %v2567_v27 }
 0x632   :  { %v4281_v32 = vpop.eup %4280 }
 0x633   :  { %v2571_v20 = vmul.f32 %v4281_v32, %v2570_v12  ;;  %v4283_v0 = vpop.eup %4282  ;;  %v5648_v32 = vld [vmem:[#allocation38_spill] sm:$0xff] }
 0x634   :  { %v2746_v6 = vadd.f32 1.0, %v4283_v0 }
 0x635   :  { %v2572_v13 = vadd.f32 %v2571_v20, %v2515_v21  ;;  %v5649_v20 = vld [vmem:[#allocation37_spill] sm:$0xff] }
 0x637   :  { %4288 = vtanh.f32 %v2572_v13  ;;  %v5650_v13 = vld [vmem:[#allocation39_spill] sm:$0xff] }
 0x638   :  { %4290 = vrcp.f32 %v2746_v6 }
 0x63a   :  { %v4285_v45 = vpop.eup %4284 }
 0x63b   :  { %v2750_v28 = vmul.f32 %v4285_v45, %v2749_v10  ;;  %v4287_v44 = vpop.eup %4286 }
 0x63c   :  { %v2574_v52 = vsub.f32 1.0, %v4287_v44  ;;  %v2576_v50 = vmul.f32 %v4287_v44, %v5235_v47 }
 0x63d   :  { %v2751_v31 = vadd.f32 %v2750_v28, %v5644_v38  ;;  %v5651_v28 = vld [vmem:[#allocation41_spill] sm:$0xff] }
 0x63f   :  { %4292 = vtanh.f32 %v2751_v31  ;;  %v5652_v31 = vld [vmem:[#allocation40_spill] sm:$0xff] }
 0x644   :  { %v4289_v25 = vpop.eup %4288 }
 0x645   :  { %v2575_v19 = vmul.f32 %v4289_v25, %v2574_v52  ;;  %v4291_v29 = vpop.eup %4290  ;;  %v5653_v25 = vld [vmem:[#allocation43_spill] sm:$0xff] }
 0x646   :  { %v2753_v18 = vsub.f32 1.0, %v4291_v29  ;;  %v2755_v47 = vmul.f32 %v4291_v29, %v5247_v60  ;;  %v5645_v60 = vld [vmem:[#allocation26_spill] sm:$0xff] }
 0x647   :  { %v5321_v5 = vadd.f32 %v2576_v50, %v2575_v19  ;;  %v5654_v50 = vld [vmem:[#allocation42_spill] sm:$0xff] }
 0x649   :  { %2922 = vperm.xlu1 %4171, %v5321_v5   ;;  %2578 = vst [vmem:[%s5534_s10 + $0x20] sm:$0xff] %v5321_v5  ;;  %2915 = vperm.xlu0 %4170, %v5321_v5  }
 0x64c   :  { %v4293_v36 = vpop.eup %4292 }
 0x64d   :  { %4172 = vset.pattern.permute.xlu1 %v5614_v37  ;;  %4173 = vset.pattern.permute.xlu0 %v5613_v11  ;;  %v2754_v35 = vmul.f32 %v4293_v36, %v2753_v18 }
 0x64e   :  { %2932 = vperm.xlu1 %4172, %v5321_v5   ;;  %2942 = vperm.xlu0 %4173, %v5321_v5  }
 0x64f   :  { %v5334_v41 = vadd.f32 %v2755_v47, %v2754_v35 }
 0x651   :  { %3844 = vmatmul.mubr.msk.f32.vlgmr.msra.gmra.mxu0 %vm632_vm5, %v5334_v41  ;;  %4097 = vmatmul.mubr.msk.f32.vlgmr.msra.gmra.mxu1 %vm632_vm5, %v5334_v41 }
 0x652   :  { %3014 = vmatpush1.msra.mxu0 %v5113_v39  ;;  %4100 = vmatpush3.msra.mxu1 %v5115_v17 }
 0x653   :  { %3015 = vmatprep.subr.mxu0 %v5118_v8  ;;  %4101 = vmatprep.subr.mxu1 %v5595_v58 }
 0x654   :  { %3016 = vmatpush1.msra.mxu0 %v5124_v57  ;;  %4102 = vmatpush3.msra.mxu1 %v5126_v56 }
 0x655   :  { %3017 = vmatprep.subr.mxu0 %v5130_v62  ;;  %4103 = vmatprep.subr.mxu1 %v5595_v58 }
 0x656   :  { %3018 = vmatpush1.msra.mxu0 %v5134_v61  ;;  %4104 = vmatpush3.msra.mxu1 %v5136_v33 }
 0x657   :  { %3019 = vmatprep.subr.mxu0 %v5140_v40  ;;  %4105 = vmatprep.subr.mxu1 %v5595_v58 }
 0x658   :  { %3020 = vmatpush1.msra.mxu0 %v5146_v42  ;;  %3053 = vmatprep.mubr.f32.mxu0 %v5595_v58 }
 0x659   :  { %4106 = vmatpush3.msra.mxu1 %v5150_v43  ;;  %4107 = vmatprep.mubr.msk.f32.mxu1 %vm4439_vm4, %v5595_v58 }
 0x65a   :  { %3848 = vmatmul.mubr.msk.f32.vlgmr.msra.gmra.mxu0 %vm632_vm5, %v5334_v41  ;;  %4108 = vmatmul.mubr.msk.f32.vlgmr.msra.gmra.mxu1 %vm632_vm5, %v5334_v41 }
 0x65b   :  { %3191 = vmatprep.subr.mxu0 %v5168_v46  ;;  %4110 = vmatprep.subr.mxu1 %v5595_v58 }
 0x65c   :  { %3192 = vmatpush1.msra.mxu0 %v5170_v48  ;;  %4111 = vmatpush3.msra.mxu1 %v5172_v49 }
 0x65d   :  { %3193 = vmatprep.subr.mxu0 %v5176_v51  ;;  %4112 = vmatprep.subr.mxu1 %v5595_v58 }
 0x65e   :  { %3194 = vmatpush1.msra.mxu0 %v5178_v53  ;;  %4113 = vmatpush3.msra.mxu1 %v5180_v54 }
 0x65f   :  { %4174 = vset.pattern.permute.xlu1 %v5605_v59  ;;  %4176 = vset.pattern.permute.xlu0 %v5614_v37 }
 0x660   :  { %3195 = vmatprep.subr.mxu0 %v5184_v15  ;;  %4114 = vmatprep.subr.mxu1 %v5595_v58 }
 0x661   :  { %3196 = vmatpush1.msra.mxu0 %v5191_v30  ;;  %4115 = vmatpush3.msra.mxu1 %v5193_v22 }
 0x662   :  { %3197 = vmatprep.subr.mxu0 %v5195_v14  ;;  %4116 = vmatprep.subr.mxu1 %v5595_v58 }
 0x663   :  { %3198 = vmatpush1.msra.mxu0 %v5645_v60  ;;  %4117 = vmatpush3.msra.mxu1 %v5646_v34 }
 0x664   :  { %3231 = vmatprep.mubr.f32.mxu0 %v5595_v58  ;;  %4118 = vmatprep.mubr.msk.f32.mxu1 %vm4439_vm4, %v5595_v58 }
 0x665   :  { %3408 = vmatprep.subr.mxu0 %v5647_v4  ;;  %4121 = vmatprep.subr.mxu1 %v5595_v58 }
 0x6c4   :  { %v2923_v55 = vpop.permute.xlu1 %2922  ;;  %v2916_v27 = vpop.permute.xlu0 %2915 }
 0x6c5   :  { %v2925_v21 = vmul.f32 %v2923_v55, %v5648_v32  ;;  %v2918_v0 = vmul.f32 %v2916_v27, %v5649_v20  ;;  %v2926_v38 = vmul.f32 %v2923_v55, %v5651_v28  ;;  %v2919_v44 = vmul.f32 %v2916_v27, %v5652_v31  ;;  %v5655_v32 = vld [vmem:[#allocation34_spill] sm:$0xff] }
 0x6c7   :  { %v2928_v10 = vadd.f32 %v2925_v21, %v2918_v0  ;;  %v2929_v35 = vadd.f32 %v2926_v38, %v2919_v44 }
 0x6c9   :  { %v2933_v12 = vpop.permute.xlu1 %2932  ;;  %v2943_v45 = vpop.permute.xlu0 %2942 }
 0x6ca   :  { %v2935_v6 = vmul.f32 %v2933_v12, %v5650_v13  ;;  %v2936_v19 = vmul.f32 %v2933_v12, %v5653_v25  ;;  %v2945_v29 = vmul.f32 %v2943_v45, %v5654_v50  ;;  %v2946_v0 = vmul.f32 %v2943_v45, %v4891_v16 }
 0x6cc   :  { %v2938_v52 = vadd.f32 %v2935_v6, %v2928_v10  ;;  %v2939_v13 = vadd.f32 %v2936_v19, %v2929_v35 }
 0x6ce   :  { %v2948_v4 = vadd.f32 %v2945_v29, %v2938_v52  ;;  %v2949_v6 = vadd.f32 %v2946_v0, %v2939_v13 }
 0x711   :  { %v2838_v18 = vpop.f32.mrf.mxu0  ;;  %v2909_v36 = vpop.f32.mrf.mxu1 }
 0x712   :  { %v2839_v47 = vadd.f32 %v2838_v18, %v5609_v63 }
 0x713   :  { %v2840_v37 = vpop.f32.mrf.mxu0  ;;  %v4098_v20 = vpop.f32.mrf.mxu1 }
 0x714   :  { %v2951_v21 = vadd.f32 %v2948_v4, %v2839_v47  ;;  %v2841_v31 = vadd.f32 %v2840_v37, %v4898_v2  ;;  %v5656_v20 = vld [vmem:[#allocation35_spill] sm:$0xff]  ;;  %v2927_v47 = vmul.f32 %v2923_v55, %v4908_v3  ;;  %v2920_v37 = vmul.f32 %v2916_v27, %v4905_v24 }
 0x715   :  { %v2947_v4 = vmul.f32 %v2943_v45, %v4918_v1  ;;  %v2910_v27 = vadd.f32 %v2909_v36, %v4925_v26  ;;  %v5657_v45 = vld [vmem:[#allocation24_spill] sm:$0xff] }
 0x716   :  { %v3846_v28 = vmul.f32 -1.442695, %v2951_v21  ;;  %v2958_v10 = vadd.f32 %v2949_v6, %v2841_v31 }
 0x718   :  { %4294 = vpow2.f32 %v3846_v28  ;;  %v3847_v18 = vmul.f32 -1.442695, %v2958_v10  ;;  %v2937_v28 = vmul.f32 %v2933_v12, %v4913_v9 }
 0x71a   :  { %v3055_v25 = vpop.f32.mrf.mxu0  ;;  %v3126_v50 = vpop.f32.mrf.mxu1 }
 0x71b   :  { %v3130_v34 = vadd.f32 %v3055_v25, %v5655_v32  ;;  %v2930_v32 = vadd.f32 %v2927_v47, %v2920_v37 }
 0x71c   :  { %v4109_v38 = vpop.f32.mrf.mxu1  ;;  %v3057_v52 = vpop.f32.mrf.mxu0 }
 0x71d   :  { %v3850_v44 = vmul.f32 -1.442695, %v3130_v34  ;;  %v3137_v19 = vadd.f32 %v3057_v52, %v5656_v20  ;;  %v2940_v34 = vadd.f32 %v2937_v28, %v2930_v32  ;;  %v3144_v52 = vadd.f32 %v5230_v23, %v3126_v50 }
 0x71f   :  { %4296 = vpow2.f32 %v3850_v44  ;;  %v3851_v35 = vmul.f32 -1.442695, %v3137_v19  ;;  %v2950_v0 = vadd.f32 %v2947_v4, %v2940_v34  ;;  %v5658_v4 = vmov 1  }
 0x720   :  { %4298 = vpow2.f32 %v3847_v18 }
 0x721   :  { %v2965_v10 = vadd.f32 %v5314_v7, %v2950_v0 }
 0x725   :  { %v4295_v29 = vpop.eup %4294 }
 0x726   :  { %v2955_v13 = vadd.f32 1.0, %v4295_v29 }
 0x728   :  { %4300 = vrcp.f32 %v2955_v13 }
 0x729   :  { %4302 = vpow2.f32 %v3851_v35 }
 0x72c   :  { %v4297_v31 = vpop.eup %4296 }
 0x72d   :  { %v3134_v25 = vadd.f32 1.0, %v4297_v31  ;;  %v4299_v21 = vpop.eup %4298 }
 0x72e   :  { %v2962_v6 = vadd.f32 1.0, %v4299_v21 }
 0x72f   :  { %4304 = vrcp.f32 %v3134_v25 }
 0x730   :  { %4306 = vrcp.f32 %v2962_v6 }
 0x735   :  { %v4301_v55 = vpop.eup %4300 }
 0x736   :  { %v4303_v38 = vpop.eup %4302  ;;  %v2966_v44 = vmul.f32 %v4301_v55, %v2965_v10 }
 0x737   :  { %v3141_v18 = vadd.f32 1.0, %v4303_v38 }
 0x738   :  { %v2967_v12 = vadd.f32 %v2966_v44, %v2910_v27 }
 0x73a   :  { %4308 = vtanh.f32 %v2967_v12 }
 0x73b   :  { %4310 = vrcp.f32 %v3141_v18 }
 0x73c   :  { %v4305_v20 = vpop.eup %4304 }
 0x73d   :  { %v3145_v19 = vmul.f32 %v4305_v20, %v3144_v52  ;;  %v4307_v35 = vpop.eup %4306 }
 0x73e   :  { %v2969_v47 = vsub.f32 1.0, %v4307_v35  ;;  %v2971_v28 = vmul.f32 %v4307_v35, %v5321_v5 }
 0x73f   :  { %v3146_v29 = vadd.f32 %v3145_v19, %v5657_v45  ;;  %v5667_v19 = vld [vmem:[#allocation36_spill] sm:$0xff] }
 0x741   :  { %4312 = vtanh.f32 %v3146_v29 }
 0x747   :  { %v4309_v37 = vpop.eup %4308 }
 0x748   :  { %v2970_v13 = vmul.f32 %v4309_v37, %v2969_v47  ;;  %v4311_v36 = vpop.eup %4310 }
 0x749   :  { %v3148_v50 = vsub.f32 1.0, %v4311_v36  ;;  %v3150_v25 = vmul.f32 %v4311_v36, %v5334_v41 }
 0x74a   :  { %v5405_v32 = vadd.f32 %v2971_v28, %v2970_v13  ;;  %v5668_v13 = vld [vmem:[#allocation25_spill] sm:$0xff] }
 0x74b   :  { %v5669_v28 = vld [vmem:[#allocation45_spill] sm:$0xff] }
 0x74c   :  { %3327 = vperm.xlu0 %4176, %v5405_v32   ;;  %2973 = vst [vmem:[%s5534_s10 + $0x28] sm:$0xff] %v5405_v32  ;;  %3310 = vperm.xlu1 %4174, %v5405_v32   ;;  %v384_v36 = vadd.f32 %v5669_v28, %v5668_v13 }
 0x74e   :  { %v4313_v31 = vpop.eup %4312 }
 0x74f   :  { %v3149_v34 = vmul.f32 %v4313_v31, %v3148_v50 }
 0x750   :  { %4175 = vset.pattern.permute.xlu1 %v5658_v4  ;;  %4179 = vset.pattern.permute.xlu0 %v5658_v4 }
 0x751   :  { %v5416_v5 = vadd.f32 %v3150_v25, %v3149_v34  ;;  %3317 = vperm.xlu1 %4175, %v5405_v32  }
 0x753   :  { %3852 = vmatmul.mubr.msk.f32.vlgmr.msra.gmra.mxu0 %vm632_vm5, %v5416_v5  ;;  %4119 = vmatmul.mubr.msk.f32.vlgmr.msra.gmra.mxu1 %vm632_vm5, %v5416_v5 }
 0x754   :  { %3409 = vmatpush1.msra.mxu0 %v5113_v39  ;;  %4122 = vmatpush3.msra.mxu1 %v5115_v17 }
 0x755   :  { %3410 = vmatprep.subr.mxu0 %v5118_v8  ;;  %4123 = vmatprep.subr.mxu1 %v5595_v58  ;;  %v5660_v8 = vld [vmem:[#allocation38_spill] sm:$0xff] }
 0x756   :  { %3411 = vmatpush1.msra.mxu0 %v5124_v57  ;;  %4124 = vmatpush3.msra.mxu1 %v5126_v56  ;;  %v5661_v56 = vld [vmem:[#allocation37_spill] sm:$0xff] }
 0x757   :  { %3412 = vmatprep.subr.mxu0 %v5130_v62  ;;  %4125 = vmatprep.subr.mxu1 %v5595_v58 }
 0x758   :  { %3413 = vmatpush1.msra.mxu0 %v5134_v61  ;;  %4126 = vmatpush3.msra.mxu1 %v5136_v33 }
 0x759   :  { %4177 = vset.pattern.permute.xlu1 %v5613_v11  ;;  %3414 = vmatprep.subr.mxu0 %v5140_v40 }
 0x75a   :  { %4127 = vmatprep.subr.mxu1 %v5595_v58  ;;  %3337 = vperm.xlu1 %4177, %v5405_v32  }
 0x75b   :  { %3415 = vmatpush1.msra.mxu0 %v5146_v42  ;;  %3448 = vmatprep.mubr.f32.mxu0 %v5595_v58  ;;  %v5662_v42 = vld [vmem:[#allocation39_spill] sm:$0xff] }
 0x75c   :  { %4128 = vmatpush3.msra.mxu1 %v5150_v43  ;;  %4129 = vmatprep.mubr.msk.f32.mxu1 %vm4439_vm4, %v5595_v58 }
 0x75d   :  { %3856 = vmatmul.mubr.msk.f32.vlgmr.msra.gmra.mxu0 %vm632_vm5, %v5416_v5  ;;  %4130 = vmatmul.mubr.msk.f32.vlgmr.msra.gmra.mxu1 %vm632_vm5, %v5416_v5 }
 0x75e   :  { %3586 = vmatprep.subr.mxu0 %v5168_v46  ;;  %4132 = vmatprep.subr.mxu1 %v5595_v58  ;;  %v5663_v46 = vld [vmem:[#allocation41_spill] sm:$0xff] }
 0x75f   :  { %3587 = vmatpush1.msra.mxu0 %v5170_v48  ;;  %4133 = vmatpush3.msra.mxu1 %v5172_v49  ;;  %v5664_v49 = vld [vmem:[#allocation40_spill] sm:$0xff] }
 0x760   :  { %3588 = vmatprep.subr.mxu0 %v5176_v51  ;;  %4134 = vmatprep.subr.mxu1 %v5595_v58 }
 0x761   :  { %4178 = vset.pattern.permute.xlu1 %v5605_v59  ;;  %3589 = vmatpush1.msra.mxu0 %v5178_v53  ;;  %v5659_v59 = vld [vmem:[#allocation27_spill] sm:$0xff]  ;;  %v5665_v53 = vld [vmem:[#allocation42_spill] sm:$0xff] }
 0x762   :  { %4135 = vmatpush3.msra.mxu1 %v5180_v54  ;;  %3590 = vmatprep.subr.mxu0 %v5184_v15 }
 0x763   :  { %4136 = vmatprep.subr.mxu1 %v5595_v58  ;;  %3591 = vmatpush1.msra.mxu0 %v5191_v30 }
 0x764   :  { %4137 = vmatpush3.msra.mxu1 %v5193_v22  ;;  %3592 = vmatprep.subr.mxu0 %v5195_v14  ;;  %v5666_v14 = vld [vmem:[#allocation43_spill] sm:$0xff] }
 0x765   :  { %4138 = vmatprep.subr.mxu1 %v5595_v58  ;;  %3593 = vmatpush1.msra.mxu0 %v5645_v60 }
 0x766   :  { %3626 = vmatprep.mubr.f32.mxu0 %v5595_v58  ;;  %4139 = vmatpush3.msra.mxu1 %v5659_v59 }
 0x767   :  { %4140 = vmatprep.mubr.msk.f32.mxu1 %vm4439_vm4, %v5595_v58 }
 0x7c7   :  { %v3311_v39 = vpop.permute.xlu1 %3310  ;;  %v3328_v61 = vpop.permute.xlu0 %3327 }
 0x7c8   :  { %v3313_v62 = vmul.f32 %v3311_v39, %v5661_v56  ;;  %v3330_v43 = vmul.f32 %v3328_v61, %v5662_v42  ;;  %v3314_v51 = vmul.f32 %v3311_v39, %v5664_v49  ;;  %v3331_v41 = vmul.f32 %v3328_v61, %v5666_v14 }
 0x7c9   :  { %v3315_v25 = vmul.f32 %v3311_v39, %v4905_v24 }
 0x7cc   :  { %v3318_v17 = vpop.permute.xlu1 %3317 }
 0x7cd   :  { %v3320_v57 = vmul.f32 %v3318_v17, %v5660_v8  ;;  %v3321_v48 = vmul.f32 %v3318_v17, %v5663_v46  ;;  %v3322_v31 = vmul.f32 %v3318_v17, %v4908_v3 }
 0x7cf   :  { %v3323_v33 = vadd.f32 %v3320_v57, %v3313_v62  ;;  %v3324_v30 = vadd.f32 %v3321_v48, %v3314_v51  ;;  %v3325_v57 = vadd.f32 %v3322_v31, %v3315_v25  ;;  %v3332_v62 = vmul.f32 %v3328_v61, %v4913_v9 }
 0x7d1   :  { %v3333_v15 = vadd.f32 %v3330_v43, %v3323_v33  ;;  %v3334_v38 = vadd.f32 %v3331_v41, %v3324_v30  ;;  %v3335_v33 = vadd.f32 %v3332_v62, %v3325_v57 }
 0x7d5   :  { %v3338_v40 = vpop.permute.xlu1 %3337 }
 0x7d6   :  { %v3340_v54 = vmul.f32 %v3338_v40, %v5665_v53  ;;  %v3341_v10 = vmul.f32 %v3338_v40, %v4891_v16  ;;  %v3342_v43 = vmul.f32 %v3338_v40, %v4918_v1 }
 0x7d8   :  { %v3343_v21 = vadd.f32 %v3340_v54, %v3333_v15  ;;  %v3344_v12 = vadd.f32 %v3341_v10, %v3334_v38  ;;  %v3345_v15 = vadd.f32 %v3342_v43, %v3335_v33  ;;  %v5670_v10 = vld [vmem:[#allocation23_spill] sm:$0xff] }
 0x7da   :  { %v3360_v17 = vadd.f32 %v5314_v7, %v3345_v15 }
 0x813   :  { %v3233_v58 = vpop.f32.mrf.mxu0  ;;  %v3304_v22 = vpop.f32.mrf.mxu1 }
 0x814   :  { %v3234_v60 = vadd.f32 %v3233_v58, %v5609_v63  ;;  %v3305_v39 = vadd.f32 %v3304_v22, %v4925_v26 }
 0x815   :  { %v3235_v0 = vpop.f32.mrf.mxu0  ;;  %v4120_v6 = vpop.f32.mrf.mxu1 }
 0x816   :  { %v3346_v55 = vadd.f32 %v3343_v21, %v3234_v60  ;;  %v3236_v44 = vadd.f32 %v3235_v0, %v4898_v2 }
 0x818   :  { %v3854_v27 = vmul.f32 -1.442695, %v3346_v55  ;;  %v3353_v18 = vadd.f32 %v3344_v12, %v3236_v44 }
 0x81a   :  { %4314 = vpow2.f32 %v3854_v27  ;;  %v3855_v35 = vmul.f32 -1.442695, %v3353_v18 }
 0x81d   :  { %v3450_v52 = vpop.f32.mrf.mxu0  ;;  %v3521_v20 = vpop.f32.mrf.mxu1 }
 0x81e   :  { %v3525_v45 = vadd.f32 %v3450_v52, %v5667_v19  ;;  %v3539_v0 = vadd.f32 %v5230_v23, %v3521_v20  ;;  %v5671_v19 = vmov 2  }
 0x81f   :  { %v4131_v29 = vpop.f32.mrf.mxu1  ;;  %v3452_v37 = vpop.f32.mrf.mxu0 }
 0x820   :  { %v3858_v47 = vmul.f32 -1.442695, %v3525_v45  ;;  %v3532_v50 = vadd.f32 %v3452_v37, %v384_v36 }
 0x822   :  { %4316 = vpow2.f32 %v3858_v47  ;;  %v3859_v59 = vmul.f32 -1.442695, %v3532_v50 }
 0x823   :  { %4318 = vpow2.f32 %v3855_v35 }
 0x827   :  { %v4315_v34 = vpop.eup %4314 }
 0x828   :  { %v3350_v4 = vadd.f32 1.0, %v4315_v34 }
 0x82a   :  { %4320 = vrcp.f32 %v3350_v4 }
 0x82b   :  { %4322 = vpow2.f32 %v3859_v59 }
 0x82f   :  { %v4317_v48 = vpop.eup %4316 }
 0x830   :  { %v3529_v51 = vadd.f32 1.0, %v4317_v48  ;;  %v4319_v54 = vpop.eup %4318 }
 0x831   :  { %v3357_v30 = vadd.f32 1.0, %v4319_v54 }
 0x832   :  { %4324 = vrcp.f32 %v3529_v51 }
 0x833   :  { %4326 = vrcp.f32 %v3357_v30 }
 0x837   :  { %v4321_v58 = vpop.eup %4320 }
 0x838   :  { %v3361_v41 = vmul.f32 %v4321_v58, %v3360_v17  ;;  %v4323_v60 = vpop.eup %4322 }
 0x839   :  { %v3536_v61 = vadd.f32 1.0, %v4323_v60 }
 0x83a   :  { %v3362_v21 = vadd.f32 %v3361_v41, %v3305_v39 }
 0x83c   :  { %4328 = vtanh.f32 %v3362_v21 }
 0x83d   :  { %4330 = vrcp.f32 %v3536_v61 }
 0x83f   :  { %v4325_v40 = vpop.eup %4324 }
 0x840   :  { %v3540_v6 = vmul.f32 %v4325_v40, %v3539_v0  ;;  %v4327_v38 = vpop.eup %4326 }
 0x841   :  { %v3364_v27 = vsub.f32 1.0, %v4327_v38  ;;  %v3366_v22 = vmul.f32 %v4327_v38, %v5405_v32 }
 0x842   :  { %v3541_v55 = vadd.f32 %v3540_v6, %v5670_v10 }
 0x844   :  { %4332 = vtanh.f32 %v3541_v55 }
 0x849   :  { %v4329_v44 = vpop.eup %4328 }
 0x84a   :  { %v3365_v12 = vmul.f32 %v4329_v44, %v3364_v27  ;;  %v4331_v52 = vpop.eup %4330 }
 0x84b   :  { %v3543_v23 = vsub.f32 1.0, %v4331_v52  ;;  %v3545_v29 = vmul.f32 %v4331_v52, %v5416_v5 }
 0x84c   :  { %v5488_v18 = vadd.f32 %v3366_v22, %v3365_v12 }
 0x84e   :  { %3712 = vperm.xlu0 %4179, %v5488_v18   ;;  %3368 = vst [vmem:[%s5534_s10 + $0x30] sm:$0xff] %v5488_v18  ;;  %3705 = vperm.xlu1 %4178, %v5488_v18  }
 0x851   :  { %v4333_v20 = vpop.eup %4332 }
 0x852   :  { %4180 = vset.pattern.permute.xlu1 %v5671_v19  ;;  %v3544_v45 = vmul.f32 %v4333_v20, %v3543_v23  ;;  %4182 = vset.pattern.permute.xlu0 %v5613_v11 }
 0x853   :  { %3722 = vperm.xlu1 %4180, %v5488_v18  }
 0x854   :  { %v3546_v32 = vadd.f32 %v3545_v29, %v3544_v45 }
 0x856   :  { %3860 = vmatmul.mubr.msk.f32.vlgmr.msra.gmra.mxu0 %vm632_vm5, %v3546_v32  ;;  %4141 = vmatmul.mubr.msk.f32.vlgmr.msra.gmra.mxu1 %vm632_vm5, %v3546_v32 }
 0x857   :  { %4181 = vset.pattern.permute.xlu1 %v5613_v11 }
 0x858   :  { %3732 = vperm.xlu1 %4181, %v5488_v18  }
 0x8c9   :  { %v3706_v35 = vpop.permute.xlu1 %3705  ;;  %v3713_v37 = vpop.permute.xlu0 %3712 }
 0x8ca   :  { %v3715_v13 = vmul.f32 %v3713_v37, %v5660_v8  ;;  %v3708_v5 = vmul.f32 %v3706_v35, %v5661_v56  ;;  %v3716_v34 = vmul.f32 %v3713_v37, %v5663_v46  ;;  %v3709_v25 = vmul.f32 %v3706_v35, %v5664_v49 }
 0x8cb   :  { %v3717_v17 = vmul.f32 %v3713_v37, %v4908_v3 }
 0x8cc   :  { %v3718_v50 = vadd.f32 %v3715_v13, %v3708_v5  ;;  %v3719_v43 = vadd.f32 %v3716_v34, %v3709_v25 }
 0x8ce   :  { %v3723_v47 = vpop.permute.xlu1 %3722 }
 0x8cf   :  { %v3725_v36 = vmul.f32 %v3723_v47, %v5662_v42  ;;  %v3726_v57 = vmul.f32 %v3723_v47, %v5666_v14  ;;  %v3727_v58 = vmul.f32 %v3723_v47, %v4913_v9 }
 0x8d1   :  { %v3728_v11 = vadd.f32 %v3725_v36, %v3718_v50  ;;  %v3729_v51 = vadd.f32 %v3726_v57, %v3719_v43 }
 0x8d3   :  { %v3733_v28 = vpop.permute.xlu1 %3732 }
 0x8d4   :  { %v3735_v31 = vmul.f32 %v3733_v28, %v5665_v53  ;;  %v3736_v42 = vmul.f32 %v3733_v28, %v4891_v16  ;;  %v3737_v39 = vmul.f32 %v3733_v28, %v4918_v1 }
 0x8d6   :  { %v3738_v62 = vadd.f32 %v3735_v31, %v3728_v11  ;;  %v3739_v54 = vadd.f32 %v3736_v42, %v3729_v51 }
 0x916   :  { %v3628_v4 = vpop.f32.mrf.mxu0  ;;  %v3699_v59 = vpop.f32.mrf.mxu1 }
 0x917   :  { %v3629_v8 = vadd.f32 %v3628_v4, %v5609_v63  ;;  %v3710_v63 = vmul.f32 %v3706_v35, %v4905_v24  ;;  %v3700_v40 = vadd.f32 %v3699_v59, %v4925_v26 }
 0x918   :  { %v3630_v33 = vpop.f32.mrf.mxu0  ;;  %v4142_v56 = vpop.f32.mrf.mxu1 }
 0x919   :  { %v3741_v48 = vadd.f32 %v3738_v62, %v3629_v8  ;;  %v3631_v46 = vadd.f32 %v3630_v33, %v4898_v2  ;;  %v3720_v16 = vadd.f32 %v3717_v17, %v3710_v63 }
 0x91b   :  { %v3862_v53 = vmul.f32 -1.442695, %v3741_v48  ;;  %v3748_v49 = vadd.f32 %v3739_v54, %v3631_v46  ;;  %v3730_v41 = vadd.f32 %v3727_v58, %v3720_v16 }
 0x91d   :  { %4334 = vpow2.f32 %v3862_v53  ;;  %v3863_v15 = vmul.f32 -1.442695, %v3748_v49  ;;  %v3740_v2 = vadd.f32 %v3737_v39, %v3730_v41 }
 0x91f   :  { %4336 = vpow2.f32 %v3863_v15  ;;  %v3755_v61 = vadd.f32 %v5314_v7, %v3740_v2 }
 0x92a   :  { %v4335_v30 = vpop.eup %4334 }
 0x92b   :  { %v3745_v14 = vadd.f32 1.0, %v4335_v30 }
 0x92c   :  { %v4337_v60 = vpop.eup %4336 }
 0x92d   :  { %4338 = vrcp.f32 %v3745_v14  ;;  %v3752_v21 = vadd.f32 1.0, %v4337_v60 }
 0x92f   :  { %4340 = vrcp.f32 %v3752_v21 }
 0x93a   :  { %v4339_v0 = vpop.eup %4338 }
 0x93b   :  { %v3756_v6 = vmul.f32 %v4339_v0, %v3755_v61 }
 0x93c   :  { %v4341_v24 = vpop.eup %4340 }
 0x93d   :  { %v3757_v3 = vadd.f32 %v3756_v6, %v3700_v40  ;;  %v3759_v10 = vsub.f32 1.0, %v4341_v24  ;;  %v3761_v38 = vmul.f32 %v4341_v24, %v5488_v18 }
 0x93f   :  { %4342 = vtanh.f32 %v3757_v3 }
 0x94c   :  { %v4343_v55 = vpop.eup %4342 }
 0x94d   :  { %v3760_v9 = vmul.f32 %v4343_v55, %v3759_v10 }
 0x94f   :  { %v3762_v1 = vadd.f32 %v3761_v38, %v3760_v9 }
 0x951   :  { %3763 = vst [vmem:[%s5534_s10 + $0x38] sm:$0xff] %v3762_v1 }
 0x952   :  { %3768 = vsyncpa [#allocation9], 1 }
 0x953   :  { %3769 = vsyncpa [#allocation11], 1 }
 0x954   :  { %3770 = vsyncpa [#allocation14], 1 }

</bundles_post_ra>
